<compile_context>
chip_gen: v5e
topology: v5e:2x2
jax: 0.10.0
libtpu: 0.0.40
codegen_flags: <defaults>
</compile_context>

<pallas_src>
import functools

import jax
import jax.numpy as jnp
import numpy as np
from jax.experimental import pallas as pl
from jax.experimental.pallas import tpu as pltpu

NEG_SLOPE = 0.2
EPS = 1e-5
SUB = 16  # bf16 sublane tile -> channel padding of the im2col strips


def _round_up(x, m):
    return ((x + m - 1) // m) * m


def _conv_block_kernel(x_ref, w1_ref, w2_ref, mask_ref, o_ref,
                       halo_ref, p1_ref, p2_ref, *, H, W, BB, Cpi, Cpo, Cout):
    # x_ref   : (BB, Cpi, HW)  f32   batch group, channel-padded, flat spatial on lanes
    # w1_ref  : (Cpo, 9*Cpi)   bf16  conv1 weights, K index = (kh*3+kw)*Cpi + cin
    #                                (M padded to Cpo with zero rows)
    # w2_ref  : (Cout, 9*Cpo)  bf16  conv2 weights
    # mask_ref: (2, HW)        f32   column-wrap masks: row0 = "w-1 valid", row1 = "w+1 valid"
    # o_ref   : (BB, Cout, HW) f32   lane-dense output slab
    # halo_ref: (Cpm, HW+2*PAD) f32  flat activation + zeroed lane halo -> every 3x3 tap
    #                                is a static in-bounds lane-offset slice
    # p1_ref  : (9*Cpi, BB*HW) bf16  im2col slab, conv1 (16-row aligned tap strips)
    # p2_ref  : (9*Cpo, BB*HW) bf16  im2col slab, conv2
    HW = H * W
    PAD = W + 1  # largest |flat tap shift| = W + 1

    # Zero the halo once; out-of-image row taps then read exact zeros, so only
    # the two column masks are needed (addresses the uninitialised-halo concern).
    halo_ref[...] = jnp.zeros_like(halo_ref)

    col_mask = mask_ref[...]  # (2, HW) f32 of {0., 1.}

    def im2col(act_b, b, Cp, p_ref):
        """Store the 3x3/pad-1 patch slab of act_b (Cp, HW) into columns b*HW.."""
        halo_ref[0:Cp, PAD:PAD + HW] = act_b
        for dh in range(3):
            for dw in range(3):
                t = dh * 3 + dw
                s = (dh - 1) * W + (dw - 1)        # flat-index shift of this tap
                if s == 0:
                    v = act_b
                else:
                    v = halo_ref[0:Cp, PAD + s:PAD + s + HW]
                if dw != 1:                        # mask the row-boundary column wraps
                    v = v * col_mask[dw // 2:dw // 2 + 1, :]
                # aligned full-tile strip store (Cp multiple of 16, b*HW multiple of 128)
                p_ref[t * Cp:(t + 1) * Cp, b * HW:(b + 1) * HW] = v.astype(p_ref.dtype)

    def inorm_lrelu(y):
        # InstanceNorm2d (affine=False, biased variance, eps=1e-5) over the lane
        # (spatial) axis, two-pass (centered) in f32, fused with LeakyReLU(0.2).
        inv_n = 1.0 / HW
        mean = jnp.sum(y, axis=1, keepdims=True) * inv_n
        c = y - mean
        var = jnp.sum(c * c, axis=1, keepdims=True) * inv_n
        z = c * jax.lax.rsqrt(var + EPS)
        return jnp.maximum(z, NEG_SLOPE * z)

    # ---- conv1: one fat MXU matmul (K = 9*Cpi, N = BB*HW), bf16 x bf16 -> f32 ----
    for b in range(BB):
        im2col(x_ref[b], b, Cpi, p1_ref)
    y1 = jnp.dot(w1_ref[...], p1_ref[...], preferred_element_type=jnp.float32)  # (Cpo, BB*HW)

    # ---- InstanceNorm + LeakyReLU per batch element; Dropout2d is identity (eval) ----
    # TODO(synk): training-mode Dropout2d would draw a per-channel mask with
    # pltpu.prng_seed / pltpu.prng_random_bits.
    for b in range(BB):
        a1_b = inorm_lrelu(y1[:, b * HW:(b + 1) * HW])   # (Cpo, HW); pad rows stay exactly 0
        im2col(a1_b, b, Cpo, p2_ref)

    # ---- conv2 + InstanceNorm + LeakyReLU ----
    y2 = jnp.dot(w2_ref[...], p2_ref[...], preferred_element_type=jnp.float32)  # (Cout, BB*HW)
    for b in range(BB):
        o_ref[b] = inorm_lrelu(y2[:, b * HW:(b + 1) * HW])


def conv_block_forward(x_nchw, w1_oihw, w2_oihw, *, batch_per_step=None):
    """ConvBlock forward. x_nchw: (B, Cin, H, W); weights OIHW (bias=False)."""
    B, Cin, H, W = x_nchw.shape
    Cout = w1_oihw.shape[0]
    HW, PAD = H * W, W + 1
    Cpi, Cpo = _round_up(Cin, SUB), _round_up(Cout, SUB)

    if batch_per_step is None:
        # Fold the whole batch into one grid step (maximal MXU N).  On v7x (2 TCs)
        # prefer B // 2 per step when B is even so both cores get a grid step.
        batch_per_step = B
    assert B % batch_per_step == 0
    BB = batch_per_step

    # Activations stay NCHW-native: only free reshapes + a zero channel pad
    # (no transposes, no spatial padding in HBM).
    x = jnp.pad(x_nchw.reshape(B, Cin, HW).astype(jnp.float32),
                ((0, 0), (0, Cpi - Cin), (0, 0)))

    def pack_w(w_oihw, c_pad, m_pad):
        # (O, I, 3, 3) -> (m_pad, 9*c_pad) bf16 with zero-padded I columns (and
        # zero-padded O rows for conv1, so a1 comes out channel-padded with zeros).
        O, I = w_oihw.shape[0], w_oihw.shape[1]
        w = jnp.transpose(w_oihw.astype(jnp.float32), (0, 2, 3, 1))      # (O, 3, 3, I)
        w = jnp.pad(w, ((0, m_pad - O), (0, 0), (0, 0), (0, c_pad - I)))
        return w.reshape(m_pad, 9 * c_pad).astype(jnp.bfloat16)

    w1p = pack_w(w1_oihw, Cpi, Cpo)
    w2p = pack_w(w2_oihw, Cpo, Cout)

    # Precomputed column-wrap masks (resident input; rebuilt nowhere in the kernel).
    col = jnp.arange(HW, dtype=jnp.int32) % W
    col_mask = jnp.stack([col >= 1, col <= W - 2]).astype(jnp.float32)   # (2, HW)

    kernel = functools.partial(_conv_block_kernel, H=H, W=W, BB=BB,
                               Cpi=Cpi, Cpo=Cpo, Cout=Cout)

    out_flat = pl.pallas_call(
        kernel,
        out_shape=jax.ShapeDtypeStruct((B, Cout, HW), jnp.float32),
        grid_spec=pltpu.PrefetchScalarGridSpec(
            num_scalar_prefetch=0,
            grid=(B // BB,),
            in_specs=[
                pl.BlockSpec((BB, Cpi, HW), lambda g: (g, 0, 0)),
                pl.BlockSpec((Cpo, 9 * Cpi), lambda g: (0, 0)),    # weights resident
                pl.BlockSpec((Cout, 9 * Cpo), lambda g: (0, 0)),
                pl.BlockSpec((2, HW), lambda g: (0, 0)),           # column masks resident
            ],
            out_specs=pl.BlockSpec((BB, Cout, HW), lambda g: (g, 0, 0)),
            scratch_shapes=[
                pltpu.VMEM((max(Cpi, Cpo), HW + 2 * PAD), jnp.float32),  # flat + zeroed halo
                pltpu.VMEM((9 * Cpi, BB * HW), jnp.bfloat16),            # im2col slab, conv1
                pltpu.VMEM((9 * Cpo, BB * HW), jnp.bfloat16),            # im2col slab, conv2
            ],
        ),
        compiler_params=pltpu.CompilerParams(
            dimension_semantics=("parallel",),
            vmem_limit_bytes=32 * 1024 * 1024,  # explicit bound; TODO(synk): K-tile slabs for large C*H*W
        ),
    )(x, w1p, w2p, col_mask)

    return out_flat.reshape(B, Cout, H, W)


def _reference(x_nchw, w1_oihw, w2_oihw):
    """Pure-JAX f32 reference matching PyTorch ConvBlock (eval mode)."""
    def conv(x, w):
        return jax.lax.conv_general_dilated(
            x, w, window_strides=(1, 1), padding="SAME",
            dimension_numbers=("NCHW", "OIHW", "NCHW"),
            precision=jax.lax.Precision.HIGHEST)

    def inorm_lrelu(x):
        mean = jnp.mean(x, axis=(2, 3), keepdims=True)
        var = jnp.mean((x - mean) ** 2, axis=(2, 3), keepdims=True)
        y = (x - mean) / jnp.sqrt(var + EPS)
        return jnp.where(y >= 0, y, NEG_SLOPE * y)

    h = inorm_lrelu(conv(x_nchw, w1_oihw))
    return inorm_lrelu(conv(h, w2_oihw))


if __name__ == "__main__":
    B, Cin, Cout, H, W = 2, 4, 8, 16, 16  # drop_prob irrelevant in eval mode

    key = jax.random.PRNGKey(0)
    k1, k2, k3 = jax.random.split(key, 3)
    x = jax.random.normal(k1, (B, Cin, H, W), dtype=jnp.float32)
    # deterministic synthetic parameters (PyTorch shapes: OIHW, bias=False)
    w1 = 0.1 * jax.random.normal(k2, (Cout, Cin, 3, 3), dtype=jnp.float32)
    w2 = 0.1 * jax.random.normal(k3, (Cout, Cout, 3, 3), dtype=jnp.float32)

    out = jax.block_until_ready(conv_block_forward(x, w1, w2))
    ref = jax.block_until_ready(_reference(x, w1, w2))

    assert out.shape == (B, Cout, H, W)
    # bf16 MXU operands (f32 accumulation) -> relaxed tolerance vs. the f32 reference.
    np.testing.assert_allclose(np.asarray(out), np.asarray(ref),
                               rtol=3e-2, atol=3e-2)
    print("KERNEL_OK")
</pallas_src>

<mosaic_0001>
module attributes {stable_mosaic.version = 11 : i64} {
  func.func @_conv_block_kernel(%arg0: i32, %arg1: memref<2x16x256xf32, #tpu.memory_space<vmem>>, %arg2: memref<16x144xbf16, #tpu.memory_space<vmem>>, %arg3: memref<8x144xbf16, #tpu.memory_space<vmem>>, %arg4: memref<2x256xf32, #tpu.memory_space<vmem>>, %arg5: memref<2x8x256xf32, #tpu.memory_space<vmem>>, %arg6: memref<16x290xf32, #tpu.memory_space<vmem>>, %arg7: memref<144x512xbf16, #tpu.memory_space<vmem>>, %arg8: memref<144x512xbf16, #tpu.memory_space<vmem>>) attributes {dimension_semantics = [#tpu.dimension_semantics<parallel>], iteration_bounds = array<i64: 1>, scalar_prefetch = 0 : i64, scratch_operands = 3 : i64, tpu.core_type = #tpu.core_type<tc>, window_params = [{transform_indices = @transform_0, window_bounds = array<i64: 2, 16, 256>}, {pipeline_mode = #tpu.pipeline_mode<synchronous>, transform_indices = @transform_1, window_bounds = array<i64: 16, 144>}, {pipeline_mode = #tpu.pipeline_mode<synchronous>, transform_indices = @transform_2, window_bounds = array<i64: 8, 144>}, {pipeline_mode = #tpu.pipeline_mode<synchronous>, transform_indices = @transform_3, window_bounds = array<i64: 2, 256>}, {transform_indices = @transform_4, window_bounds = array<i64: 2, 8, 256>}]} {
    %cst = arith.constant 0.000000e+00 : f32
    %0 = vector.broadcast %cst : f32 to vector<16x290xf32>
    %c0 = arith.constant 0 : index
    %c0_0 = arith.constant 0 : index
    %1 = vector.load %arg6[%c0, %c0_0] : memref<16x290xf32, #tpu.memory_space<vmem>>, vector<16x290xf32>
    tpu.vector_store %arg6[%c0, %c0_0], %0 {strides = array<i32>} : memref<16x290xf32, #tpu.memory_space<vmem>>, vector<16x290xf32>,
    %c0_1 = arith.constant 0 : index
    %c0_2 = arith.constant 0 : index
    %2 = vector.load %arg4[%c0_1, %c0_2] : memref<2x256xf32, #tpu.memory_space<vmem>>, vector<2x256xf32>
    %c0_3 = arith.constant 0 : index
    %c0_4 = arith.constant 0 : index
    %c0_5 = arith.constant 0 : index
    %3 = vector.load %arg1[%c0_3, %c0_4, %c0_5] : memref<2x16x256xf32, #tpu.memory_space<vmem>>, vector<1x16x256xf32>
    %4 = vector.shape_cast %3 : vector<1x16x256xf32> to vector<16x256xf32>
    %c0_6 = arith.constant 0 : index
    %c17 = arith.constant 17 : index
    %5 = vector.load %arg6[%c0_6, %c17] : memref<16x290xf32, #tpu.memory_space<vmem>>, vector<16x256xf32>
    tpu.vector_store %arg6[%c0_6, %c17], %4 {strides = array<i32>} : memref<16x290xf32, #tpu.memory_space<vmem>>, vector<16x256xf32>,
    %c0_7 = arith.constant 0 : index
    %c0_8 = arith.constant 0 : index
    %6 = vector.load %arg6[%c0_7, %c0_8] : memref<16x290xf32, #tpu.memory_space<vmem>>, vector<16x256xf32>
    %7 = vector.extract_strided_slice %2 {offsets = [0, 0], sizes = [1, 256], strides = [1, 1]} : vector<2x256xf32> to vector<1x256xf32>
    %8 = vector.broadcast %7 : vector<1x256xf32> to vector<16x256xf32>
    %9 = arith.mulf %6, %8 : vector<16x256xf32>
    %10 = arith.truncf %9 : vector<16x256xf32> to vector<16x256xbf16>
    %c0_9 = arith.constant 0 : index
    %c0_10 = arith.constant 0 : index
    %11 = vector.load %arg7[%c0_9, %c0_10] : memref<144x512xbf16, #tpu.memory_space<vmem>>, vector<16x256xbf16>
    tpu.vector_store %arg7[%c0_9, %c0_10], %10 {strides = array<i32>} : memref<144x512xbf16, #tpu.memory_space<vmem>>, vector<16x256xbf16>,
    %c0_11 = arith.constant 0 : index
    %c1 = arith.constant 1 : index
    %12 = vector.load %arg6[%c0_11, %c1] : memref<16x290xf32, #tpu.memory_space<vmem>>, vector<16x256xf32>
    %13 = arith.truncf %12 : vector<16x256xf32> to vector<16x256xbf16>
    %c16 = arith.constant 16 : index
    %c0_12 = arith.constant 0 : index
    %14 = vector.load %arg7[%c16, %c0_12] : memref<144x512xbf16, #tpu.memory_space<vmem>>, vector<16x256xbf16>
    tpu.vector_store %arg7[%c16, %c0_12], %13 {strides = array<i32>} : memref<144x512xbf16, #tpu.memory_space<vmem>>, vector<16x256xbf16>,
    %c0_13 = arith.constant 0 : index
    %c2 = arith.constant 2 : index
    %15 = vector.load %arg6[%c0_13, %c2] : memref<16x290xf32, #tpu.memory_space<vmem>>, vector<16x256xf32>
    %16 = vector.extract_strided_slice %2 {offsets = [1, 0], sizes = [1, 256], strides = [1, 1]} : vector<2x256xf32> to vector<1x256xf32>
    %17 = vector.broadcast %16 : vector<1x256xf32> to vector<16x256xf32>
    %18 = arith.mulf %15, %17 : vector<16x256xf32>
    %19 = arith.truncf %18 : vector<16x256xf32> to vector<16x256xbf16>
    %c32 = arith.constant 32 : index
    %c0_14 = arith.constant 0 : index
    %20 = vector.load %arg7[%c32, %c0_14] : memref<144x512xbf16, #tpu.memory_space<vmem>>, vector<16x256xbf16>
    tpu.vector_store %arg7[%c32, %c0_14], %19 {strides = array<i32>} : memref<144x512xbf16, #tpu.memory_space<vmem>>, vector<16x256xbf16>,
    %c0_15 = arith.constant 0 : index
    %c16_16 = arith.constant 16 : index
    %21 = vector.load %arg6[%c0_15, %c16_16] : memref<16x290xf32, #tpu.memory_space<vmem>>, vector<16x256xf32>
    %22 = vector.extract_strided_slice %2 {offsets = [0, 0], sizes = [1, 256], strides = [1, 1]} : vector<2x256xf32> to vector<1x256xf32>
    %23 = vector.broadcast %22 : vector<1x256xf32> to vector<16x256xf32>
    %24 = arith.mulf %21, %23 : vector<16x256xf32>
    %25 = arith.truncf %24 : vector<16x256xf32> to vector<16x256xbf16>
    %c48 = arith.constant 48 : index
    %c0_17 = arith.constant 0 : index
    %26 = vector.load %arg7[%c48, %c0_17] : memref<144x512xbf16, #tpu.memory_space<vmem>>, vector<16x256xbf16>
    tpu.vector_store %arg7[%c48, %c0_17], %25 {strides = array<i32>} : memref<144x512xbf16, #tpu.memory_space<vmem>>, vector<16x256xbf16>,
    %27 = arith.truncf %4 : vector<16x256xf32> to vector<16x256xbf16>
    %c64 = arith.constant 64 : index
    %c0_18 = arith.constant 0 : index
    %28 = vector.load %arg7[%c64, %c0_18] : memref<144x512xbf16, #tpu.memory_space<vmem>>, vector<16x256xbf16>
    tpu.vector_store %arg7[%c64, %c0_18], %27 {strides = array<i32>} : memref<144x512xbf16, #tpu.memory_space<vmem>>, vector<16x256xbf16>,
    %c0_19 = arith.constant 0 : index
    %c18 = arith.constant 18 : index
    %29 = vector.load %arg6[%c0_19, %c18] : memref<16x290xf32, #tpu.memory_space<vmem>>, vector<16x256xf32>
    %30 = vector.extract_strided_slice %2 {offsets = [1, 0], sizes = [1, 256], strides = [1, 1]} : vector<2x256xf32> to vector<1x256xf32>
    %31 = vector.broadcast %30 : vector<1x256xf32> to vector<16x256xf32>
    %32 = arith.mulf %29, %31 : vector<16x256xf32>
    %33 = arith.truncf %32 : vector<16x256xf32> to vector<16x256xbf16>
    %c80 = arith.constant 80 : index
    %c0_20 = arith.constant 0 : index
    %34 = vector.load %arg7[%c80, %c0_20] : memref<144x512xbf16, #tpu.memory_space<vmem>>, vector<16x256xbf16>
    tpu.vector_store %arg7[%c80, %c0_20], %33 {strides = array<i32>} : memref<144x512xbf16, #tpu.memory_space<vmem>>, vector<16x256xbf16>,
    %c0_21 = arith.constant 0 : index
    %c32_22 = arith.constant 32 : index
    %35 = vector.load %arg6[%c0_21, %c32_22] : memref<16x290xf32, #tpu.memory_space<vmem>>, vector<16x256xf32>
    %36 = vector.extract_strided_slice %2 {offsets = [0, 0], sizes = [1, 256], strides = [1, 1]} : vector<2x256xf32> to vector<1x256xf32>
    %37 = vector.broadcast %36 : vector<1x256xf32> to vector<16x256xf32>
    %38 = arith.mulf %35, %37 : vector<16x256xf32>
    %39 = arith.truncf %38 : vector<16x256xf32> to vector<16x256xbf16>
    %c96 = arith.constant 96 : index
    %c0_23 = arith.constant 0 : index
    %40 = vector.load %arg7[%c96, %c0_23] : memref<144x512xbf16, #tpu.memory_space<vmem>>, vector<16x256xbf16>
    tpu.vector_store %arg7[%c96, %c0_23], %39 {strides = array<i32>} : memref<144x512xbf16, #tpu.memory_space<vmem>>, vector<16x256xbf16>,
    %c0_24 = arith.constant 0 : index
    %c33 = arith.constant 33 : index
    %41 = vector.load %arg6[%c0_24, %c33] : memref<16x290xf32, #tpu.memory_space<vmem>>, vector<16x256xf32>
    %42 = arith.truncf %41 : vector<16x256xf32> to vector<16x256xbf16>
    %c112 = arith.constant 112 : index
    %c0_25 = arith.constant 0 : index
    %43 = vector.load %arg7[%c112, %c0_25] : memref<144x512xbf16, #tpu.memory_space<vmem>>, vector<16x256xbf16>
    tpu.vector_store %arg7[%c112, %c0_25], %42 {strides = array<i32>} : memref<144x512xbf16, #tpu.memory_space<vmem>>, vector<16x256xbf16>,
    %c0_26 = arith.constant 0 : index
    %c34 = arith.constant 34 : index
    %44 = vector.load %arg6[%c0_26, %c34] : memref<16x290xf32, #tpu.memory_space<vmem>>, vector<16x256xf32>
    %45 = vector.extract_strided_slice %2 {offsets = [1, 0], sizes = [1, 256], strides = [1, 1]} : vector<2x256xf32> to vector<1x256xf32>
    %46 = vector.broadcast %45 : vector<1x256xf32> to vector<16x256xf32>
    %47 = arith.mulf %44, %46 : vector<16x256xf32>
    %48 = arith.truncf %47 : vector<16x256xf32> to vector<16x256xbf16>
    %c128 = arith.constant 128 : index
    %c0_27 = arith.constant 0 : index
    %49 = vector.load %arg7[%c128, %c0_27] : memref<144x512xbf16, #tpu.memory_space<vmem>>, vector<16x256xbf16>
    tpu.vector_store %arg7[%c128, %c0_27], %48 {strides = array<i32>} : memref<144x512xbf16, #tpu.memory_space<vmem>>, vector<16x256xbf16>,
    %c1_28 = arith.constant 1 : index
    %c0_29 = arith.constant 0 : index
    %c0_30 = arith.constant 0 : index
    %50 = vector.load %arg1[%c1_28, %c0_29, %c0_30] : memref<2x16x256xf32, #tpu.memory_space<vmem>>, vector<1x16x256xf32>
    %51 = vector.shape_cast %50 : vector<1x16x256xf32> to vector<16x256xf32>
    %c0_31 = arith.constant 0 : index
    %c17_32 = arith.constant 17 : index
    %52 = vector.load %arg6[%c0_31, %c17_32] : memref<16x290xf32, #tpu.memory_space<vmem>>, vector<16x256xf32>
    tpu.vector_store %arg6[%c0_31, %c17_32], %51 {strides = array<i32>} : memref<16x290xf32, #tpu.memory_space<vmem>>, vector<16x256xf32>,
    %c0_33 = arith.constant 0 : index
    %c0_34 = arith.constant 0 : index
    %53 = vector.load %arg6[%c0_33, %c0_34] : memref<16x290xf32, #tpu.memory_space<vmem>>, vector<16x256xf32>
    %54 = vector.extract_strided_slice %2 {offsets = [0, 0], sizes = [1, 256], strides = [1, 1]} : vector<2x256xf32> to vector<1x256xf32>
    %55 = vector.broadcast %54 : vector<1x256xf32> to vector<16x256xf32>
    %56 = arith.mulf %53, %55 : vector<16x256xf32>
    %57 = arith.truncf %56 : vector<16x256xf32> to vector<16x256xbf16>
    %c0_35 = arith.constant 0 : index
    %c256 = arith.constant 256 : index
    %58 = vector.load %arg7[%c0_35, %c256] : memref<144x512xbf16, #tpu.memory_space<vmem>>, vector<16x256xbf16>
    tpu.vector_store %arg7[%c0_35, %c256], %57 {strides = array<i32>} : memref<144x512xbf16, #tpu.memory_space<vmem>>, vector<16x256xbf16>,
    %c0_36 = arith.constant 0 : index
    %c1_37 = arith.constant 1 : index
    %59 = vector.load %arg6[%c0_36, %c1_37] : memref<16x290xf32, #tpu.memory_space<vmem>>, vector<16x256xf32>
    %60 = arith.truncf %59 : vector<16x256xf32> to vector<16x256xbf16>
    %c16_38 = arith.constant 16 : index
    %c256_39 = arith.constant 256 : index
    %61 = vector.load %arg7[%c16_38, %c256_39] : memref<144x512xbf16, #tpu.memory_space<vmem>>, vector<16x256xbf16>
    tpu.vector_store %arg7[%c16_38, %c256_39], %60 {strides = array<i32>} : memref<144x512xbf16, #tpu.memory_space<vmem>>, vector<16x256xbf16>,
    %c0_40 = arith.constant 0 : index
    %c2_41 = arith.constant 2 : index
    %62 = vector.load %arg6[%c0_40, %c2_41] : memref<16x290xf32, #tpu.memory_space<vmem>>, vector<16x256xf32>
    %63 = vector.extract_strided_slice %2 {offsets = [1, 0], sizes = [1, 256], strides = [1, 1]} : vector<2x256xf32> to vector<1x256xf32>
    %64 = vector.broadcast %63 : vector<1x256xf32> to vector<16x256xf32>
    %65 = arith.mulf %62, %64 : vector<16x256xf32>
    %66 = arith.truncf %65 : vector<16x256xf32> to vector<16x256xbf16>
    %c32_42 = arith.constant 32 : index
    %c256_43 = arith.constant 256 : index
    %67 = vector.load %arg7[%c32_42, %c256_43] : memref<144x512xbf16, #tpu.memory_space<vmem>>, vector<16x256xbf16>
    tpu.vector_store %arg7[%c32_42, %c256_43], %66 {strides = array<i32>} : memref<144x512xbf16, #tpu.memory_space<vmem>>, vector<16x256xbf16>,
    %c0_44 = arith.constant 0 : index
    %c16_45 = arith.constant 16 : index
    %68 = vector.load %arg6[%c0_44, %c16_45] : memref<16x290xf32, #tpu.memory_space<vmem>>, vector<16x256xf32>
    %69 = vector.extract_strided_slice %2 {offsets = [0, 0], sizes = [1, 256], strides = [1, 1]} : vector<2x256xf32> to vector<1x256xf32>
    %70 = vector.broadcast %69 : vector<1x256xf32> to vector<16x256xf32>
    %71 = arith.mulf %68, %70 : vector<16x256xf32>
    %72 = arith.truncf %71 : vector<16x256xf32> to vector<16x256xbf16>
    %c48_46 = arith.constant 48 : index
    %c256_47 = arith.constant 256 : index
    %73 = vector.load %arg7[%c48_46, %c256_47] : memref<144x512xbf16, #tpu.memory_space<vmem>>, vector<16x256xbf16>
    tpu.vector_store %arg7[%c48_46, %c256_47], %72 {strides = array<i32>} : memref<144x512xbf16, #tpu.memory_space<vmem>>, vector<16x256xbf16>,
    %74 = arith.truncf %51 : vector<16x256xf32> to vector<16x256xbf16>
    %c64_48 = arith.constant 64 : index
    %c256_49 = arith.constant 256 : index
    %75 = vector.load %arg7[%c64_48, %c256_49] : memref<144x512xbf16, #tpu.memory_space<vmem>>, vector<16x256xbf16>
    tpu.vector_store %arg7[%c64_48, %c256_49], %74 {strides = array<i32>} : memref<144x512xbf16, #tpu.memory_space<vmem>>, vector<16x256xbf16>,
    %c0_50 = arith.constant 0 : index
    %c18_51 = arith.constant 18 : index
    %76 = vector.load %arg6[%c0_50, %c18_51] : memref<16x290xf32, #tpu.memory_space<vmem>>, vector<16x256xf32>
    %77 = vector.extract_strided_slice %2 {offsets = [1, 0], sizes = [1, 256], strides = [1, 1]} : vector<2x256xf32> to vector<1x256xf32>
    %78 = vector.broadcast %77 : vector<1x256xf32> to vector<16x256xf32>
    %79 = arith.mulf %76, %78 : vector<16x256xf32>
    %80 = arith.truncf %79 : vector<16x256xf32> to vector<16x256xbf16>
    %c80_52 = arith.constant 80 : index
    %c256_53 = arith.constant 256 : index
    %81 = vector.load %arg7[%c80_52, %c256_53] : memref<144x512xbf16, #tpu.memory_space<vmem>>, vector<16x256xbf16>
    tpu.vector_store %arg7[%c80_52, %c256_53], %80 {strides = array<i32>} : memref<144x512xbf16, #tpu.memory_space<vmem>>, vector<16x256xbf16>,
    %c0_54 = arith.constant 0 : index
    %c32_55 = arith.constant 32 : index
    %82 = vector.load %arg6[%c0_54, %c32_55] : memref<16x290xf32, #tpu.memory_space<vmem>>, vector<16x256xf32>
    %83 = vector.extract_strided_slice %2 {offsets = [0, 0], sizes = [1, 256], strides = [1, 1]} : vector<2x256xf32> to vector<1x256xf32>
    %84 = vector.broadcast %83 : vector<1x256xf32> to vector<16x256xf32>
    %85 = arith.mulf %82, %84 : vector<16x256xf32>
    %86 = arith.truncf %85 : vector<16x256xf32> to vector<16x256xbf16>
    %c96_56 = arith.constant 96 : index
    %c256_57 = arith.constant 256 : index
    %87 = vector.load %arg7[%c96_56, %c256_57] : memref<144x512xbf16, #tpu.memory_space<vmem>>, vector<16x256xbf16>
    tpu.vector_store %arg7[%c96_56, %c256_57], %86 {strides = array<i32>} : memref<144x512xbf16, #tpu.memory_space<vmem>>, vector<16x256xbf16>,
    %c0_58 = arith.constant 0 : index
    %c33_59 = arith.constant 33 : index
    %88 = vector.load %arg6[%c0_58, %c33_59] : memref<16x290xf32, #tpu.memory_space<vmem>>, vector<16x256xf32>
    %89 = arith.truncf %88 : vector<16x256xf32> to vector<16x256xbf16>
    %c112_60 = arith.constant 112 : index
    %c256_61 = arith.constant 256 : index
    %90 = vector.load %arg7[%c112_60, %c256_61] : memref<144x512xbf16, #tpu.memory_space<vmem>>, vector<16x256xbf16>
    tpu.vector_store %arg7[%c112_60, %c256_61], %89 {strides = array<i32>} : memref<144x512xbf16, #tpu.memory_space<vmem>>, vector<16x256xbf16>,
    %c0_62 = arith.constant 0 : index
    %c34_63 = arith.constant 34 : index
    %91 = vector.load %arg6[%c0_62, %c34_63] : memref<16x290xf32, #tpu.memory_space<vmem>>, vector<16x256xf32>
    %92 = vector.extract_strided_slice %2 {offsets = [1, 0], sizes = [1, 256], strides = [1, 1]} : vector<2x256xf32> to vector<1x256xf32>
    %93 = vector.broadcast %92 : vector<1x256xf32> to vector<16x256xf32>
    %94 = arith.mulf %91, %93 : vector<16x256xf32>
    %95 = arith.truncf %94 : vector<16x256xf32> to vector<16x256xbf16>
    %c128_64 = arith.constant 128 : index
    %c256_65 = arith.constant 256 : index
    %96 = vector.load %arg7[%c128_64, %c256_65] : memref<144x512xbf16, #tpu.memory_space<vmem>>, vector<16x256xbf16>
    tpu.vector_store %arg7[%c128_64, %c256_65], %95 {strides = array<i32>} : memref<144x512xbf16, #tpu.memory_space<vmem>>, vector<16x256xbf16>,
    %c0_66 = arith.constant 0 : index
    %c0_67 = arith.constant 0 : index
    %97 = vector.load %arg2[%c0_66, %c0_67] : memref<16x144xbf16, #tpu.memory_space<vmem>>, vector<16x144xbf16>
    %c0_68 = arith.constant 0 : index
    %c0_69 = arith.constant 0 : index
    %98 = vector.load %arg7[%c0_68, %c0_69] : memref<144x512xbf16, #tpu.memory_space<vmem>>, vector<144x512xbf16>
    %cst_70 = arith.constant dense<0.000000e+00> : vector<16x512xf32>
    %99 = tpu.matmul %97, %98, %cst_70 {dimension_numbers = #tpu.dot_dimension_numbers<[1], [0], [0], [1], [0, 0, 1, 1], [], []>} : vector<16x144xbf16>, vector<144x512xbf16>, vector<16x512xf32> -> vector<16x512xf32>
    %100 = vector.extract_strided_slice %99 {offsets = [0, 0], sizes = [16, 256], strides = [1, 1]} : vector<16x512xf32> to vector<16x256xf32>
    %cst_71 = arith.constant dense<0.000000e+00> : vector<16xf32>
    %101 = vector.multi_reduction <add>, %100, %cst_71 [1] : vector<16x256xf32> to vector<16xf32>
    %102 = vector.shape_cast %101 : vector<16xf32> to vector<16x1xf32>
    %cst_72 = arith.constant 3.906250e-03 : f32
    %103 = vector.broadcast %cst_72 : f32 to vector<16x1xf32>
    %104 = arith.mulf %102, %103 : vector<16x1xf32>
    %105 = vector.broadcast %104 : vector<16x1xf32> to vector<16x256xf32>
    %106 = arith.subf %100, %105 : vector<16x256xf32>
    %107 = arith.mulf %106, %106 : vector<16x256xf32>
    %cst_73 = arith.constant dense<0.000000e+00> : vector<16xf32>
    %108 = vector.multi_reduction <add>, %107, %cst_73 [1] : vector<16x256xf32> to vector<16xf32>
    %109 = vector.shape_cast %108 : vector<16xf32> to vector<16x1xf32>
    %cst_74 = arith.constant 3.906250e-03 : f32
    %110 = vector.broadcast %cst_74 : f32 to vector<16x1xf32>
    %111 = arith.mulf %109, %110 : vector<16x1xf32>
    %cst_75 = arith.constant 9.99999974E-6 : f32
    %112 = vector.broadcast %cst_75 : f32 to vector<16x1xf32>
    %113 = arith.addf %111, %112 : vector<16x1xf32>
    %114 = math.rsqrt %113 : vector<16x1xf32>
    %115 = vector.broadcast %114 : vector<16x1xf32> to vector<16x256xf32>
    %116 = arith.mulf %106, %115 : vector<16x256xf32>
    %cst_76 = arith.constant 2.000000e-01 : f32
    %117 = vector.broadcast %cst_76 : f32 to vector<16x256xf32>
    %118 = arith.mulf %117, %116 : vector<16x256xf32>
    %119 = arith.maximumf %116, %118 : vector<16x256xf32>
    %c0_77 = arith.constant 0 : index
    %c17_78 = arith.constant 17 : index
    %120 = vector.load %arg6[%c0_77, %c17_78] : memref<16x290xf32, #tpu.memory_space<vmem>>, vector<16x256xf32>
    tpu.vector_store %arg6[%c0_77, %c17_78], %119 {strides = array<i32>} : memref<16x290xf32, #tpu.memory_space<vmem>>, vector<16x256xf32>,
    %c0_79 = arith.constant 0 : index
    %c0_80 = arith.constant 0 : index
    %121 = vector.load %arg6[%c0_79, %c0_80] : memref<16x290xf32, #tpu.memory_space<vmem>>, vector<16x256xf32>
    %122 = vector.extract_strided_slice %2 {offsets = [0, 0], sizes = [1, 256], strides = [1, 1]} : vector<2x256xf32> to vector<1x256xf32>
    %123 = vector.broadcast %122 : vector<1x256xf32> to vector<16x256xf32>
    %124 = arith.mulf %121, %123 : vector<16x256xf32>
    %125 = arith.truncf %124 : vector<16x256xf32> to vector<16x256xbf16>
    %c0_81 = arith.constant 0 : index
    %c0_82 = arith.constant 0 : index
    %126 = vector.load %arg8[%c0_81, %c0_82] : memref<144x512xbf16, #tpu.memory_space<vmem>>, vector<16x256xbf16>
    tpu.vector_store %arg8[%c0_81, %c0_82], %125 {strides = array<i32>} : memref<144x512xbf16, #tpu.memory_space<vmem>>, vector<16x256xbf16>,
    %c0_83 = arith.constant 0 : index
    %c1_84 = arith.constant 1 : index
    %127 = vector.load %arg6[%c0_83, %c1_84] : memref<16x290xf32, #tpu.memory_space<vmem>>, vector<16x256xf32>
    %128 = arith.truncf %127 : vector<16x256xf32> to vector<16x256xbf16>
    %c16_85 = arith.constant 16 : index
    %c0_86 = arith.constant 0 : index
    %129 = vector.load %arg8[%c16_85, %c0_86] : memref<144x512xbf16, #tpu.memory_space<vmem>>, vector<16x256xbf16>
    tpu.vector_store %arg8[%c16_85, %c0_86], %128 {strides = array<i32>} : memref<144x512xbf16, #tpu.memory_space<vmem>>, vector<16x256xbf16>,
    %c0_87 = arith.constant 0 : index
    %c2_88 = arith.constant 2 : index
    %130 = vector.load %arg6[%c0_87, %c2_88] : memref<16x290xf32, #tpu.memory_space<vmem>>, vector<16x256xf32>
    %131 = vector.extract_strided_slice %2 {offsets = [1, 0], sizes = [1, 256], strides = [1, 1]} : vector<2x256xf32> to vector<1x256xf32>
    %132 = vector.broadcast %131 : vector<1x256xf32> to vector<16x256xf32>
    %133 = arith.mulf %130, %132 : vector<16x256xf32>
    %134 = arith.truncf %133 : vector<16x256xf32> to vector<16x256xbf16>
    %c32_89 = arith.constant 32 : index
    %c0_90 = arith.constant 0 : index
    %135 = vector.load %arg8[%c32_89, %c0_90] : memref<144x512xbf16, #tpu.memory_space<vmem>>, vector<16x256xbf16>
    tpu.vector_store %arg8[%c32_89, %c0_90], %134 {strides = array<i32>} : memref<144x512xbf16, #tpu.memory_space<vmem>>, vector<16x256xbf16>,
    %c0_91 = arith.constant 0 : index
    %c16_92 = arith.constant 16 : index
    %136 = vector.load %arg6[%c0_91, %c16_92] : memref<16x290xf32, #tpu.memory_space<vmem>>, vector<16x256xf32>
    %137 = vector.extract_strided_slice %2 {offsets = [0, 0], sizes = [1, 256], strides = [1, 1]} : vector<2x256xf32> to vector<1x256xf32>
    %138 = vector.broadcast %137 : vector<1x256xf32> to vector<16x256xf32>
    %139 = arith.mulf %136, %138 : vector<16x256xf32>
    %140 = arith.truncf %139 : vector<16x256xf32> to vector<16x256xbf16>
    %c48_93 = arith.constant 48 : index
    %c0_94 = arith.constant 0 : index
    %141 = vector.load %arg8[%c48_93, %c0_94] : memref<144x512xbf16, #tpu.memory_space<vmem>>, vector<16x256xbf16>
    tpu.vector_store %arg8[%c48_93, %c0_94], %140 {strides = array<i32>} : memref<144x512xbf16, #tpu.memory_space<vmem>>, vector<16x256xbf16>,
    %142 = arith.truncf %119 : vector<16x256xf32> to vector<16x256xbf16>
    %c64_95 = arith.constant 64 : index
    %c0_96 = arith.constant 0 : index
    %143 = vector.load %arg8[%c64_95, %c0_96] : memref<144x512xbf16, #tpu.memory_space<vmem>>, vector<16x256xbf16>
    tpu.vector_store %arg8[%c64_95, %c0_96], %142 {strides = array<i32>} : memref<144x512xbf16, #tpu.memory_space<vmem>>, vector<16x256xbf16>,
    %c0_97 = arith.constant 0 : index
    %c18_98 = arith.constant 18 : index
    %144 = vector.load %arg6[%c0_97, %c18_98] : memref<16x290xf32, #tpu.memory_space<vmem>>, vector<16x256xf32>
    %145 = vector.extract_strided_slice %2 {offsets = [1, 0], sizes = [1, 256], strides = [1, 1]} : vector<2x256xf32> to vector<1x256xf32>
    %146 = vector.broadcast %145 : vector<1x256xf32> to vector<16x256xf32>
    %147 = arith.mulf %144, %146 : vector<16x256xf32>
    %148 = arith.truncf %147 : vector<16x256xf32> to vector<16x256xbf16>
    %c80_99 = arith.constant 80 : index
    %c0_100 = arith.constant 0 : index
    %149 = vector.load %arg8[%c80_99, %c0_100] : memref<144x512xbf16, #tpu.memory_space<vmem>>, vector<16x256xbf16>
    tpu.vector_store %arg8[%c80_99, %c0_100], %148 {strides = array<i32>} : memref<144x512xbf16, #tpu.memory_space<vmem>>, vector<16x256xbf16>,
    %c0_101 = arith.constant 0 : index
    %c32_102 = arith.constant 32 : index
    %150 = vector.load %arg6[%c0_101, %c32_102] : memref<16x290xf32, #tpu.memory_space<vmem>>, vector<16x256xf32>
    %151 = vector.extract_strided_slice %2 {offsets = [0, 0], sizes = [1, 256], strides = [1, 1]} : vector<2x256xf32> to vector<1x256xf32>
    %152 = vector.broadcast %151 : vector<1x256xf32> to vector<16x256xf32>
    %153 = arith.mulf %150, %152 : vector<16x256xf32>
    %154 = arith.truncf %153 : vector<16x256xf32> to vector<16x256xbf16>
    %c96_103 = arith.constant 96 : index
    %c0_104 = arith.constant 0 : index
    %155 = vector.load %arg8[%c96_103, %c0_104] : memref<144x512xbf16, #tpu.memory_space<vmem>>, vector<16x256xbf16>
    tpu.vector_store %arg8[%c96_103, %c0_104], %154 {strides = array<i32>} : memref<144x512xbf16, #tpu.memory_space<vmem>>, vector<16x256xbf16>,
    %c0_105 = arith.constant 0 : index
    %c33_106 = arith.constant 33 : index
    %156 = vector.load %arg6[%c0_105, %c33_106] : memref<16x290xf32, #tpu.memory_space<vmem>>, vector<16x256xf32>
    %157 = arith.truncf %156 : vector<16x256xf32> to vector<16x256xbf16>
    %c112_107 = arith.constant 112 : index
    %c0_108 = arith.constant 0 : index
    %158 = vector.load %arg8[%c112_107, %c0_108] : memref<144x512xbf16, #tpu.memory_space<vmem>>, vector<16x256xbf16>
    tpu.vector_store %arg8[%c112_107, %c0_108], %157 {strides = array<i32>} : memref<144x512xbf16, #tpu.memory_space<vmem>>, vector<16x256xbf16>,
    %c0_109 = arith.constant 0 : index
    %c34_110 = arith.constant 34 : index
    %159 = vector.load %arg6[%c0_109, %c34_110] : memref<16x290xf32, #tpu.memory_space<vmem>>, vector<16x256xf32>
    %160 = vector.extract_strided_slice %2 {offsets = [1, 0], sizes = [1, 256], strides = [1, 1]} : vector<2x256xf32> to vector<1x256xf32>
    %161 = vector.broadcast %160 : vector<1x256xf32> to vector<16x256xf32>
    %162 = arith.mulf %159, %161 : vector<16x256xf32>
    %163 = arith.truncf %162 : vector<16x256xf32> to vector<16x256xbf16>
    %c128_111 = arith.constant 128 : index
    %c0_112 = arith.constant 0 : index
    %164 = vector.load %arg8[%c128_111, %c0_112] : memref<144x512xbf16, #tpu.memory_space<vmem>>, vector<16x256xbf16>
    tpu.vector_store %arg8[%c128_111, %c0_112], %163 {strides = array<i32>} : memref<144x512xbf16, #tpu.memory_space<vmem>>, vector<16x256xbf16>,
    %165 = vector.extract_strided_slice %99 {offsets = [0, 256], sizes = [16, 256], strides = [1, 1]} : vector<16x512xf32> to vector<16x256xf32>
    %cst_113 = arith.constant dense<0.000000e+00> : vector<16xf32>
    %166 = vector.multi_reduction <add>, %165, %cst_113 [1] : vector<16x256xf32> to vector<16xf32>
    %167 = vector.shape_cast %166 : vector<16xf32> to vector<16x1xf32>
    %cst_114 = arith.constant 3.906250e-03 : f32
    %168 = vector.broadcast %cst_114 : f32 to vector<16x1xf32>
    %169 = arith.mulf %167, %168 : vector<16x1xf32>
    %170 = vector.broadcast %169 : vector<16x1xf32> to vector<16x256xf32>
    %171 = arith.subf %165, %170 : vector<16x256xf32>
    %172 = arith.mulf %171, %171 : vector<16x256xf32>
    %cst_115 = arith.constant dense<0.000000e+00> : vector<16xf32>
    %173 = vector.multi_reduction <add>, %172, %cst_115 [1] : vector<16x256xf32> to vector<16xf32>
    %174 = vector.shape_cast %173 : vector<16xf32> to vector<16x1xf32>
    %cst_116 = arith.constant 3.906250e-03 : f32
    %175 = vector.broadcast %cst_116 : f32 to vector<16x1xf32>
    %176 = arith.mulf %174, %175 : vector<16x1xf32>
    %cst_117 = arith.constant 9.99999974E-6 : f32
    %177 = vector.broadcast %cst_117 : f32 to vector<16x1xf32>
    %178 = arith.addf %176, %177 : vector<16x1xf32>
    %179 = math.rsqrt %178 : vector<16x1xf32>
    %180 = vector.broadcast %179 : vector<16x1xf32> to vector<16x256xf32>
    %181 = arith.mulf %171, %180 : vector<16x256xf32>
    %cst_118 = arith.constant 2.000000e-01 : f32
    %182 = vector.broadcast %cst_118 : f32 to vector<16x256xf32>
    %183 = arith.mulf %182, %181 : vector<16x256xf32>
    %184 = arith.maximumf %181, %183 : vector<16x256xf32>
    %c0_119 = arith.constant 0 : index
    %c17_120 = arith.constant 17 : index
    %185 = vector.load %arg6[%c0_119, %c17_120] : memref<16x290xf32, #tpu.memory_space<vmem>>, vector<16x256xf32>
    tpu.vector_store %arg6[%c0_119, %c17_120], %184 {strides = array<i32>} : memref<16x290xf32, #tpu.memory_space<vmem>>, vector<16x256xf32>,
    %c0_121 = arith.constant 0 : index
    %c0_122 = arith.constant 0 : index
    %186 = vector.load %arg6[%c0_121, %c0_122] : memref<16x290xf32, #tpu.memory_space<vmem>>, vector<16x256xf32>
    %187 = vector.extract_strided_slice %2 {offsets = [0, 0], sizes = [1, 256], strides = [1, 1]} : vector<2x256xf32> to vector<1x256xf32>
    %188 = vector.broadcast %187 : vector<1x256xf32> to vector<16x256xf32>
    %189 = arith.mulf %186, %188 : vector<16x256xf32>
    %190 = arith.truncf %189 : vector<16x256xf32> to vector<16x256xbf16>
    %c0_123 = arith.constant 0 : index
    %c256_124 = arith.constant 256 : index
    %191 = vector.load %arg8[%c0_123, %c256_124] : memref<144x512xbf16, #tpu.memory_space<vmem>>, vector<16x256xbf16>
    tpu.vector_store %arg8[%c0_123, %c256_124], %190 {strides = array<i32>} : memref<144x512xbf16, #tpu.memory_space<vmem>>, vector<16x256xbf16>,
    %c0_125 = arith.constant 0 : index
    %c1_126 = arith.constant 1 : index
    %192 = vector.load %arg6[%c0_125, %c1_126] : memref<16x290xf32, #tpu.memory_space<vmem>>, vector<16x256xf32>
    %193 = arith.truncf %192 : vector<16x256xf32> to vector<16x256xbf16>
    %c16_127 = arith.constant 16 : index
    %c256_128 = arith.constant 256 : index
    %194 = vector.load %arg8[%c16_127, %c256_128] : memref<144x512xbf16, #tpu.memory_space<vmem>>, vector<16x256xbf16>
    tpu.vector_store %arg8[%c16_127, %c256_128], %193 {strides = array<i32>} : memref<144x512xbf16, #tpu.memory_space<vmem>>, vector<16x256xbf16>,
    %c0_129 = arith.constant 0 : index
    %c2_130 = arith.constant 2 : index
    %195 = vector.load %arg6[%c0_129, %c2_130] : memref<16x290xf32, #tpu.memory_space<vmem>>, vector<16x256xf32>
    %196 = vector.extract_strided_slice %2 {offsets = [1, 0], sizes = [1, 256], strides = [1, 1]} : vector<2x256xf32> to vector<1x256xf32>
    %197 = vector.broadcast %196 : vector<1x256xf32> to vector<16x256xf32>
    %198 = arith.mulf %195, %197 : vector<16x256xf32>
    %199 = arith.truncf %198 : vector<16x256xf32> to vector<16x256xbf16>
    %c32_131 = arith.constant 32 : index
    %c256_132 = arith.constant 256 : index
    %200 = vector.load %arg8[%c32_131, %c256_132] : memref<144x512xbf16, #tpu.memory_space<vmem>>, vector<16x256xbf16>
    tpu.vector_store %arg8[%c32_131, %c256_132], %199 {strides = array<i32>} : memref<144x512xbf16, #tpu.memory_space<vmem>>, vector<16x256xbf16>,
    %c0_133 = arith.constant 0 : index
    %c16_134 = arith.constant 16 : index
    %201 = vector.load %arg6[%c0_133, %c16_134] : memref<16x290xf32, #tpu.memory_space<vmem>>, vector<16x256xf32>
    %202 = vector.extract_strided_slice %2 {offsets = [0, 0], sizes = [1, 256], strides = [1, 1]} : vector<2x256xf32> to vector<1x256xf32>
    %203 = vector.broadcast %202 : vector<1x256xf32> to vector<16x256xf32>
    %204 = arith.mulf %201, %203 : vector<16x256xf32>
    %205 = arith.truncf %204 : vector<16x256xf32> to vector<16x256xbf16>
    %c48_135 = arith.constant 48 : index
    %c256_136 = arith.constant 256 : index
    %206 = vector.load %arg8[%c48_135, %c256_136] : memref<144x512xbf16, #tpu.memory_space<vmem>>, vector<16x256xbf16>
    tpu.vector_store %arg8[%c48_135, %c256_136], %205 {strides = array<i32>} : memref<144x512xbf16, #tpu.memory_space<vmem>>, vector<16x256xbf16>,
    %207 = arith.truncf %184 : vector<16x256xf32> to vector<16x256xbf16>
    %c64_137 = arith.constant 64 : index
    %c256_138 = arith.constant 256 : index
    %208 = vector.load %arg8[%c64_137, %c256_138] : memref<144x512xbf16, #tpu.memory_space<vmem>>, vector<16x256xbf16>
    tpu.vector_store %arg8[%c64_137, %c256_138], %207 {strides = array<i32>} : memref<144x512xbf16, #tpu.memory_space<vmem>>, vector<16x256xbf16>,
    %c0_139 = arith.constant 0 : index
    %c18_140 = arith.constant 18 : index
    %209 = vector.load %arg6[%c0_139, %c18_140] : memref<16x290xf32, #tpu.memory_space<vmem>>, vector<16x256xf32>
    %210 = vector.extract_strided_slice %2 {offsets = [1, 0], sizes = [1, 256], strides = [1, 1]} : vector<2x256xf32> to vector<1x256xf32>
    %211 = vector.broadcast %210 : vector<1x256xf32> to vector<16x256xf32>
    %212 = arith.mulf %209, %211 : vector<16x256xf32>
    %213 = arith.truncf %212 : vector<16x256xf32> to vector<16x256xbf16>
    %c80_141 = arith.constant 80 : index
    %c256_142 = arith.constant 256 : index
    %214 = vector.load %arg8[%c80_141, %c256_142] : memref<144x512xbf16, #tpu.memory_space<vmem>>, vector<16x256xbf16>
    tpu.vector_store %arg8[%c80_141, %c256_142], %213 {strides = array<i32>} : memref<144x512xbf16, #tpu.memory_space<vmem>>, vector<16x256xbf16>,
    %c0_143 = arith.constant 0 : index
    %c32_144 = arith.constant 32 : index
    %215 = vector.load %arg6[%c0_143, %c32_144] : memref<16x290xf32, #tpu.memory_space<vmem>>, vector<16x256xf32>
    %216 = vector.extract_strided_slice %2 {offsets = [0, 0], sizes = [1, 256], strides = [1, 1]} : vector<2x256xf32> to vector<1x256xf32>
    %217 = vector.broadcast %216 : vector<1x256xf32> to vector<16x256xf32>
    %218 = arith.mulf %215, %217 : vector<16x256xf32>
    %219 = arith.truncf %218 : vector<16x256xf32> to vector<16x256xbf16>
    %c96_145 = arith.constant 96 : index
    %c256_146 = arith.constant 256 : index
    %220 = vector.load %arg8[%c96_145, %c256_146] : memref<144x512xbf16, #tpu.memory_space<vmem>>, vector<16x256xbf16>
    tpu.vector_store %arg8[%c96_145, %c256_146], %219 {strides = array<i32>} : memref<144x512xbf16, #tpu.memory_space<vmem>>, vector<16x256xbf16>,
    %c0_147 = arith.constant 0 : index
    %c33_148 = arith.constant 33 : index
    %221 = vector.load %arg6[%c0_147, %c33_148] : memref<16x290xf32, #tpu.memory_space<vmem>>, vector<16x256xf32>
    %222 = arith.truncf %221 : vector<16x256xf32> to vector<16x256xbf16>
    %c112_149 = arith.constant 112 : index
    %c256_150 = arith.constant 256 : index
    %223 = vector.load %arg8[%c112_149, %c256_150] : memref<144x512xbf16, #tpu.memory_space<vmem>>, vector<16x256xbf16>
    tpu.vector_store %arg8[%c112_149, %c256_150], %222 {strides = array<i32>} : memref<144x512xbf16, #tpu.memory_space<vmem>>, vector<16x256xbf16>,
    %c0_151 = arith.constant 0 : index
    %c34_152 = arith.constant 34 : index
    %224 = vector.load %arg6[%c0_151, %c34_152] : memref<16x290xf32, #tpu.memory_space<vmem>>, vector<16x256xf32>
    %225 = vector.extract_strided_slice %2 {offsets = [1, 0], sizes = [1, 256], strides = [1, 1]} : vector<2x256xf32> to vector<1x256xf32>
    %226 = vector.broadcast %225 : vector<1x256xf32> to vector<16x256xf32>
    %227 = arith.mulf %224, %226 : vector<16x256xf32>
    %228 = arith.truncf %227 : vector<16x256xf32> to vector<16x256xbf16>
    %c128_153 = arith.constant 128 : index
    %c256_154 = arith.constant 256 : index
    %229 = vector.load %arg8[%c128_153, %c256_154] : memref<144x512xbf16, #tpu.memory_space<vmem>>, vector<16x256xbf16>
    tpu.vector_store %arg8[%c128_153, %c256_154], %228 {strides = array<i32>} : memref<144x512xbf16, #tpu.memory_space<vmem>>, vector<16x256xbf16>,
    %c0_155 = arith.constant 0 : index
    %c0_156 = arith.constant 0 : index
    %230 = vector.load %arg3[%c0_155, %c0_156] : memref<8x144xbf16, #tpu.memory_space<vmem>>, vector<8x144xbf16>
    %c0_157 = arith.constant 0 : index
    %c0_158 = arith.constant 0 : index
    %231 = vector.load %arg8[%c0_157, %c0_158] : memref<144x512xbf16, #tpu.memory_space<vmem>>, vector<144x512xbf16>
    %cst_159 = arith.constant dense<0.000000e+00> : vector<8x512xf32>
    %232 = tpu.matmul %230, %231, %cst_159 {dimension_numbers = #tpu.dot_dimension_numbers<[1], [0], [0], [1], [0, 0, 1, 1], [], []>} : vector<8x144xbf16>, vector<144x512xbf16>, vector<8x512xf32> -> vector<8x512xf32>
    %233 = vector.extract_strided_slice %232 {offsets = [0, 0], sizes = [8, 256], strides = [1, 1]} : vector<8x512xf32> to vector<8x256xf32>
    %cst_160 = arith.constant dense<0.000000e+00> : vector<8xf32>
    %234 = vector.multi_reduction <add>, %233, %cst_160 [1] : vector<8x256xf32> to vector<8xf32>
    %235 = vector.shape_cast %234 : vector<8xf32> to vector<8x1xf32>
    %cst_161 = arith.constant 3.906250e-03 : f32
    %236 = vector.broadcast %cst_161 : f32 to vector<8x1xf32>
    %237 = arith.mulf %235, %236 : vector<8x1xf32>
    %238 = vector.broadcast %237 : vector<8x1xf32> to vector<8x256xf32>
    %239 = arith.subf %233, %238 : vector<8x256xf32>
    %240 = arith.mulf %239, %239 : vector<8x256xf32>
    %cst_162 = arith.constant dense<0.000000e+00> : vector<8xf32>
    %241 = vector.multi_reduction <add>, %240, %cst_162 [1] : vector<8x256xf32> to vector<8xf32>
    %242 = vector.shape_cast %241 : vector<8xf32> to vector<8x1xf32>
    %cst_163 = arith.constant 3.906250e-03 : f32
    %243 = vector.broadcast %cst_163 : f32 to vector<8x1xf32>
    %244 = arith.mulf %242, %243 : vector<8x1xf32>
    %cst_164 = arith.constant 9.99999974E-6 : f32
    %245 = vector.broadcast %cst_164 : f32 to vector<8x1xf32>
    %246 = arith.addf %244, %245 : vector<8x1xf32>
    %247 = math.rsqrt %246 : vector<8x1xf32>
    %248 = vector.broadcast %247 : vector<8x1xf32> to vector<8x256xf32>
    %249 = arith.mulf %239, %248 : vector<8x256xf32>
    %cst_165 = arith.constant 2.000000e-01 : f32
    %250 = vector.broadcast %cst_165 : f32 to vector<8x256xf32>
    %251 = arith.mulf %250, %249 : vector<8x256xf32>
    %252 = arith.maximumf %249, %251 : vector<8x256xf32>
    %c0_166 = arith.constant 0 : index
    %c0_167 = arith.constant 0 : index
    %c0_168 = arith.constant 0 : index
    %253 = vector.load %arg5[%c0_166, %c0_167, %c0_168] : memref<2x8x256xf32, #tpu.memory_space<vmem>>, vector<1x8x256xf32>
    %254 = vector.shape_cast %253 : vector<1x8x256xf32> to vector<8x256xf32>
    %255 = vector.shape_cast %252 : vector<8x256xf32> to vector<1x8x256xf32>
    tpu.vector_store %arg5[%c0_166, %c0_167, %c0_168], %255 {strides = array<i32>} : memref<2x8x256xf32, #tpu.memory_space<vmem>>, vector<1x8x256xf32>,
    %256 = vector.extract_strided_slice %232 {offsets = [0, 256], sizes = [8, 256], strides = [1, 1]} : vector<8x512xf32> to vector<8x256xf32>
    %cst_169 = arith.constant dense<0.000000e+00> : vector<8xf32>
    %257 = vector.multi_reduction <add>, %256, %cst_169 [1] : vector<8x256xf32> to vector<8xf32>
    %258 = vector.shape_cast %257 : vector<8xf32> to vector<8x1xf32>
    %cst_170 = arith.constant 3.906250e-03 : f32
    %259 = vector.broadcast %cst_170 : f32 to vector<8x1xf32>
    %260 = arith.mulf %258, %259 : vector<8x1xf32>
    %261 = vector.broadcast %260 : vector<8x1xf32> to vector<8x256xf32>
    %262 = arith.subf %256, %261 : vector<8x256xf32>
    %263 = arith.mulf %262, %262 : vector<8x256xf32>
    %cst_171 = arith.constant dense<0.000000e+00> : vector<8xf32>
    %264 = vector.multi_reduction <add>, %263, %cst_171 [1] : vector<8x256xf32> to vector<8xf32>
    %265 = vector.shape_cast %264 : vector<8xf32> to vector<8x1xf32>
    %cst_172 = arith.constant 3.906250e-03 : f32
    %266 = vector.broadcast %cst_172 : f32 to vector<8x1xf32>
    %267 = arith.mulf %265, %266 : vector<8x1xf32>
    %cst_173 = arith.constant 9.99999974E-6 : f32
    %268 = vector.broadcast %cst_173 : f32 to vector<8x1xf32>
    %269 = arith.addf %267, %268 : vector<8x1xf32>
    %270 = math.rsqrt %269 : vector<8x1xf32>
    %271 = vector.broadcast %270 : vector<8x1xf32> to vector<8x256xf32>
    %272 = arith.mulf %262, %271 : vector<8x256xf32>
    %cst_174 = arith.constant 2.000000e-01 : f32
    %273 = vector.broadcast %cst_174 : f32 to vector<8x256xf32>
    %274 = arith.mulf %273, %272 : vector<8x256xf32>
    %275 = arith.maximumf %272, %274 : vector<8x256xf32>
    %c1_175 = arith.constant 1 : index
    %c0_176 = arith.constant 0 : index
    %c0_177 = arith.constant 0 : index
    %276 = vector.load %arg5[%c1_175, %c0_176, %c0_177] : memref<2x8x256xf32, #tpu.memory_space<vmem>>, vector<1x8x256xf32>
    %277 = vector.shape_cast %276 : vector<1x8x256xf32> to vector<8x256xf32>
    %278 = vector.shape_cast %275 : vector<8x256xf32> to vector<1x8x256xf32>
    tpu.vector_store %arg5[%c1_175, %c0_176, %c0_177], %278 {strides = array<i32>} : memref<2x8x256xf32, #tpu.memory_space<vmem>>, vector<1x8x256xf32>,
    return
  }
  func.func @transform_0(%arg0: i32) -> (i32, i32, i32) {
    %c0_i32 = arith.constant 0 : i32
    %c0_i32_0 = arith.constant 0 : i32
    %c0_i32_1 = arith.constant 0 : i32
    return %arg0, %c0_i32, %c0_i32_0 : i32, i32, i32
  }
  func.func @transform_1(%arg0: i32) -> (i32, i32) {
    %c0_i32 = arith.constant 0 : i32
    %c0_i32_0 = arith.constant 0 : i32
    %c0_i32_1 = arith.constant 0 : i32
    return %c0_i32, %c0_i32_0 : i32, i32
  }
  func.func @transform_2(%arg0: i32) -> (i32, i32) {
    %c0_i32 = arith.constant 0 : i32
    %c0_i32_0 = arith.constant 0 : i32
    %c0_i32_1 = arith.constant 0 : i32
    return %c0_i32, %c0_i32_0 : i32, i32
  }
  func.func @transform_3(%arg0: i32) -> (i32, i32) {
    %c0_i32 = arith.constant 0 : i32
    %c0_i32_0 = arith.constant 0 : i32
    %c0_i32_1 = arith.constant 0 : i32
    return %c0_i32, %c0_i32_0 : i32, i32
  }
  func.func @transform_4(%arg0: i32) -> (i32, i32, i32) {
    %c0_i32 = arith.constant 0 : i32
    %c0_i32_0 = arith.constant 0 : i32
    %c0_i32_1 = arith.constant 0 : i32
    return %arg0, %c0_i32, %c0_i32_0 : i32, i32, i32
  }
}

</mosaic_0001>

<bundles_post_ra>
// kernel: tpu_custom_call.1
= control target key start
LH: loop header
LB: loop body
LE: loop exit
PB: predicated region body
PF: predicated region fallthrough
CT: control target
= control target key end

     0   :  { %9 = vsyncpa [#allocation6], 0  ;;  %s3757_s0 = inlined_call_operand.hbm [shape: f32[2,16,256], index: 0, kind: input, shape index: {}]   ;;  %s3758_s1 = inlined_call_operand.hbm [shape: bf16[16,144], index: 1, kind: input, shape index: {}]   ;;  %s3759_s2 = inlined_call_operand.hbm [shape: bf16[8,144], index: 2, kind: input, shape index: {}]   ;;  %s3760_s3 = inlined_call_operand.hbm [shape: f32[2,256], index: 3, kind: input, shape index: {}]   ;;  %s3761_s4 = inlined_call_operand.hbm [shape: f32[2,8,256], index: 4, kind: output, shape index: {}]  }
   0x1   :  { %10 = vsyncpa [#allocation9], 0 }
   0x2   :  { %11 = vsyncpa [#allocation12], 0  ;;  %s30_s17 = sshll.u32 %s3758_s1, 4  ;;  %s31_s17 = int_to_ptr.hbm [resolvable:$true] %s30_s17 }
   0x3   :  { %12 = vsyncpa [#allocation7], 0  ;;  %s2818_s18 = smov [#allocation8]   ;;  %s17_s22 = sshll.u32 %s3757_s0, 4  ;;  %s18_s22 = int_to_ptr.hbm [resolvable:$true] %s17_s22 }
   0x4   :  { %s32_s19 = sshll.u32 %s2818_s18, 4  ;;  %s2819_s23 = smov 128   ;;  %s33_s19 = int_to_ptr.vmem [resolvable:$true] %s32_s19 }
   0x5   :  { %s2820_s24 = smov 8   ;;  %s2821_s25 = smov [#allocation5]  }
   0x6   :  { %38 = dma.hbm_to_vmem [thread:$0]  %s31_s17, 256, %s33_s19, [#allocation9], %s2819_s23, %s2819_s23, %s2820_s24  }
   0x7   :  { %s19_s26 = sshll.u32 %s2821_s25, 4  ;;  %s2822_s27 = smov 256   ;;  %s20_s26 = int_to_ptr.vmem [resolvable:$true] %s19_s26 }
   0x8   :  { %s2823_s28 = smov 16   ;;  %s44_s30 = sshll.u32 %s3759_s2, 4  ;;  %s45_s30 = int_to_ptr.hbm [resolvable:$true] %s44_s30 }
   0x9   :  { %25 = dma.hbm_to_vmem [thread:$0]  %s18_s22, 1024, %s20_s26, [#allocation6], %s2822_s27, %s2822_s27, %s2823_s28  }
   0xa   :  { %s2824_s5 = smov [#allocation10]   ;;  %s55_s8 = sshll.u32 %s3760_s3, 4  ;;  %s56_s8 = int_to_ptr.hbm [resolvable:$true] %s55_s8 }
   0xb   :  { %s46_s0 = sshll.u32 %s2824_s5, 4  ;;  %s2825_s9 = smov [#allocation11]   ;;  %s47_s0 = int_to_ptr.vmem [resolvable:$true] %s46_s0 }
   0xc   :  { %49 = dma.hbm_to_vmem [thread:$0]  %s45_s30, 128, %s47_s0, [#allocation9]  }
   0xd   :  { %s57_s10 = sshll.u32 %s2825_s9, 4  ;;  %s58_s10 = int_to_ptr.vmem [resolvable:$true] %s57_s10 }
   0xe   :  { %60 = dma.hbm_to_vmem [thread:$0]  %s56_s8, 64, %s58_s10, [#allocation12]  }
   0xf   :  { %2810 = dma.done.wait [#allocation6], 1024  }
  0x10   :  { %2811 = vsyncadd [#allocation6], 4294966272 }
  0x11   :  { %2812 = dma.done.wait [#allocation9], 384  }
  0x12   :  { %2813 = vsyncadd [#allocation9], 4294966912 }
  0x13   :  { %2814 = dma.done.wait [#allocation12], 64  }
  0x14   :  { %2815 = vsyncadd [#allocation12], 4294967232  ;;  %v88_v0 = vld [vmem:[#allocation5 + $0x10] sm:$0xff]  ;;  %v89_v1 = vld [vmem:[#allocation5 + $0x18] sm:$0xff]  ;;  %s2826_s2 = smov 17   ;;  %s2827_s3 = smov 32  }
  0x15   :  { %v86_v2 = vld [vmem:[#allocation5] sm:$0xff]  ;;  %98 = vrot.lane.b32.xlu1 %v88_v0, %s2826_s2  ;;  %v284_v3 = vpack.c.bf16 %v89_v1, %v88_v0  ;;  %v87_v4 = vld [vmem:[#allocation5 + $0x8] sm:$0xff]  ;;  %v85_v5 = vld [vmem:[#allocation11] sm:$0xf]  ;;  %s2828_s11 = smov 18   ;;  %s2829_s12 = smov 34  }
  0x16   :  { %94 = vrot.lane.b32.xlu0 %v86_v2, %s2826_s2  ;;  %v472_v6 = vld [vmem:[#allocation5 + $0x20] sm:$0xff]  ;;  %v283_v7 = vpack.c.bf16 %v87_v4, %v86_v2  ;;  %v123_v8 = vperm.slane %v85_v5, 0  ;;  %v474_v9 = vld [vmem:[#allocation5 + $0x30] sm:$0xff]  ;;  %v473_v10 = vld [vmem:[#allocation5 + $0x28] sm:$0xff]  ;;  %v124_v15 = vperm.slane %v85_v5, 2  ;;  %v180_v16 = vperm.slane %v85_v5, 3 }
  0x17   :  { %v475_v11 = vld [vmem:[#allocation5 + $0x38] sm:$0xff]  ;;  %286 = vst [vmem:[#allocation3 + $0x90] sm:$0xff] %v284_v3  ;;  %v628_v12 = vpack.c.bf16 %v473_v10, %v472_v6  ;;  %v179_v17 = vperm.slane %v85_v5, 1  ;;  %s2830_s13 = smov 2   ;;  %v2831_v21 = vmov 0.0   ;;  %vm80_vm0 = vcmask 277504  }
  0x18   :  { %v629_v13 = vpack.c.bf16 %v475_v11, %v474_v9  ;;  %285 = vst [vmem:[#allocation3 + $0x80] sm:$0xff] %v283_v7  ;;  %v2882_v14 = vperm.slane %v123_v8, 0  ;;  %v2887_v18 = vperm.slane %v124_v15, 0  ;;  %v184_v19 = vperm.slane %v180_v16, 1  ;;  %s2832_s14 = smov 95   ;;  %s2833_s15 = smov 127  }
  0x19   :  { %630 = vst [vmem:[#allocation3 + $0x88] sm:$0xff] %v628_v12  ;;  %v183_v20 = vperm.slane %v179_v17, 1  ;;  %vm111_vm1 = vcmask 1047688   ;;  %vm102_vm2 = vcmask 138240   ;;  %s2834_s16 = smov 96   ;;  %vm3762_vm3 = vcmask 130048  }
  0x1a   :  { %343 = vrot.lane.b32.xlu2 %v2882_v14, %s2827_s3  ;;  %631 = vst [vmem:[#allocation3 + $0x98] sm:$0xff] %v629_v13  ;;  %vm191_vm4 = vcmask 15360   ;;  %s2835_s17 = smov 110   ;;  %s2836_s18 = smov 94   ;;  %vm347_vm5 = vcmask 261120   ;;  %vm297_vm6 = vcmask 146432  }
  0x1b   :  { %82 = vst [vmem:[#allocation2 + $0x18] sm:$0xff] %v2831_v21  ;;  %s2837_s19 = smov 112   ;;  %s2838_s20 = smov 126   ;;  %vm163_vm7 = vcmask 1043456   ;;  %vm414_vm8 = vcmask 777216   ;;  %vm165_vm9 = vcmask 1039360  }
  0x1c   :  { %78 = vst [vmem:[#allocation2] sm:$0xff] %v2831_v21  ;;  %vm329_vm10 = vcmask 900096   ;;  %vm463_vm11 = vcmask 769024   ;;  %vm223_vm12 = vcmask 1031168   ;;  %vm379_vm13 = vcmask 785408   ;;  %s2839_s21 = smov [#allocation13]  }
  0x1d   :  { %100 = vrot.lane.b32.xlu1 %v89_v1, %s2826_s2  ;;  %84 = vst.msk [vmem:[#allocation2 + $0x28] sm:$0xff] %vm80_vm0, %v2831_v21  ;;  %vm275_vm14 = vcmask 916480   ;;  %s2261_s22 = sshll.u32 %s2839_s21, 4  ;;  %s2263_s25 = sshll.u32 %s3761_s4, 4  ;;  %s2262_s22 = int_to_ptr.vmem [resolvable:$true] %s2261_s22  ;;  %s2264_s25 = int_to_ptr.hbm [resolvable:$true] %s2263_s25 }
  0x1e   :  { %96 = vrot.lane.b32.xlu0 %v87_v4, %s2826_s2  ;;  %81 = vst.msk [vmem:[#allocation2 + $0x10] sm:$0xff] %vm80_vm0, %v2831_v21 }
  0x22   :  { %345 = vrot.lane.b32.xlu2 %v2887_v18, %s2827_s3 }
  0x25   :  { %295 = vrot.lane.b32.xlu1 %v184_v19, %s2828_s11 }
  0x26   :  { %293 = vrot.lane.b32.xlu0 %v183_v20, %s2828_s11 }
  0x2a   :  { %480 = vrot.lane.b32.xlu2 %v472_v6, %s2826_s2 }
  0x2d   :  { %484 = vrot.lane.b32.xlu1 %v474_v9, %s2826_s2 }
  0x2e   :  { %482 = vrot.lane.b32.xlu0 %v473_v10, %s2826_s2 }
  0x32   :  { %486 = vrot.lane.b32.xlu2 %v475_v11, %s2826_s2 }
  0x35   :  { %430 = vrot.lane.b32.xlu1 %v184_v19, %s2829_s12 }
  0x36   :  { %428 = vrot.lane.b32.xlu0 %v183_v20, %s2829_s12 }
  0x3a   :  { %239 = vrot.lane.b32.xlu2 %v2882_v14, %s2823_s28 }
  0x3d   :  { %187 = vrot.lane.b32.xlu1 %v183_v20, %s2830_s13 }
  0x3e   :  { %241 = vrot.lane.b32.xlu0 %v2887_v18, %s2823_s28 }
  0x42   :  { %189 = vrot.lane.b32.xlu2 %v184_v19, %s2830_s13 }
  0x74   :  { %v2900_v22 = vpop.permute.xlu2 %343 }
  0x7c   :  { %v2902_v23 = vpop.permute.xlu2 %345 }
  0x84   :  { %v481_v26 = vpop.permute.xlu2 %480 }
  0x87   :  { %v99_v24 = vpop.permute.xlu1 %98 }
  0x88   :  { %v95_v25 = vpop.permute.xlu0 %94  ;;  %115 = vst.msk [vmem:[#allocation2 + $0x18] sm:$0xff] %vm111_vm1, %v99_v24 }
  0x89   :  { %112 = vst.msk [vmem:[#allocation2] sm:$0xff] %vm111_vm1, %v95_v25 }
  0x8c   :  { %v2927_v39 = vpop.permute.xlu2 %486 }
  0x8f   :  { %v2906_v27 = vld [vmem:[#allocation2 + $0x18] sm:$0xff]  ;;  %v101_v28 = vpop.permute.xlu1 %100 }
  0x90   :  { %v97_v29 = vpop.permute.xlu0 %96  ;;  %v131_v30 = vmul.f32 %v2882_v14, %v2906_v27  ;;  %v2910_v31 = vld [vmem:[#allocation2] sm:$0xff]  ;;  %v2913_v32 = vsel %vm102_vm2, %v99_v24, %v101_v28  ;;  %117 = vst.msk [vmem:[#allocation2 + $0x28] sm:$0xff] %vm102_vm2, %v101_v28 }
  0x91   :  { %v2917_v33 = vsel %vm102_vm2, %v95_v25, %v97_v29  ;;  %v129_v34 = vmul.f32 %v2882_v14, %v2910_v31  ;;  %v132_v35 = vmul.f32 %v2887_v18, %v2913_v32  ;;  %114 = vst.msk [vmem:[#allocation2 + $0x10] sm:$0xff] %vm102_vm2, %v97_v29  ;;  %v395_v48 = vpack.c.bf16 %v2913_v32, %v2906_v27 }
  0x92   :  { %v130_v36 = vmul.f32 %v2887_v18, %v2917_v33  ;;  %496 = vst.msk [vmem:[#allocation2] sm:$0xff] %vm111_vm1, %v481_v26  ;;  %v393_v58 = vpack.c.bf16 %v2917_v33, %v2910_v31 }
  0x93   :  { %v134_v38 = vpack.c.bf16 %v132_v35, %v131_v30 }
  0x94   :  { %v133_v37 = vpack.c.bf16 %v130_v36, %v129_v34  ;;  %v2962_v53 = vpop.permute.xlu2 %239 }
  0x95   :  { %136 = vst [vmem:[#allocation3 + $0x10] sm:$0xff] %v134_v38  ;;  %v2989_v3 = vmul.f32 %v2962_v53, %v2906_v27  ;;  %v2993_v4 = vmul.f32 %v2962_v53, %v2910_v31 }
  0x96   :  { %135 = vst [vmem:[#allocation3] sm:$0xff] %v133_v37 }
  0x97   :  { %v2929_v40 = vpop.permute.xlu1 %295  ;;  %v2933_v42 = vld [vmem:[#allocation2 + $0x28] sm:$0xff] }
  0x98   :  { %v2931_v41 = vpop.permute.xlu0 %293  ;;  %v396_v43 = vpack.c.bf16 %v2933_v42, %v2933_v42  ;;  %v2937_v44 = vld [vmem:[#allocation2 + $0x10] sm:$0xff]  ;;  %501 = vst.msk [vmem:[#allocation2 + $0x28] sm:$0xff] %vm102_vm2, %v2927_v39  ;;  %v357_v54 = vmul.f32 %v2933_v42, %v2902_v23  ;;  %v307_v21 = vmul.f32 %v2933_v42, %v2929_v40 }
  0x99   :  { %v394_v45 = vpack.c.bf16 %v2937_v44, %v2937_v44  ;;  %v2949_v49 = vld [vmem:[#allocation2] sm:$0xff]  ;;  %v304_v60 = vmul.f32 %v2937_v44, %v2929_v40  ;;  %v354_v62 = vmul.f32 %v2937_v44, %v2902_v23 }
  0x9a   :  { %407 = vrot.lane.b32.xlu0 %v396_v43, %s2832_s14  ;;  %157 = vrot.lane.b32.xlu2 %v396_v43, %s2833_s15  ;;  %v506_v50 = vmul.f32 %v2949_v49, %v2882_v14  ;;  %v361_v59 = vpack.c.bf16 %v357_v54, %v357_v54  ;;  %v311_v34 = vpack.c.bf16 %v307_v21, %v307_v21 }
  0x9b   :  { %403 = vrot.lane.b32.xlu1 %v394_v45, %s2832_s14  ;;  %v309_v2 = vpack.c.bf16 %v304_v60, %v304_v60  ;;  %v359_v6 = vpack.c.bf16 %v354_v62, %v354_v62 }
  0x9c   :  { %v2981_v63 = vpop.permute.xlu2 %189 }
  0x9d   :  { %v201_v38 = vmul.f32 %v2933_v42, %v2981_v63  ;;  %v198_v43 = vmul.f32 %v2937_v44, %v2981_v63 }
  0x9f   :  { %v485_v46 = vpop.permute.xlu1 %484 }
  0xa0   :  { %v483_v47 = vpop.permute.xlu0 %482  ;;  %499 = vst.msk [vmem:[#allocation2 + $0x18] sm:$0xff] %vm111_vm1, %v485_v46  ;;  %v3043_v24 = vsel %vm102_vm2, %v485_v46, %v2927_v39 }
  0xa1   :  { %498 = vst.msk [vmem:[#allocation2 + $0x10] sm:$0xff] %vm102_vm2, %v483_v47  ;;  %v2955_v51 = vsel %vm102_vm2, %v481_v26, %v483_v47  ;;  %v509_v29 = vmul.f32 %v3043_v24, %v2887_v18  ;;  %v203_v47 = vpack.c.bf16 %v198_v43, %v198_v43  ;;  %v678_v43 = vmul.f32 %v2949_v49, %v2900_v22 }
  0xa2   :  { %405 = vrot.lane.b32.xlu2 %v395_v48, %s2832_s14  ;;  %153 = vrot.lane.b32.xlu0 %v394_v45, %s2833_s15  ;;  %v507_v52 = vmul.f32 %v2955_v51, %v2887_v18  ;;  %v205_v45 = vpack.c.bf16 %v201_v38, %v201_v38 }
  0xa3   :  { %155 = vrot.lane.b32.xlu1 %v395_v48, %s2833_s15  ;;  %v3066_v48 = vsel %vm347_vm5, %v2900_v22, %v2902_v23 }
  0xa4   :  { %v510_v55 = vpack.c.bf16 %v507_v52, %v506_v50  ;;  %v3070_v50 = vsel %vm297_vm6, %v2931_v41, %v2929_v40  ;;  %v302_v52 = vmul.f32 %v2931_v41, %v2910_v31 }
  0xa5   :  { %v303_v54 = vmul.f32 %v3070_v50, %v2917_v33  ;;  %v642_v38 = vmul.f32 %v3043_v24, %v3070_v50 }
  0xa6   :  { %512 = vst [vmem:[#allocation3 + $0x8] sm:$0xff] %v510_v55  ;;  %v352_v55 = vmul.f32 %v2900_v22, %v2910_v31 }
  0xa7   :  { %v2966_v56 = vpop.permute.xlu1 %430  ;;  %v3047_v26 = vld [vmem:[#allocation2 + $0x18] sm:$0xff]  ;;  %v308_v60 = vpack.c.bf16 %v303_v54, %v302_v52 }
  0xa8   :  { %v2968_v57 = vpop.permute.xlu0 %428  ;;  %v438_v61 = vmul.f32 %v2966_v56, %v2937_v44  ;;  %v441_v20 = vmul.f32 %v2966_v56, %v2933_v42  ;;  %v508_v35 = vmul.f32 %v3047_v26, %v2882_v14 }
  0xa9   :  { %v3090_v62 = vsel %vm80_vm0, %v2968_v57, %v2966_v56  ;;  %v752_v54 = vmul.f32 %v2949_v49, %v2968_v57 }
  0xaa   :  { %401 = vrot.lane.b32.xlu0 %v393_v58, %s2832_s14  ;;  %151 = vrot.lane.b32.xlu2 %v393_v58, %s2833_s15  ;;  %v443_v5 = vpack.c.bf16 %v438_v61, %v438_v61  ;;  %v445_v30 = vpack.c.bf16 %v441_v20, %v441_v20  ;;  %v511_v37 = vpack.c.bf16 %v509_v29, %v508_v35 }
  0xab   :  { %372 = vrot.lane.b32.xlu1 %v361_v59, %s2834_s16  ;;  %v353_v58 = vmul.f32 %v3066_v48, %v2917_v33  ;;  %v641_v35 = vmul.f32 %v3047_v26, %v2931_v41 }
  0xac   :  { %513 = vst [vmem:[#allocation3 + $0x18] sm:$0xff] %v511_v37  ;;  %v679_v37 = vmul.f32 %v2955_v51, %v3066_v48 }
  0xad   :  { %v358_v61 = vpack.c.bf16 %v353_v58, %v352_v55  ;;  %v753_v55 = vmul.f32 %v2955_v51, %v3090_v62 }
  0xaf   :  { %v2983_v0 = vpop.permute.xlu1 %187 }
  0xb0   :  { %v2985_v1 = vpop.permute.xlu0 %241  ;;  %v3002_v8 = vsel %vm191_vm4, %v2983_v0, %v2981_v63  ;;  %v3014_v11 = vmul.f32 %v2983_v0, %v2906_v27  ;;  %v3024_v13 = vmul.f32 %v2983_v0, %v2910_v31 }
  0xb1   :  { %v2998_v7 = vsel %vm3762_vm3, %v2962_v53, %v2985_v1  ;;  %v3018_v12 = vmul.f32 %v3002_v8, %v2913_v32  ;;  %v3035_v19 = vmul.f32 %v3002_v8, %v2917_v33  ;;  %v253_v25 = vmul.f32 %v2933_v42, %v2985_v1 }
  0xb2   :  { %v3006_v9 = vmul.f32 %v2998_v7, %v2913_v32  ;;  %v3010_v10 = vmul.f32 %v2998_v7, %v2917_v33  ;;  %318 = vrot.lane.b32.xlu0 %v309_v2, %s2835_s17  ;;  %368 = vrot.lane.b32.xlu2 %v359_v6, %s2834_s16  ;;  %v250_v39 = vmul.f32 %v2937_v44, %v2985_v1 }
  0xb3   :  { %452 = vrot.lane.b32.xlu1 %v443_v5, %s2836_s18  ;;  %v204_v17 = vpack.c.bf16 %v3018_v12, %v3014_v11  ;;  %v202_v28 = vpack.c.bf16 %v3035_v19, %v3024_v13  ;;  %v257_v36 = vpack.c.bf16 %v253_v25, %v253_v25  ;;  %v355_v42 = vmul.f32 %v2900_v22, %v2906_v27  ;;  %v3130_v13 = vld [vmem:[#allocation2 + $0x10] sm:$0xff] }
  0xb4   :  { %v256_v15 = vpack.c.bf16 %v3006_v9, %v2989_v3  ;;  %v254_v16 = vpack.c.bf16 %v3010_v10, %v2993_v4  ;;  %v255_v46 = vpack.c.bf16 %v250_v39, %v250_v39  ;;  %v356_v44 = vmul.f32 %v3066_v48, %v2913_v32 }
  0xb5   :  { %v436_v2 = vmul.f32 %v2968_v57, %v2910_v31  ;;  %v437_v3 = vmul.f32 %v3090_v62, %v2917_v33  ;;  %v439_v4 = vmul.f32 %v2968_v57, %v2906_v27  ;;  %v440_v5 = vmul.f32 %v3090_v62, %v2913_v32  ;;  %v3113_v31 = vld [vmem:[#allocation2 + $0x28] sm:$0xff] }
  0xb6   :  { %v360_v59 = vpack.c.bf16 %v356_v44, %v355_v42  ;;  %v305_v6 = vmul.f32 %v2931_v41, %v2906_v27  ;;  %v306_v9 = vmul.f32 %v3070_v50, %v2913_v32  ;;  %v3117_v27 = vpack.c.bf16 %v3113_v31, %v3113_v31 }
  0xb7   :  { %v442_v10 = vpack.c.bf16 %v437_v3, %v436_v2  ;;  %v444_v11 = vpack.c.bf16 %v440_v5, %v439_v4  ;;  %v3121_v32 = vpack.c.bf16 %v3043_v24, %v3047_v26  ;;  %v683_v33 = vmul.f32 %v3113_v31, %v2902_v23 }
  0xb8   :  { %v310_v12 = vpack.c.bf16 %v306_v9, %v305_v6  ;;  %v681_v19 = vmul.f32 %v3047_v26, %v2900_v22  ;;  %v680_v20 = vmul.f32 %v3130_v13, %v2902_v23  ;;  %v640_v21 = vmul.f32 %v3130_v13, %v2929_v40 }
  0xb9   :  { %v682_v25 = vmul.f32 %v3043_v24, %v3066_v48  ;;  %v638_v39 = vmul.f32 %v2949_v49, %v2931_v41  ;;  %v754_v44 = vmul.f32 %v3130_v13, %v2966_v56  ;;  %v643_v52 = vmul.f32 %v3113_v31, %v2929_v40 }
  0xba   :  { %456 = vrot.lane.b32.xlu0 %v445_v30, %s2836_s18  ;;  %322 = vrot.lane.b32.xlu2 %v311_v34, %s2835_s17  ;;  %v685_v29 = vpack.c.bf16 %v680_v20, %v680_v20  ;;  %v645_v30 = vpack.c.bf16 %v640_v21, %v640_v21  ;;  %v755_v2 = vmul.f32 %v3047_v26, %v2968_v57 }
  0xbb   :  { %268 = vrot.lane.b32.xlu1 %v257_v36, %s2837_s19  ;;  %v639_v36 = vmul.f32 %v2955_v51, %v3070_v50  ;;  %v759_v58 = vpack.c.bf16 %v754_v44, %v754_v44  ;;  %v756_v3 = vmul.f32 %v3043_v24, %v3090_v62  ;;  %v595_v4 = vmul.f32 %v2955_v51, %v2998_v7 }
  0xbc   :  { %v757_v5 = vmul.f32 %v3113_v31, %v2966_v56  ;;  %v594_v6 = vmul.f32 %v2949_v49, %v2962_v53 }
  0xbd   :  { %v760_v9 = vpack.c.bf16 %v756_v3, %v755_v2 }
  0xc2   :  { %216 = vrot.lane.b32.xlu0 %v205_v45, %s2838_s20  ;;  %264 = vrot.lane.b32.xlu2 %v255_v46, %s2837_s19  ;;  %v646_v45 = vpack.c.bf16 %v642_v38, %v641_v35  ;;  %v644_v46 = vpack.c.bf16 %v639_v36, %v638_v39 }
  0xc3   :  { %212 = vrot.lane.b32.xlu1 %v203_v47, %s2838_s20  ;;  %v684_v47 = vpack.c.bf16 %v679_v37, %v678_v43 }
  0xca   :  { %370 = vrot.lane.b32.xlu0 %v360_v59, %s2834_s16  ;;  %316 = vrot.lane.b32.xlu2 %v308_v60, %s2835_s17  ;;  %v647_v59 = vpack.c.bf16 %v643_v52, %v643_v52  ;;  %v758_v60 = vpack.c.bf16 %v753_v55, %v752_v54  ;;  %v556_v55 = vmul.f32 %v3130_v13, %v2981_v63 }
  0xcb   :  { %366 = vrot.lane.b32.xlu1 %v358_v61, %s2834_s16 }
  0xcc   :  { %v561_v3 = vpack.c.bf16 %v556_v55, %v556_v55 }
  0xd2   :  { %450 = vrot.lane.b32.xlu0 %v442_v10, %s2836_s18  ;;  %454 = vrot.lane.b32.xlu2 %v444_v11, %s2836_s18  ;;  %v600_v10 = vpack.c.bf16 %v595_v4, %v594_v6  ;;  %v761_v11 = vpack.c.bf16 %v757_v5, %v757_v5  ;;  %v559_v4 = vmul.f32 %v3113_v31, %v2981_v63 }
  0xd3   :  { %320 = vrot.lane.b32.xlu1 %v310_v12, %s2835_s17 }
  0xda   :  { %266 = vrot.lane.b32.xlu0 %v256_v15, %s2837_s19  ;;  %214 = vrot.lane.b32.xlu2 %v204_v17, %s2838_s20  ;;  %v3134_v15 = vpack.c.bf16 %v3130_v13, %v3130_v13  ;;  %v687_v17 = vpack.c.bf16 %v683_v33, %v683_v33 }
  0xdb   :  { %262 = vrot.lane.b32.xlu1 %v254_v16, %s2837_s19  ;;  %v3138_v16 = vpack.c.bf16 %v2955_v51, %v2949_v49 }
  0xe2   :  { %210 = vrot.lane.b32.xlu0 %v202_v28, %s2838_s20  ;;  %732 = vrot.lane.b32.xlu2 %v3117_v27, %s2832_s14  ;;  %v686_v28 = vpack.c.bf16 %v682_v25, %v681_v19  ;;  %v599_v19 = vmul.f32 %v3113_v31, %v2985_v1 }
  0xe3   :  { %730 = vrot.lane.b32.xlu1 %v3121_v32, %s2832_s14 }
  0xe4   :  { %v603_v37 = vpack.c.bf16 %v599_v19, %v599_v19 }
  0xea   :  { %728 = vrot.lane.b32.xlu0 %v3134_v15, %s2832_s14  ;;  %726 = vrot.lane.b32.xlu2 %v3138_v16, %s2832_s14 }
  0xeb   :  { %698 = vrot.lane.b32.xlu1 %v687_v17, %s2834_s16  ;;  %v596_v17 = vmul.f32 %v3130_v13, %v2985_v1 }
  0xed   :  { %v601_v36 = vpack.c.bf16 %v596_v17, %v596_v17 }
  0xf2   :  { %696 = vrot.lane.b32.xlu0 %v686_v28, %s2834_s16  ;;  %694 = vrot.lane.b32.xlu2 %v685_v29, %s2834_s16  ;;  %v598_v28 = vmul.f32 %v3043_v24, %v2998_v7 }
  0xf3   :  { %654 = vrot.lane.b32.xlu1 %v645_v30, %s2835_s17  ;;  %v597_v30 = vmul.f32 %v3047_v26, %v2962_v53 }
  0xf4   :  { %v3156_v34 = vpop.permute.xlu2 %157 }
  0xf5   :  { %v602_v38 = vpack.c.bf16 %v598_v28, %v597_v30 }
  0xfa   :  { %656 = vrot.lane.b32.xlu2 %v646_v45, %s2835_s17  ;;  %652 = vrot.lane.b32.xlu0 %v644_v46, %s2835_s17  ;;  %v557_v45 = vmul.f32 %v3047_v26, %v2983_v0  ;;  %v558_v46 = vmul.f32 %v3043_v24, %v3002_v8 }
  0xfb   :  { %692 = vrot.lane.b32.xlu1 %v684_v47, %s2834_s16  ;;  %v554_v47 = vmul.f32 %v2949_v49, %v2983_v0 }
  0xfc   :  { %v406_v42 = vpop.permute.xlu2 %405  ;;  %v562_v49 = vpack.c.bf16 %v558_v46, %v557_v45 }
  0xfd   :  { %v411_v20 = vrot.slane %v406_v42, 4 }
 0x102   :  { %768 = vrot.lane.b32.xlu2 %v759_v58, %s2836_s18  ;;  %658 = vrot.lane.b32.xlu0 %v647_v59, %s2835_s17  ;;  %v162_v58 = vrot.slane %v3156_v34, 4 }
 0x103   :  { %766 = vrot.lane.b32.xlu1 %v758_v60, %s2836_s18 }
 0x104   :  { %v152_v61 = vpop.permute.xlu2 %151 }
 0x105   :  { %v159_v44 = vrot.slane %v152_v61, 4 }
 0x10a   :  { %770 = vrot.lane.b32.xlu0 %v760_v9, %s2836_s18  ;;  %608 = vrot.lane.b32.xlu2 %v600_v10, %s2837_s19 }
 0x10b   :  { %772 = vrot.lane.b32.xlu1 %v761_v11, %s2836_s18  ;;  %v563_v11 = vpack.c.bf16 %v559_v4, %v559_v4 }
 0x10c   :  { %v408_v12 = vpop.permute.xlu0 %407  ;;  %v3197_v33 = vpop.permute.xlu2 %368 }
 0x10d   :  { %v412_v21 = vrot.slane %v408_v12, 4  ;;  %v404_v25 = vpop.permute.xlu1 %403 }
 0x10f   :  { %v416_v29 = vsel %vm163_vm7, %v411_v20, %v412_v21 }
 0x110   :  { %v417_v35 = vsel %vm414_vm8, %v406_v42, %v416_v29  ;;  %v555_v42 = vmul.f32 %v2955_v51, %v3002_v8 }
 0x111   :  { %421 = vst [vmem:[#allocation3 + $0xf0] sm:$0xff] %v417_v35 }
 0x112   :  { %610 = vrot.lane.b32.xlu0 %v601_v36, %s2837_s19  ;;  %614 = vrot.lane.b32.xlu2 %v603_v37, %s2837_s19  ;;  %v560_v2 = vpack.c.bf16 %v555_v42, %v554_v47 }
 0x113   :  { %612 = vrot.lane.b32.xlu1 %v602_v38, %s2837_s19 }
 0x114   :  { %v154_v39 = vpop.permute.xlu0 %153  ;;  %v3212_v43 = vpop.permute.xlu2 %322 }
 0x115   :  { %v156_v52 = vpop.permute.xlu1 %155  ;;  %v160_v54 = vrot.slane %v154_v39, 4 }
 0x116   :  { %v161_v59 = vrot.slane %v156_v52, 4 }
 0x117   :  { %v164_v26 = vsel %vm163_vm7, %v159_v44, %v160_v54 }
 0x118   :  { %v167_v24 = vsel %vm163_vm7, %v161_v59, %v162_v58  ;;  %v166_v60 = vsel %vm165_vm9, %v152_v61, %v164_v26  ;;  %v410_v61 = vrot.slane %v404_v25, 4  ;;  %v2614_v29 = vld [vmem:[#allocation3 + $0xec] sm:$0xf0]  ;;  %v375_v59 = vrot.slane %v3197_v33, 4 }
 0x119   :  { %v168_v51 = vsel %vm165_vm9, %v156_v52, %v167_v24  ;;  %171 = vst [vmem:[#allocation3 + $0x20] sm:$0xff] %v166_v60 }
 0x11a   :  { %172 = vst [vmem:[#allocation3 + $0x30] sm:$0xff] %v168_v51  ;;  %572 = vrot.lane.b32.xlu2 %v562_v49, %s2838_s20  ;;  %568 = vrot.lane.b32.xlu0 %v560_v2, %s2838_s20 }
 0x11b   :  { %570 = vrot.lane.b32.xlu1 %v561_v3, %s2838_s20 }
 0x11c   :  { %v402_v13 = vpop.permute.xlu0 %401  ;;  %v3232_v34 = vpop.permute.xlu2 %264 }
 0x11d   :  { %v373_v5 = vpop.permute.xlu1 %372  ;;  %v409_v6 = vrot.slane %v402_v13, 4 }
 0x11e   :  { %v377_v54 = vrot.slane %v373_v5, 4  ;;  %v327_v5 = vrot.slane %v3212_v43, 4 }
 0x11f   :  { %v413_v9 = vsel %vm163_vm7, %v409_v6, %v410_v61 }
 0x120   :  { %v415_v10 = vsel %vm414_vm8, %v402_v13, %v413_v9 }
 0x121   :  { %420 = vst [vmem:[#allocation3 + $0xe0] sm:$0xff] %v415_v10 }
 0x122   :  { %530 = vrot.lane.b32.xlu2 %v3134_v15, %s2833_s15  ;;  %574 = vrot.lane.b32.xlu0 %v563_v11, %s2838_s20 }
 0x123   :  { %528 = vrot.lane.b32.xlu1 %v3138_v16, %s2833_s15 }
 0x124   :  { %v319_v12 = vpop.permute.xlu0 %318  ;;  %v317_v17 = vpop.permute.xlu2 %316 }
 0x125   :  { %v453_v31 = vpop.permute.xlu1 %452  ;;  %v325_v19 = vrot.slane %v319_v12, 4  ;;  %v324_v20 = vrot.slane %v317_v17, 4 }
 0x126   :  { %v459_v13 = vrot.slane %v453_v31, 4 }
 0x127   :  { %v328_v21 = vsel %vm163_vm7, %v324_v20, %v325_v19 }
 0x128   :  { %v330_v25 = vsel %vm329_vm10, %v317_v17, %v328_v21  ;;  %v2400_v28 = vld [vmem:[#allocation3 + $0xe0] sm:$0xf] }
 0x129   :  { %335 = vst [vmem:[#allocation3 + $0xa0] sm:$0xff] %v330_v25  ;;  %v2401_v30 = vor.u32 %v2614_v29, %v2400_v28  ;;  %v271_v28 = vrot.slane %v3232_v34, 4 }
 0x12a   :  { %532 = vrot.lane.b32.xlu0 %v3121_v32, %s2833_s15 }
 0x12b   :  { %534 = vrot.lane.b32.xlu1 %v3117_v27, %s2833_s15  ;;  %1016 = vmatpush.bf16.msra.mxu0 %v2401_v30 }
 0x12c   :  { %v457_v15 = vpop.permute.xlu0 %456  ;;  %v455_v16 = vpop.permute.xlu2 %454 }
 0x12d   :  { %v269_v35 = vpop.permute.xlu1 %268  ;;  %v461_v36 = vrot.slane %v457_v15, 4  ;;  %v460_v37 = vrot.slane %v455_v16, 4  ;;  %v2612_v15 = vld [vmem:[#allocation3 + $0xe4] sm:$0xf] }
 0x12e   :  { %v273_v20 = vrot.slane %v269_v35, 4 }
 0x12f   :  { %v465_v38 = vsel %vm163_vm7, %v460_v37, %v461_v36 }
 0x130   :  { %v466_v39 = vsel %vm463_vm11, %v455_v16, %v465_v38  ;;  %v2368_v36 = vld [vmem:[#allocation3 + $0xa0] sm:$0xf]  ;;  %v2402_v38 = vld [vmem:[#allocation3 + $0xf0] sm:$0xf0] }
 0x131   :  { %470 = vst [vmem:[#allocation3 + $0x110] sm:$0xff] %v466_v39  ;;  %v2582_v39 = vld [vmem:[#allocation8 + $0x4] sm:$0xf] }
 0x134   :  { %v217_v45 = vpop.permute.xlu0 %216  ;;  %v215_v46 = vpop.permute.xlu2 %214 }
 0x135   :  { %v3251_v47 = vpop.permute.xlu1 %212  ;;  %v221_v32 = vrot.slane %v217_v45, 4  ;;  %v220_v42 = vrot.slane %v215_v46, 4  ;;  %v2282_v45 = vld [vmem:[#allocation8 + $0x8] sm:$0xf0] }
 0x137   :  { %v225_v27 = vsel %vm163_vm7, %v220_v42, %v221_v32 }
 0x138   :  { %v226_v44 = vsel %vm223_vm12, %v215_v46, %v225_v27  ;;  %v2618_v30 = vld [vmem:[#allocation3 + $0x10c] sm:$0xf0]  ;;  %v2418_v37 = vld [vmem:[#allocation3 + $0x110] sm:$0xf0]  ;;  %v2352_v27 = vld [vmem:[#allocation3 + $0x80] sm:$0xf] }
 0x139   :  { %230 = vst [vmem:[#allocation3 + $0x50] sm:$0xff] %v226_v44 }
 0x13c   :  { %v371_v52 = vpop.permute.xlu0 %370  ;;  %v3260_v51 = vpop.permute.xlu2 %732 }
 0x13d   :  { %v376_v55 = vrot.slane %v371_v52, 4  ;;  %v367_v58 = vpop.permute.xlu1 %366 }
 0x13e   :  { %v374_v26 = vrot.slane %v367_v58, 4 }
 0x13f   :  { %v381_v24 = vsel %vm163_vm7, %v376_v55, %v377_v54  ;;  %v2602_v55 = vld [vmem:[#allocation3 + $0x8c] sm:$0xf0] }
 0x140   :  { %v382_v60 = vsel %vm379_vm13, %v371_v52, %v381_v24  ;;  %v378_v49 = vsel %vm163_vm7, %v374_v26, %v375_v59  ;;  %v2405_v59 = vor.u32 %v2612_v15, %v2402_v38  ;;  %v3274_v26 = vor.u32 %v2582_v39, %v2282_v45 }
 0x141   :  { %386 = vst [vmem:[#allocation3 + $0xd0] sm:$0xff] %v382_v60  ;;  %v380_v2 = vsel %vm379_vm13, %v367_v58, %v378_v49 }
 0x142   :  { %385 = vst [vmem:[#allocation3 + $0xc0] sm:$0xff] %v380_v2  ;;  %v2353_v2 = vor.u32 %v2602_v55, %v2352_v27  ;;  %v2304_v27 = vld [vmem:[#allocation3 + $0x20] sm:$0xf] }
 0x144   :  { %v451_v3 = vpop.permute.xlu0 %450  ;;  %v3267_v21 = vpop.permute.xlu2 %726 }
 0x145   :  { %v458_v4 = vrot.slane %v451_v3, 4  ;;  %v321_v61 = vpop.permute.xlu1 %320 }
 0x146   :  { %v326_v33 = vrot.slane %v321_v61, 4 }
 0x147   :  { %v462_v6 = vsel %vm163_vm7, %v458_v4, %v459_v13 }
 0x148   :  { %v464_v9 = vsel %vm463_vm11, %v451_v3, %v462_v6  ;;  %v331_v10 = vsel %vm163_vm7, %v326_v33, %v327_v5  ;;  %v2610_v11 = vld [vmem:[#allocation3 + $0xcc] sm:$0xf0]  ;;  %v2386_v60 = vld [vmem:[#allocation3 + $0xd0] sm:$0xf0]  ;;  %v219_v3 = vrot.slane %v3251_v47, 4 }
 0x149   :  { %469 = vst [vmem:[#allocation3 + $0x100] sm:$0xff] %v464_v9  ;;  %v332_v12 = vsel %vm329_vm10, %v321_v61, %v331_v10  ;;  %v2384_v17 = vld [vmem:[#allocation3 + $0xc0] sm:$0xf]  ;;  %v2608_v24 = vld [vmem:[#allocation3 + $0xc4] sm:$0xf]  ;;  %v737_v61 = vrot.slane %v3260_v51, 4 }
 0x14a   :  { %336 = vst [vmem:[#allocation3 + $0xb0] sm:$0xff] %v332_v12  ;;  %v2385_v19 = vor.u32 %v2610_v11, %v2384_v17  ;;  %v2389_v33 = vor.u32 %v2608_v24, %v2386_v60  ;;  %v2604_v12 = vld [vmem:[#allocation3 + $0xa4] sm:$0xf]  ;;  %v2322_v24 = vld [vmem:[#allocation3 + $0x50] sm:$0xf0] }
 0x14b   :  { %v2600_v17 = vld [vmem:[#allocation3 + $0x84] sm:$0xf]  ;;  %v2288_v60 = vld [vmem:[#allocation3] sm:$0xf] }
 0x14c   :  { %1017 = vmatpush.bf16.msra.mxu0 %v2385_v19  ;;  %v267_v31 = vpop.permute.xlu0 %266  ;;  %v3282_v6 = vpop.permute.xlu2 %694 }
 0x14d   :  { %v272_v43 = vrot.slane %v267_v31, 4  ;;  %v263_v25 = vpop.permute.xlu1 %262 }
 0x14e   :  { %v270_v29 = vrot.slane %v263_v25, 4 }
 0x14f   :  { %v277_v16 = vsel %vm163_vm7, %v272_v43, %v273_v20  ;;  %v2354_v20 = vld [vmem:[#allocation3 + $0x90] sm:$0xf0] }
 0x150   :  { %v278_v46 = vsel %vm275_vm14, %v267_v31, %v277_v16  ;;  %v274_v35 = vsel %vm163_vm7, %v270_v29, %v271_v28  ;;  %v2416_v32 = vld [vmem:[#allocation3 + $0x100] sm:$0xf]  ;;  %v2616_v42 = vld [vmem:[#allocation3 + $0x104] sm:$0xf]  ;;  %v2357_v29 = vor.u32 %v2600_v17, %v2354_v20 }
 0x151   :  { %282 = vst [vmem:[#allocation3 + $0x70] sm:$0xff] %v278_v46  ;;  %v276_v34 = vsel %vm275_vm14, %v263_v25, %v274_v35  ;;  %v2606_v44 = vld [vmem:[#allocation3 + $0xac] sm:$0xf0]  ;;  %v2417_v52 = vor.u32 %v2618_v30, %v2416_v32  ;;  %v2421_v54 = vor.u32 %v2616_v42, %v2418_v37  ;;  %v2370_v10 = vld [vmem:[#allocation3 + $0xb0] sm:$0xf0]  ;;  %v734_v30 = vrot.slane %v3267_v21, 4 }
 0x152   :  { %281 = vst [vmem:[#allocation3 + $0x60] sm:$0xff] %v276_v34  ;;  %v2369_v58 = vor.u32 %v2606_v44, %v2368_v36  ;;  %v2373_v25 = vor.u32 %v2604_v12, %v2370_v10  ;;  %v2594_v46 = vld [vmem:[#allocation3 + $0x4c] sm:$0xf0]  ;;  %v2584_v17 = vld [vmem:[#allocation3 + $0x4] sm:$0xf] }
 0x153   :  { %1037 = vmatpush.bf16.msra.mxu2 %v2417_v52  ;;  %1065 = vmatpush.bf16.msra.mxu3 %v2421_v54  ;;  %v2590_v34 = vld [vmem:[#allocation3 + $0x2c] sm:$0xf0] }
 0x154   :  { %1018 = vmatpush.bf16.msra.mxu0 %v2369_v58  ;;  %v211_v49 = vpop.permute.xlu0 %210  ;;  %v3292_v35 = vpop.permute.xlu2 %656 }
 0x155   :  { %v731_v13 = vpop.permute.xlu1 %730  ;;  %v218_v4 = vrot.slane %v211_v49, 4 }
 0x156   :  { %v736_v5 = vrot.slane %v731_v13, 4  ;;  %2430 = vmatmul.msk.bf16.vlgmr.msra.gmra.mxu2 %vm3762_vm3, %v3274_v26  ;;  %2431 = vmatmul.msk.bf16.vlgmr.msra.gmra.mxu3 %vm3762_vm3, %v3274_v26 }
 0x157   :  { %1044 = vmatpush.bf16.msrb.mxu2 %v2405_v59  ;;  %v222_v9 = vsel %vm163_vm7, %v218_v4, %v219_v3  ;;  %v2305_v59 = vor.u32 %v2590_v34, %v2304_v27  ;;  %v2280_v4 = vld [vmem:[#allocation8] sm:$0xf] }
 0x158   :  { %v740_v11 = vsel %vm163_vm7, %v736_v5, %v737_v61  ;;  %v224_v47 = vsel %vm223_vm12, %v211_v49, %v222_v9  ;;  %1019 = vmatpush.bf16.msra.mxu0 %v2353_v2  ;;  %v2598_v51 = vld [vmem:[#allocation3 + $0x6c] sm:$0xf0]  ;;  %v2338_v38 = vld [vmem:[#allocation3 + $0x70] sm:$0xf0]  ;;  %v2588_v2 = vld [vmem:[#allocation3 + $0x24] sm:$0xf] }
 0x159   :  { %v741_v19 = vsel %vm414_vm8, %v731_v13, %v740_v11  ;;  %229 = vst [vmem:[#allocation3 + $0x40] sm:$0xff] %v224_v47  ;;  %v2336_v31 = vld [vmem:[#allocation3 + $0x60] sm:$0xf]  ;;  %v2596_v37 = vld [vmem:[#allocation3 + $0x64] sm:$0xf] }
 0x15a   :  { %745 = vst [vmem:[#allocation3 + $0xf8] sm:$0xff] %v741_v19  ;;  %v2337_v43 = vor.u32 %v2598_v51, %v2336_v31  ;;  %v2341_v42 = vor.u32 %v2596_v37, %v2338_v38  ;;  %v2586_v49 = vld [vmem:[#allocation3 + $0xc] sm:$0xf0]  ;;  %v2306_v13 = vld [vmem:[#allocation3 + $0x30] sm:$0xf0] }
 0x15b   :  { %1045 = vmatpush.bf16.msrb.mxu2 %v2389_v33  ;;  %v2583_v61 = vld [vmem:[#allocation8 + $0x4] sm:$0xf0]  ;;  %v2289_v10 = vor.u32 %v2586_v49, %v2288_v60  ;;  %v2309_v47 = vor.u32 %v2588_v2, %v2306_v13  ;;  %v2290_v19 = vld [vmem:[#allocation3 + $0x10] sm:$0xf0] }
 0x15c   :  { %1020 = vmatpush.bf16.msra.mxu0 %v2337_v43  ;;  %v729_v28 = vpop.permute.xlu0 %728  ;;  %v3296_v51 = vor.u32 %v2583_v61, %v2280_v4  ;;  %v769_v12 = vpop.permute.xlu2 %768  ;;  %v2360_v2 = vld [vmem:[#allocation3 + $0x88] sm:$0xf]  ;;  %v2603_v61 = vld [vmem:[#allocation3 + $0x94] sm:$0xf0] }
 0x15d   :  { %v699_v15 = vpop.permute.xlu1 %698  ;;  %v735_v16 = vrot.slane %v729_v28, 4  ;;  %v701_v28 = vrot.slane %v3282_v6, 4  ;;  %v662_v6 = vrot.slane %v3292_v35, 4 }
 0x15e   :  { %v703_v54 = vrot.slane %v699_v15, 4 }
 0x15f   :  { %1046 = vmatpush.bf16.msrb.mxu2 %v2373_v25  ;;  %v738_v36 = vsel %vm163_vm7, %v734_v30, %v735_v16  ;;  %v2293_v30 = vor.u32 %v2584_v17, %v2290_v19 }
 0x160   :  { %v739_v39 = vsel %vm414_vm8, %v3267_v21, %v738_v36  ;;  %v2320_v45 = vld [vmem:[#allocation3 + $0x40] sm:$0xf]  ;;  %v2592_v44 = vld [vmem:[#allocation3 + $0x44] sm:$0xf] }
 0x161   :  { %744 = vst [vmem:[#allocation3 + $0xe8] sm:$0xff] %v739_v39  ;;  %v2321_v32 = vor.u32 %v2594_v46, %v2320_v45  ;;  %v2325_v21 = vor.u32 %v2592_v44, %v2322_v24  ;;  %v2615_v9 = vld [vmem:[#allocation3 + $0xf4] sm:$0xf0] }
 0x163   :  { %1047 = vmatpush.bf16.msrb.mxu2 %v2357_v29  ;;  %1021 = vmatpush.bf16.msra.mxu0 %v2321_v32  ;;  %v775_v32 = vrot.slane %v769_v12, 4 }
 0x164   :  { %v697_v52 = vpop.permute.xlu0 %696  ;;  %v609_v39 = vpop.permute.xlu2 %608 }
 0x165   :  { %v655_v55 = vpop.permute.xlu1 %654  ;;  %v702_v58 = vrot.slane %v697_v52, 4 }
 0x166   :  { %v661_v20 = vrot.slane %v655_v55, 4 }
 0x167   :  { %1048 = vmatpush.bf16.msrb.mxu2 %v2341_v42  ;;  %v706_v3 = vsel %vm163_vm7, %v702_v58, %v703_v54  ;;  %1022 = vmatpush.bf16.msra.mxu0 %v2305_v59 }
 0x168   :  { %v707_v5 = vsel %vm379_vm13, %v697_v52, %v706_v3  ;;  %v2408_v33 = vld [vmem:[#allocation3 + $0xe8] sm:$0xf] }
 0x169   :  { %711 = vst [vmem:[#allocation3 + $0xd8] sm:$0xff] %v707_v5  ;;  %v2409_v11 = vor.u32 %v2615_v9, %v2408_v33  ;;  %v2361_v33 = vor.u32 %v2603_v61, %v2360_v2 }
 0x16b   :  { %1049 = vmatpush.bf16.msrb.mxu2 %v2325_v21  ;;  %1023 = vmatpush.bf16.msra.mxu0 %v2289_v10  ;;  %v616_v10 = vrot.slane %v609_v39, 4 }
 0x16c   :  { %1072 = vmatpush.bf16.msra.mxu1 %v2409_v11  ;;  %v653_v31 = vpop.permute.xlu0 %652  ;;  %v615_v49 = vpop.permute.xlu2 %614 }
 0x16d   :  { %v693_v43 = vpop.permute.xlu1 %692  ;;  %v660_v25 = vrot.slane %v653_v31, 4  ;;  %v619_v12 = vrot.slane %v615_v49, 4 }
 0x16e   :  { %v700_v29 = vrot.slane %v693_v43, 4  ;;  %1024 = vmatmul.bf16.vlgmr.msra.gmra.mxu0 %v3296_v51 }
 0x16f   :  { %1050 = vmatpush.bf16.msrb.mxu2 %v2309_v47  ;;  %v664_v15 = vsel %vm163_vm7, %v660_v25, %v661_v20 }
 0x170   :  { %v704_v16 = vsel %vm163_vm7, %v700_v29, %v701_v28  ;;  %v665_v36 = vsel %vm329_vm10, %v653_v31, %v664_v15  ;;  %v2611_v55 = vld [vmem:[#allocation3 + $0xd4] sm:$0xf0]  ;;  %v2613_v28 = vld [vmem:[#allocation3 + $0xec] sm:$0xf] }
 0x171   :  { %v705_v37 = vsel %vm379_vm13, %v693_v43, %v704_v16  ;;  %670 = vst [vmem:[#allocation3 + $0xa8] sm:$0xff] %v665_v36 }
 0x172   :  { %710 = vst [vmem:[#allocation3 + $0xc8] sm:$0xff] %v705_v37 }
 0x173   :  { %1051 = vmatpush.bf16.msrb.mxu2 %v2293_v30 }
 0x174   :  { %v659_v38 = vpop.permute.xlu0 %658  ;;  %v573_v29 = vpop.permute.xlu2 %572 }
 0x175   :  { %v767_v45 = vpop.permute.xlu1 %766  ;;  %v663_v46 = vrot.slane %v659_v38, 4  ;;  %v2410_v38 = vld [vmem:[#allocation3 + $0xf8] sm:$0xf0] }
 0x176   :  { %1052 = vmatmul.bf16.vlgmr.msrb.gmra.mxu2 %v3296_v51  ;;  %v774_v42 = vrot.slane %v767_v45, 4 }
 0x177   :  { %v666_v27 = vsel %vm163_vm7, %v662_v6, %v663_v46  ;;  %v2413_v6 = vor.u32 %v2613_v28, %v2410_v38 }
 0x178   :  { %v778_v34 = vsel %vm163_vm7, %v774_v42, %v775_v32  ;;  %v667_v44 = vsel %vm329_vm10, %v3292_v35, %v666_v27  ;;  %v2376_v13 = vld [vmem:[#allocation3 + $0xa8] sm:$0xf]  ;;  %v2394_v27 = vld [vmem:[#allocation3 + $0xd8] sm:$0xf0] }
 0x179   :  { %v779_v52 = vsel %vm463_vm11, %v767_v45, %v778_v34  ;;  %671 = vst [vmem:[#allocation3 + $0xb8] sm:$0xff] %v667_v44  ;;  %v2392_v54 = vld [vmem:[#allocation3 + $0xc8] sm:$0xf]  ;;  %v2609_v46 = vld [vmem:[#allocation3 + $0xcc] sm:$0xf] }
 0x17a   :  { %784 = vst [vmem:[#allocation3 + $0x108] sm:$0xff] %v779_v52  ;;  %v2393_v58 = vor.u32 %v2611_v55, %v2392_v54  ;;  %v2397_v34 = vor.u32 %v2609_v46, %v2394_v27  ;;  %v2587_v27 = vld [vmem:[#allocation3 + $0x14] sm:$0xf0] }
 0x17c   :  { %1073 = vmatpush.bf16.msra.mxu1 %v2393_v58  ;;  %v771_v59 = vpop.permute.xlu0 %770  ;;  %v531_v49 = vpop.permute.xlu2 %530 }
 0x17d   :  { %v773_v24 = vpop.permute.xlu1 %772  ;;  %v776_v21 = vrot.slane %v771_v59, 4 }
 0x17e   :  { %v777_v60 = vrot.slane %v773_v24, 4 }
 0x180   :  { %v780_v3 = vsel %vm163_vm7, %v776_v21, %v777_v60  ;;  %v2607_v4 = vld [vmem:[#allocation3 + $0xb4] sm:$0xf0]  ;;  %v2378_v54 = vld [vmem:[#allocation3 + $0xb8] sm:$0xf0]  ;;  %v2601_v21 = vld [vmem:[#allocation3 + $0x8c] sm:$0xf] }
 0x181   :  { %v781_v35 = vsel %vm463_vm11, %v771_v59, %v780_v3  ;;  %v2377_v5 = vor.u32 %v2607_v4, %v2376_v13  ;;  %v2424_v43 = vld [vmem:[#allocation3 + $0x108] sm:$0xf]  ;;  %v2617_v25 = vld [vmem:[#allocation3 + $0x10c] sm:$0xf]  ;;  %v2362_v60 = vld [vmem:[#allocation3 + $0x98] sm:$0xf0] }
 0x182   :  { %785 = vst [vmem:[#allocation3 + $0x118] sm:$0xff] %v781_v35  ;;  %v2605_v59 = vld [vmem:[#allocation3 + $0xac] sm:$0xf]  ;;  %v578_v13 = vrot.slane %v573_v29, 4  ;;  %v2365_v61 = vor.u32 %v2601_v21, %v2362_v60  ;;  %v537_v35 = vrot.slane %v531_v49, 4 }
 0x183   :  { %1074 = vmatpush.bf16.msra.mxu1 %v2377_v5  ;;  %v2381_v2 = vor.u32 %v2605_v59, %v2378_v54 }
 0x184   :  { %v611_v9 = vpop.permute.xlu0 %610 }
 0x185   :  { %v613_v11 = vpop.permute.xlu1 %612  ;;  %v617_v47 = vrot.slane %v611_v9, 4 }
 0x186   :  { %v618_v17 = vrot.slane %v613_v11, 4 }
 0x187   :  { %v620_v19 = vsel %vm163_vm7, %v616_v10, %v617_v47  ;;  %1075 = vmatpush.bf16.msra.mxu1 %v2361_v33 }
 0x188   :  { %v622_v31 = vsel %vm163_vm7, %v618_v17, %v619_v12  ;;  %v621_v20 = vsel %vm275_vm14, %v609_v39, %v620_v19 }
 0x189   :  { %v623_v30 = vsel %vm275_vm14, %v613_v11, %v622_v31  ;;  %626 = vst [vmem:[#allocation3 + $0x68] sm:$0xff] %v621_v20  ;;  %v2619_v15 = vld [vmem:[#allocation3 + $0x114] sm:$0xf0]  ;;  %v2426_v16 = vld [vmem:[#allocation3 + $0x118] sm:$0xf0] }
 0x18a   :  { %627 = vst [vmem:[#allocation3 + $0x78] sm:$0xff] %v623_v30  ;;  %v2425_v36 = vor.u32 %v2619_v15, %v2424_v43  ;;  %v2429_v37 = vor.u32 %v2617_v25, %v2426_v16 }
 0x18c   :  { %1093 = vmatpush.bf16.msrb.mxu3 %v2425_v36  ;;  %1121 = vmatpush.bf16.msrb.mxu0 %v2429_v37  ;;  %v569_v45 = vpop.permute.xlu0 %568 }
 0x18d   :  { %v571_v32 = vpop.permute.xlu1 %570  ;;  %v576_v39 = vrot.slane %v569_v45, 4 }
 0x18e   :  { %v577_v42 = vrot.slane %v571_v32, 4 }
 0x18f   :  { %2432 = vmatmul.msk.bf16.vlgmr.msrb.gmra.mxu3 %vm3762_vm3, %v3274_v26  ;;  %2433 = vmatmul.msk.bf16.vlgmr.msrb.gmra.mxu0 %vm3762_vm3, %v3274_v26 }
 0x190   :  { %1100 = vmatpush.bf16.msra.mxu3 %v2413_v6  ;;  %v580_v44 = vsel %vm163_vm7, %v576_v39, %v577_v42  ;;  %v2344_v52 = vld [vmem:[#allocation3 + $0x68] sm:$0xf]  ;;  %v2597_v11 = vld [vmem:[#allocation3 + $0x6c] sm:$0xf] }
 0x191   :  { %v581_v55 = vsel %vm223_vm12, %v569_v45, %v580_v44  ;;  %v2599_v58 = vld [vmem:[#allocation3 + $0x74] sm:$0xf0]  ;;  %v2346_v47 = vld [vmem:[#allocation3 + $0x78] sm:$0xf0]  ;;  %v2296_v42 = vld [vmem:[#allocation3 + $0x8] sm:$0xf] }
 0x192   :  { %586 = vst [vmem:[#allocation3 + $0x48] sm:$0xff] %v581_v55  ;;  %v2345_v24 = vor.u32 %v2599_v58, %v2344_v52  ;;  %v2349_v17 = vor.u32 %v2597_v11, %v2346_v47  ;;  %v2298_v44 = vld [vmem:[#allocation3 + $0x18] sm:$0xf0]  ;;  %v2297_v52 = vor.u32 %v2587_v27, %v2296_v42 }
 0x194   :  { %1101 = vmatpush.bf16.msra.mxu3 %v2397_v34  ;;  %1076 = vmatpush.bf16.msra.mxu1 %v2345_v24  ;;  %v575_v3 = vpop.permute.xlu0 %574  ;;  %v2585_v34 = vld [vmem:[#allocation3 + $0xc] sm:$0xf] }
 0x195   :  { %v579_v26 = vrot.slane %v575_v3, 4  ;;  %v529_v4 = vpop.permute.xlu1 %528  ;;  %v2301_v54 = vor.u32 %v2585_v34, %v2298_v44 }
 0x196   :  { %v536_v5 = vrot.slane %v529_v4, 4 }
 0x197   :  { %v582_v33 = vsel %vm163_vm7, %v578_v13, %v579_v26 }
 0x198   :  { %1102 = vmatpush.bf16.msra.mxu3 %v2381_v2  ;;  %v583_v9 = vsel %vm223_vm12, %v573_v29, %v582_v33  ;;  %v540_v10 = vsel %vm163_vm7, %v536_v5, %v537_v35 }
 0x199   :  { %587 = vst [vmem:[#allocation3 + $0x58] sm:$0xff] %v583_v9  ;;  %v541_v12 = vsel %vm165_vm9, %v529_v4, %v540_v10  ;;  %v2328_v25 = vld [vmem:[#allocation3 + $0x48] sm:$0xf]  ;;  %v2593_v29 = vld [vmem:[#allocation3 + $0x4c] sm:$0xf] }
 0x19a   :  { %546 = vst [vmem:[#allocation3 + $0x28] sm:$0xff] %v541_v12 }
 0x19c   :  { %1103 = vmatpush.bf16.msra.mxu3 %v2365_v61  ;;  %v533_v19 = vpop.permute.xlu0 %532 }
 0x19d   :  { %v538_v31 = vrot.slane %v533_v19, 4  ;;  %v535_v20 = vpop.permute.xlu1 %534 }
 0x19e   :  { %v539_v43 = vrot.slane %v535_v20, 4 }
 0x1a0   :  { %1104 = vmatpush.bf16.msra.mxu3 %v2349_v17  ;;  %v542_v28 = vsel %vm163_vm7, %v538_v31, %v539_v43  ;;  %v2595_v30 = vld [vmem:[#allocation3 + $0x54] sm:$0xf0]  ;;  %v2330_v15 = vld [vmem:[#allocation3 + $0x58] sm:$0xf0] }
 0x1a1   :  { %v543_v16 = vsel %vm165_vm9, %v533_v19, %v542_v28  ;;  %v2329_v36 = vor.u32 %v2595_v30, %v2328_v25  ;;  %v2333_v37 = vor.u32 %v2593_v29, %v2330_v15  ;;  %v2312_v38 = vld [vmem:[#allocation3 + $0x28] sm:$0xf]  ;;  %v2589_v45 = vld [vmem:[#allocation3 + $0x2c] sm:$0xf] }
 0x1a2   :  { %547 = vst [vmem:[#allocation3 + $0x38] sm:$0xff] %v543_v16 }
 0x1a3   :  { %1077 = vmatpush.bf16.msra.mxu1 %v2329_v36 }
 0x1a4   :  { %1105 = vmatpush.bf16.msra.mxu3 %v2333_v37 }
 0x1a9   :  { %v2591_v6 = vld [vmem:[#allocation3 + $0x34] sm:$0xf0]  ;;  %v2314_v46 = vld [vmem:[#allocation3 + $0x38] sm:$0xf0] }
 0x1aa   :  { %v2313_v32 = vor.u32 %v2591_v6, %v2312_v38  ;;  %v2317_v39 = vor.u32 %v2589_v45, %v2314_v46 }
 0x1ac   :  { %1078 = vmatpush.bf16.msra.mxu1 %v2313_v32  ;;  %1106 = vmatpush.bf16.msra.mxu3 %v2317_v39 }
 0x1b0   :  { %1079 = vmatpush.bf16.msra.mxu1 %v2297_v52  ;;  %1107 = vmatpush.bf16.msra.mxu3 %v2301_v54 }
 0x1b3   :  { %1080 = vmatmul.bf16.vlgmr.msra.gmra.mxu1 %v3296_v51  ;;  %1108 = vmatmul.bf16.vlgmr.msra.gmra.mxu3 %v3296_v51 }
 0x1d9   :  { %v1039_v55 = vpop.f32.mrf.mxu2  ;;  %v1067_v24 = vpop.f32.mrf.mxu3 }
 0x1e1   :  { %v1041_v58 = vpop.f32.mrf.mxu2  ;;  %v1069_v13 = vpop.f32.mrf.mxu3 }
 0x1eb   :  { %v1025_v59 = vpop.f32.mrf.mxu0 }
 0x1ec   :  { %v1040_v60 = vadd.f32 %v1039_v55, %v1025_v59 }
 0x1f3   :  { %v1027_v3 = vpop.f32.mrf.mxu0 }
 0x1f4   :  { %v1042_v4 = vadd.f32 %v1041_v58, %v1027_v3 }
 0x1f9   :  { %v1053_v21 = vpop.f32.mrf.mxu2 }
 0x1fa   :  { %v1068_v49 = vadd.f32 %v1067_v24, %v1053_v21 }
 0x1fc   :  { %v1128_v2 = vadd.f32 %v1068_v49, %v1040_v60 }
 0x1fe   :  { %1129 = vadd.xlane.f32.xlu2 %v1128_v2 }
 0x201   :  { %v1055_v26 = vpop.f32.mrf.mxu2 }
 0x202   :  { %v1070_v61 = vadd.f32 %v1069_v13, %v1055_v26 }
 0x204   :  { %v1131_v35 = vadd.f32 %v1070_v61, %v1042_v4 }
 0x206   :  { %1132 = vadd.xlane.f32.xlu0 %v1131_v35 }
 0x20c   :  { %v1123_v51 = vpop.f32.mrf.mxu0 }
 0x212   :  { %v1095_v5 = vpop.f32.mrf.mxu3 }
 0x214   :  { %v1125_v19 = vpop.f32.mrf.mxu0 }
 0x21a   :  { %v1097_v33 = vpop.f32.mrf.mxu3 }
 0x230   :  { %v1081_v9 = vpop.f32.mrf.mxu1 }
 0x231   :  { %v1096_v11 = vadd.f32 %v1095_v5, %v1081_v9 }
 0x236   :  { %v1109_v10 = vpop.f32.mrf.mxu3 }
 0x237   :  { %v1124_v47 = vadd.f32 %v1123_v51, %v1109_v10 }
 0x238   :  { %v1083_v17 = vpop.f32.mrf.mxu1 }
 0x239   :  { %v1496_v12 = vadd.f32 %v1124_v47, %v1096_v11  ;;  %v1098_v20 = vadd.f32 %v1097_v33, %v1083_v17 }
 0x23b   :  { %1497 = vadd.xlane.f32.xlu1 %v1496_v12 }
 0x23e   :  { %v1111_v31 = vpop.f32.mrf.mxu3 }
 0x23f   :  { %v1126_v43 = vadd.f32 %v1125_v19, %v1111_v31 }
 0x241   :  { %v1499_v25 = vadd.f32 %v1126_v43, %v1098_v20 }
 0x243   :  { %1500 = vadd.xlane.f32.xlu2 %v1499_v25 }
 0x271   :  { %v1130_v28 = vpop.xlane.xlu2 %1129 }
 0x272   :  { %v1134_v30 = vmul.f32 0.00390625, %v1130_v28 }
 0x274   :  { %v1136_v29 = vsub.f32 %v1040_v60, %v1134_v30  ;;  %v1137_v15 = vsub.f32 %v1068_v49, %v1134_v30 }
 0x276   :  { %v1140_v16 = vmul.f32 %v1136_v29, %v1136_v29  ;;  %v1141_v36 = vmul.f32 %v1137_v15, %v1137_v15 }
 0x278   :  { %v1144_v37 = vadd.f32 %v1141_v36, %v1140_v16 }
 0x279   :  { %v1133_v38 = vpop.xlane.xlu0 %1132 }
 0x27a   :  { %v1135_v6 = vmul.f32 0.00390625, %v1133_v38  ;;  %1145 = vadd.xlane.f32.xlu2 %v1144_v37 }
 0x27c   :  { %v1138_v45 = vsub.f32 %v1042_v4, %v1135_v6  ;;  %v1139_v46 = vsub.f32 %v1070_v61, %v1135_v6 }
 0x27e   :  { %v1142_v32 = vmul.f32 %v1138_v45, %v1138_v45  ;;  %v1143_v39 = vmul.f32 %v1139_v46, %v1139_v46 }
 0x280   :  { %v1147_v42 = vadd.f32 %v1143_v39, %v1142_v32 }
 0x282   :  { %1148 = vadd.xlane.f32.xlu0 %v1147_v42 }
 0x2ae   :  { %v1498_v27 = vpop.xlane.xlu1 %1497 }
 0x2af   :  { %v1502_v34 = vmul.f32 0.00390625, %v1498_v27 }
 0x2b1   :  { %v3331_v44 = vsub.f32 %v1096_v11, %v1502_v34  ;;  %v3333_v52 = vsub.f32 %v1124_v47, %v1502_v34 }
 0x2b3   :  { %v1508_v54 = vmul.f32 %v3331_v44, %v3331_v44  ;;  %v1509_v55 = vmul.f32 %v3333_v52, %v3333_v52 }
 0x2b5   :  { %v1512_v58 = vadd.f32 %v1509_v55, %v1508_v54 }
 0x2b6   :  { %v1501_v59 = vpop.xlane.xlu2 %1500 }
 0x2b7   :  { %v1503_v24 = vmul.f32 0.00390625, %v1501_v59  ;;  %1513 = vadd.xlane.f32.xlu1 %v1512_v58 }
 0x2b9   :  { %v3339_v21 = vsub.f32 %v1098_v20, %v1503_v24  ;;  %v3341_v60 = vsub.f32 %v1126_v43, %v1503_v24 }
 0x2bb   :  { %v1510_v49 = vmul.f32 %v3339_v21, %v3339_v21  ;;  %v1511_v2 = vmul.f32 %v3341_v60, %v3341_v60 }
 0x2bd   :  { %v1515_v3 = vadd.f32 %v1511_v2, %v1510_v49 }
 0x2bf   :  { %1516 = vadd.xlane.f32.xlu2 %v1515_v3 }
 0x2ed   :  { %v1146_v13 = vpop.xlane.xlu2 %1145 }
 0x2ee   :  { %v1150_v26 = vmul.f32 0.00390625, %v1146_v13 }
 0x2f0   :  { %v1152_v4 = vadd.f32 1e-05, %v1150_v26 }
 0x2f2   :  { %2678 = vrsqrt.f32 %v1152_v4  ;;  %vm1160_vm0 = vweird.f32 %v1152_v4 }
 0x2f5   :  { %v1149_v61 = vpop.xlane.xlu0 %1148 }
 0x2f6   :  { %v1151_v35 = vmul.f32 0.00390625, %v1149_v61 }
 0x2f8   :  { %v2679_v5 = vpop.eup %2678  ;;  %v1153_v33 = vadd.f32 1e-05, %v1151_v35 }
 0x2f9   :  { %v1155_v9 = vmul.f32 %v2679_v5, %v1152_v4  ;;  %vm1161_vm15 = vweird.f32 %v2679_v5 }
 0x2fa   :  { %2680 = vrsqrt.f32 %v1153_v33  ;;  %vm1162_vm4 = vmor %vm1160_vm0, %vm1161_vm15  ;;  %vm1170_vm6 = vweird.f32 %v1153_v33 }
 0x2fb   :  { %v1156_v51 = vmul.f32 %v2679_v5, %v1155_v9 }
 0x2fd   :  { %v1157_v10 = vmul.f32 0.5, %v1156_v51 }
 0x2ff   :  { %v1158_v11 = vsub.f32 1.5, %v1157_v10 }
 0x300   :  { %v2681_v47 = vpop.eup %2680 }
 0x301   :  { %v1159_v12 = vmul.f32 %v2679_v5, %v1158_v11  ;;  %v1165_v17 = vmul.f32 %v2681_v47, %v1153_v33  ;;  %vm1171_vm5 = vweird.f32 %v2681_v47 }
 0x302   :  { %vm1172_vm3 = vmor %vm1170_vm6, %vm1171_vm5 }
 0x303   :  { %v1166_v19 = vmul.f32 %v2681_v47, %v1165_v17  ;;  %v1163_v31 = vsel %vm1162_vm4, %v2679_v5, %v1159_v12 }
 0x304   :  { %v1175_v20 = vmul.f32 %v1163_v31, %v1137_v15  ;;  %v1174_v43 = vmul.f32 %v1163_v31, %v1136_v29 }
 0x305   :  { %v1167_v25 = vmul.f32 0.5, %v1166_v19 }
 0x306   :  { %v1179_v28 = vmul.f32 0.2, %v1175_v20  ;;  %v1178_v30 = vmul.f32 0.2, %v1174_v43 }
 0x307   :  { %v1168_v16 = vsub.f32 1.5, %v1167_v25 }
 0x308   :  { %v1183_v36 = vmax.f32 %v1175_v20, %v1179_v28  ;;  %v1182_v37 = vmax.f32 %v1174_v43, %v1178_v30 }
 0x309   :  { %v1169_v38 = vmul.f32 %v2681_v47, %v1168_v16 }
 0x30a   :  { %1192 = vrot.lane.b32.xlu1 %v1183_v36, %s2826_s2  ;;  %v1338_v6 = vpack.c.bf16 %v1183_v36, %v1182_v37  ;;  %1190 = vrot.lane.b32.xlu0 %v1182_v37, %s2826_s2 }
 0x30b   :  { %v1173_v32 = vsel %vm1172_vm3, %v2681_v47, %v1169_v38 }
 0x30c   :  { %1340 = vst [vmem:[#allocation4 + $0x80] sm:$0xff] %v1338_v6  ;;  %v1177_v39 = vmul.f32 %v1173_v32, %v1139_v46  ;;  %v1176_v15 = vmul.f32 %v1173_v32, %v1138_v45 }
 0x30e   :  { %v1181_v29 = vmul.f32 0.2, %v1177_v39  ;;  %v1180_v42 = vmul.f32 0.2, %v1176_v15 }
 0x310   :  { %v1185_v27 = vmax.f32 %v1177_v39, %v1181_v29  ;;  %v1184_v34 = vmax.f32 %v1176_v15, %v1180_v42 }
 0x312   :  { %1196 = vrot.lane.b32.xlu0 %v1185_v27, %s2826_s2  ;;  %1194 = vrot.lane.b32.xlu2 %v1184_v34, %s2826_s2  ;;  %v1339_v54 = vpack.c.bf16 %v1185_v27, %v1184_v34 }
 0x314   :  { %1341 = vst [vmem:[#allocation4 + $0x90] sm:$0xff] %v1339_v54 }
 0x32a   :  { %v1514_v55 = vpop.xlane.xlu1 %1513 }
 0x32b   :  { %v1518_v58 = vmul.f32 0.00390625, %v1514_v55 }
 0x32d   :  { %v1520_v59 = vadd.f32 1e-05, %v1518_v58 }
 0x32f   :  { %2682 = vrsqrt.f32 %v1520_v59  ;;  %vm1528_vm15 = vweird.f32 %v1520_v59 }
 0x332   :  { %v1517_v24 = vpop.xlane.xlu2 %1516 }
 0x333   :  { %v1519_v49 = vmul.f32 0.00390625, %v1517_v24 }
 0x335   :  { %v2683_v2 = vpop.eup %2682  ;;  %v1521_v3 = vadd.f32 1e-05, %v1519_v49 }
 0x336   :  { %v1523_v46 = vmul.f32 %v2683_v2, %v1520_v59  ;;  %vm1529_vm3 = vweird.f32 %v2683_v2 }
 0x337   :  { %2684 = vrsqrt.f32 %v1521_v3  ;;  %vm1530_vm0 = vmor %vm1528_vm15, %vm1529_vm3  ;;  %vm1538_vm5 = vweird.f32 %v1521_v3 }
 0x338   :  { %v1524_v45 = vmul.f32 %v2683_v2, %v1523_v46 }
 0x33a   :  { %v1525_v13 = vmul.f32 0.5, %v1524_v45 }
 0x33c   :  { %v1526_v26 = vsub.f32 1.5, %v1525_v13 }
 0x33d   :  { %v2685_v4 = vpop.eup %2684 }
 0x33e   :  { %v1527_v61 = vmul.f32 %v2683_v2, %v1526_v26  ;;  %v1533_v35 = vmul.f32 %v2685_v4, %v1521_v3  ;;  %vm1539_vm4 = vweird.f32 %v2685_v4 }
 0x33f   :  { %vm1540_vm6 = vmor %vm1538_vm5, %vm1539_vm4 }
 0x340   :  { %v1534_v5 = vmul.f32 %v2685_v4, %v1533_v35  ;;  %v1531_v33 = vsel %vm1530_vm0, %v2683_v2, %v1527_v61 }
 0x341   :  { %v1542_v9 = vmul.f32 %v1531_v33, %v3331_v44  ;;  %v1543_v51 = vmul.f32 %v1531_v33, %v3333_v52 }
 0x342   :  { %v1535_v10 = vmul.f32 0.5, %v1534_v5 }
 0x343   :  { %v1546_v11 = vmul.f32 0.2, %v1542_v9  ;;  %v1547_v47 = vmul.f32 0.2, %v1543_v51 }
 0x344   :  { %v1536_v12 = vsub.f32 1.5, %v1535_v10 }
 0x345   :  { %v1550_v17 = vmax.f32 %v1542_v9, %v1546_v11  ;;  %v1551_v19 = vmax.f32 %v1543_v51, %v1547_v47 }
 0x346   :  { %v1537_v31 = vmul.f32 %v2685_v4, %v1536_v12 }
 0x347   :  { %1558 = vrot.lane.b32.xlu1 %v1550_v17, %s2826_s2  ;;  %v1706_v20 = vpack.c.bf16 %v1551_v19, %v1550_v17  ;;  %1560 = vrot.lane.b32.xlu0 %v1551_v19, %s2826_s2 }
 0x348   :  { %v1541_v43 = vsel %vm1540_vm6, %v2685_v4, %v1537_v31 }
 0x349   :  { %1708 = vst [vmem:[#allocation4 + $0x88] sm:$0xff] %v1706_v20  ;;  %v1545_v44 = vmul.f32 %v1541_v43, %v3341_v60  ;;  %v1544_v52 = vmul.f32 %v1541_v43, %v3339_v21 }
 0x34b   :  { %v1549_v25 = vmul.f32 0.2, %v1545_v44  ;;  %v1548_v28 = vmul.f32 0.2, %v1544_v52 }
 0x34d   :  { %v1553_v30 = vmax.f32 %v1545_v44, %v1549_v25  ;;  %v1552_v16 = vmax.f32 %v1544_v52, %v1548_v28 }
 0x34f   :  { %1564 = vrot.lane.b32.xlu1 %v1553_v30, %s2826_s2  ;;  %v1707_v36 = vpack.c.bf16 %v1553_v30, %v1552_v16  ;;  %1562 = vrot.lane.b32.xlu2 %v1552_v16, %s2826_s2 }
 0x351   :  { %1709 = vst [vmem:[#allocation4 + $0x98] sm:$0xff] %v1707_v36 }
 0x36c   :  { %v1195_v37 = vpop.permute.xlu2 %1194 }
 0x36d   :  { %1209 = vst.msk [vmem:[#allocation2 + $0x18] sm:$0xff] %vm111_vm1, %v1195_v37 }
 0x374   :  { %v3373_v27 = vld [vmem:[#allocation2 + $0x18] sm:$0xff] }
 0x375   :  { %v3383_v58 = vmul.f32 %v3373_v27, %v2962_v53  ;;  %v3393_v3 = vmul.f32 %v3373_v27, %v2983_v0  ;;  %v1218_v61 = vmul.f32 %v3373_v27, %v2882_v14 }
 0x37c   :  { %v1193_v38 = vpop.permute.xlu1 %1192  ;;  %v1191_v6 = vpop.permute.xlu0 %1190 }
 0x37d   :  { %1208 = vst.msk [vmem:[#allocation2 + $0x10] sm:$0xff] %vm102_vm2, %v1193_v38  ;;  %v3363_v32 = vsel %vm102_vm2, %v1191_v6, %v1193_v38 }
 0x37e   :  { %1206 = vst.msk [vmem:[#allocation2] sm:$0xff] %vm111_vm1, %v1191_v6  ;;  %v1217_v13 = vmul.f32 %v3363_v32, %v2887_v18  ;;  %v1349_v51 = vmul.f32 %v3363_v32, %v3070_v50  ;;  %v1389_v31 = vmul.f32 %v3363_v32, %v3066_v48  ;;  %v1463_v20 = vmul.f32 %v3363_v32, %v3090_v62 }
 0x37f   :  { %v1305_v28 = vmul.f32 %v3363_v32, %v2998_v7 }
 0x384   :  { %v1197_v21 = vpop.permute.xlu0 %1196  ;;  %v1226_v60 = vld [vmem:[#allocation2 + $0x10] sm:$0xff] }
 0x385   :  { %v1212_v39 = vld [vmem:[#allocation2] sm:$0xff]  ;;  %1211 = vst.msk [vmem:[#allocation2 + $0x28] sm:$0xff] %vm102_vm2, %v1197_v21  ;;  %v1231_v15 = vpack.c.bf16 %v1226_v60, %v1226_v60  ;;  %v3370_v42 = vsel %vm102_vm2, %v1195_v37, %v1197_v21  ;;  %v1306_v34 = vmul.f32 %v1226_v60, %v2985_v1  ;;  %v1390_v54 = vmul.f32 %v1226_v60, %v2902_v23 }
 0x386   :  { %v1230_v29 = vpack.c.bf16 %v3363_v32, %v1212_v39  ;;  %v3379_v55 = vmul.f32 %v3370_v42, %v2998_v7  ;;  %v3387_v59 = vmul.f32 %v3370_v42, %v3002_v8  ;;  %v1216_v45 = vmul.f32 %v1212_v39, %v2882_v14 }
 0x387   :  { %1240 = vrot.lane.b32.xlu0 %v1231_v15, %s2833_s15  ;;  %1438 = vrot.lane.b32.xlu2 %v1231_v15, %s2832_s14  ;;  %v1311_v24 = vpack.c.bf16 %v1306_v34, %v1306_v34  ;;  %v1395_v49 = vpack.c.bf16 %v1390_v54, %v1390_v54  ;;  %v1266_v26 = vmul.f32 %v1226_v60, %v2981_v63 }
 0x388   :  { %1238 = vrot.lane.b32.xlu1 %v1230_v29, %s2833_s15  ;;  %v1312_v2 = vpack.c.bf16 %v3379_v55, %v3383_v58  ;;  %v1272_v46 = vpack.c.bf16 %v3387_v59, %v3393_v3  ;;  %v1350_v4 = vmul.f32 %v1226_v60, %v2929_v40  ;;  %v1219_v35 = vmul.f32 %v3370_v42, %v2887_v18 }
 0x389   :  { %v1348_v5 = vmul.f32 %v1212_v39, %v2931_v41  ;;  %v1220_v33 = vpack.c.bf16 %v1217_v13, %v1216_v45  ;;  %v1271_v10 = vpack.c.bf16 %v1266_v26, %v1266_v26  ;;  %v1464_v12 = vmul.f32 %v1226_v60, %v2966_v56 }
 0x38a   :  { %v1221_v9 = vpack.c.bf16 %v1219_v35, %v1218_v61  ;;  %v1355_v11 = vpack.c.bf16 %v1350_v4, %v1350_v4  ;;  %v1388_v17 = vmul.f32 %v1212_v39, %v2900_v22  ;;  %v1462_v19 = vmul.f32 %v1212_v39, %v2968_v57 }
 0x38b   :  { %1222 = vst [vmem:[#allocation4] sm:$0xff] %v1220_v33  ;;  %v1354_v47 = vpack.c.bf16 %v1349_v51, %v1348_v5  ;;  %v1469_v43 = vpack.c.bf16 %v1464_v12, %v1464_v12  ;;  %v1304_v25 = vmul.f32 %v1212_v39, %v2962_v53  ;;  %v1232_v36 = vpack.c.bf16 %v3370_v42, %v3373_v27 }
 0x38c   :  { %1223 = vst [vmem:[#allocation4 + $0x10] sm:$0xff] %v1221_v9  ;;  %v1394_v44 = vpack.c.bf16 %v1389_v31, %v1388_v17  ;;  %v1468_v52 = vpack.c.bf16 %v1463_v20, %v1462_v19  ;;  %v1229_v30 = vld [vmem:[#allocation2 + $0x28] sm:$0xff]  ;;  %v1264_v38 = vmul.f32 %v1212_v39, %v2983_v0  ;;  %v1265_v21 = vmul.f32 %v3363_v32, %v3002_v8 }
 0x38d   :  { %v1310_v16 = vpack.c.bf16 %v1305_v28, %v1304_v25  ;;  %v1233_v37 = vpack.c.bf16 %v1229_v30, %v1229_v30  ;;  %v1393_v6 = vmul.f32 %v1229_v30, %v2902_v23  ;;  %v1352_v34 = vmul.f32 %v3370_v42, %v3070_v50 }
 0x38e   :  { %v1270_v15 = vpack.c.bf16 %v1265_v21, %v1264_v38  ;;  %v1353_v39 = vmul.f32 %v1229_v30, %v2929_v40  ;;  %v1351_v54 = vmul.f32 %v3373_v27, %v2931_v41  ;;  %v1269_v61 = vmul.f32 %v1229_v30, %v2981_v63 }
 0x38f   :  { %1320 = vrot.lane.b32.xlu2 %v1311_v24, %s2837_s19  ;;  %1436 = vrot.lane.b32.xlu0 %v1230_v29, %s2832_s14  ;;  %v1397_v29 = vpack.c.bf16 %v1393_v6, %v1393_v6  ;;  %v1466_v12 = vmul.f32 %v3370_v42, %v3090_v62  ;;  %v1391_v19 = vmul.f32 %v3373_v27, %v2900_v22 }
 0x390   :  { %1404 = vrot.lane.b32.xlu1 %v1395_v49, %s2834_s16  ;;  %v1356_v32 = vpack.c.bf16 %v1352_v34, %v1351_v54  ;;  %v1357_v24 = vpack.c.bf16 %v1353_v39, %v1353_v39  ;;  %v1309_v49 = vmul.f32 %v1229_v30, %v2985_v1  ;;  %v1273_v9 = vpack.c.bf16 %v1269_v61, %v1269_v61 }
 0x391   :  { %v1467_v31 = vmul.f32 %v1229_v30, %v2966_v56  ;;  %v1465_v20 = vmul.f32 %v3373_v27, %v2968_v57 }
 0x392   :  { %v1313_v4 = vpack.c.bf16 %v1309_v49, %v1309_v49 }
 0x393   :  { %v1470_v28 = vpack.c.bf16 %v1466_v12, %v1465_v20  ;;  %v1471_v6 = vpack.c.bf16 %v1467_v31, %v1467_v31 }
 0x397   :  { %1280 = vrot.lane.b32.xlu2 %v1271_v10, %s2838_s20  ;;  %1364 = vrot.lane.b32.xlu0 %v1355_v11, %s2835_s17 }
 0x398   :  { %1362 = vrot.lane.b32.xlu1 %v1354_v47, %s2835_s17  ;;  %v1392_v47 = vmul.f32 %v3370_v42, %v3066_v48 }
 0x39a   :  { %v1396_v27 = vpack.c.bf16 %v1392_v47, %v1391_v19 }
 0x39f   :  { %1478 = vrot.lane.b32.xlu0 %v1469_v43, %s2836_s18  ;;  %1402 = vrot.lane.b32.xlu2 %v1394_v44, %s2834_s16 }
 0x3a0   :  { %1476 = vrot.lane.b32.xlu1 %v1468_v52, %s2836_s18 }
 0x3a7   :  { %1318 = vrot.lane.b32.xlu0 %v1310_v16, %s2837_s19  ;;  %1242 = vrot.lane.b32.xlu2 %v1232_v36, %s2833_s15 }
 0x3a8   :  { %1244 = vrot.lane.b32.xlu1 %v1233_v37, %s2833_s15 }
 0x3a9   :  { %v1563_v60 = vpop.permute.xlu2 %1562 }
 0x3aa   :  { %1577 = vst.msk [vmem:[#allocation2 + $0x18] sm:$0xff] %vm111_vm1, %v1563_v60 }
 0x3af   :  { %1278 = vrot.lane.b32.xlu0 %v1270_v15, %s2838_s20  ;;  %1408 = vrot.lane.b32.xlu2 %v1397_v29, %s2834_s16 }
 0x3b0   :  { %1440 = vrot.lane.b32.xlu1 %v1232_v36, %s2832_s14 }
 0x3b1   :  { %v3483_v17 = vld [vmem:[#allocation2 + $0x18] sm:$0xff] }
 0x3b2   :  { %v3504_v52 = vmul.f32 %v3483_v17, %v2983_v0  ;;  %v1586_v15 = vmul.f32 %v3483_v17, %v2882_v14 }
 0x3b7   :  { %1442 = vrot.lane.b32.xlu0 %v1233_v37, %s2832_s14  ;;  %1366 = vrot.lane.b32.xlu2 %v1356_v32, %s2835_s17  ;;  %v3516_v37 = vmul.f32 %v3483_v17, %v2968_v57 }
 0x3b8   :  { %1368 = vrot.lane.b32.xlu1 %v1357_v24, %s2835_s17 }
 0x3b9   :  { %v1559_v45 = vpop.permute.xlu1 %1558  ;;  %v1561_v13 = vpop.permute.xlu0 %1560 }
 0x3ba   :  { %1574 = vst.msk [vmem:[#allocation2] sm:$0xff] %vm111_vm1, %v1559_v45  ;;  %v3452_v26 = vsel %vm102_vm2, %v1559_v45, %v1561_v13  ;;  %vm3763_vm1 = vcmask 130048  }
 0x3bb   :  { %1575 = vst [vmem:[#allocation2 + $0x8] sm:$0xff] %v3452_v26  ;;  %v3500_v42 = vmul.f32 %v3452_v26, %v3090_v62  ;;  %v1757_v24 = vmul.f32 %v3452_v26, %v3066_v48  ;;  %v1717_v49 = vmul.f32 %v3452_v26, %v3070_v50 }
 0x3bc   :  { %1576 = vst.msk [vmem:[#allocation2 + $0x10] sm:$0xff] %vm102_vm2, %v1561_v13 }
 0x3bf   :  { %1324 = vrot.lane.b32.xlu0 %v1313_v4, %s2837_s19  ;;  %v1673_v4 = vmul.f32 %v3452_v26, %v2998_v7 }
 0x3c1   :  { %v1565_v35 = vpop.permute.xlu1 %1564  ;;  %v3458_v5 = vld [vmem:[#allocation2] sm:$0xff] }
 0x3c2   :  { %v3461_v33 = vsel %vm102_vm2, %v1563_v60, %v1565_v35  ;;  %v3465_v51 = vpack.c.bf16 %v3452_v26, %v3458_v5  ;;  %1579 = vst.msk [vmem:[#allocation2 + $0x28] sm:$0xff] %vm102_vm2, %v1565_v35  ;;  %v3492_v43 = vmul.f32 %v3458_v5, %v2968_v57  ;;  %v1581_v30 = vld [vmem:[#allocation2 + $0x8] sm:$0xff]  ;;  %v1584_v38 = vmul.f32 %v3458_v5, %v2882_v14  ;;  %vm3764_vm2 = vmmov %vm3763_vm1 }
 0x3c3   :  { %v3468_v10 = vld [vmem:[#allocation2 + $0x10] sm:$0xff]  ;;  %v3496_v44 = vmul.f32 %v3461_v33, %v3002_v8  ;;  %v3508_v25 = vmul.f32 %v3461_v33, %v3090_v62  ;;  %v1585_v21 = vmul.f32 %v1581_v30, %v2887_v18  ;;  %v1587_v29 = vmul.f32 %v3461_v33, %v2887_v18 }
 0x3c4   :  { %v3472_v11 = vpack.c.bf16 %v3468_v10, %v3468_v10  ;;  %1804 = vrot.lane.b32.xlu2 %v3465_v51, %s2832_s14  ;;  %v1836_v16 = vpack.c.bf16 %v3500_v42, %v3492_v43  ;;  %v1634_v60 = vmul.f32 %v3468_v10, %v2981_v63  ;;  %v1718_v57 = vmul.f32 %v3468_v10, %v2929_v40 }
 0x3c5   :  { %v1640_v36 = vpack.c.bf16 %v3496_v44, %v3504_v52  ;;  %v1838_v62 = vpack.c.bf16 %v3508_v25, %v3516_v37  ;;  %v1588_v34 = vpack.c.bf16 %v1585_v21, %v1584_v38  ;;  %v1589_v39 = vpack.c.bf16 %v1587_v29, %v1586_v15 }
 0x3c6   :  { %1806 = vrot.lane.b32.xlu1 %v3472_v11, %s2832_s14  ;;  %v1639_v54 = vpack.c.bf16 %v1634_v60, %v1634_v60  ;;  %v1723_v32 = vpack.c.bf16 %v1718_v57, %v1718_v57  ;;  %v1756_v14 = vmul.f32 %v3458_v5, %v2900_v22  ;;  %v1716_v18 = vmul.f32 %v3458_v5, %v2931_v41 }
 0x3c7   :  { %1284 = vrot.lane.b32.xlu0 %v1273_v9, %s2838_s20  ;;  %1590 = vst [vmem:[#allocation4 + $0x8] sm:$0xff] %v1588_v34  ;;  %v1672_v58 = vmul.f32 %v3458_v5, %v2962_v53  ;;  %v3562_v61 = vpack.c.bf16 %v3461_v33, %v3483_v17  ;;  %v1759_v30 = vmul.f32 %v3483_v17, %v2900_v22 }
 0x3c8   :  { %1591 = vst [vmem:[#allocation4 + $0x18] sm:$0xff] %v1589_v39  ;;  %v1762_v45 = vpack.c.bf16 %v1757_v24, %v1756_v14  ;;  %v1722_v13 = vpack.c.bf16 %v1717_v49, %v1716_v18  ;;  %v1633_v38 = vmul.f32 %v3452_v26, %v3002_v8  ;;  %v1720_v8 = vmul.f32 %v3461_v33, %v3070_v50 }
 0x3c9   :  { %v1678_v35 = vpack.c.bf16 %v1673_v4, %v1672_v58  ;;  %v3564_v9 = vld [vmem:[#allocation2 + $0x28] sm:$0xff]  ;;  %v1719_v15 = vmul.f32 %v3483_v17, %v2931_v41  ;;  %v1676_v50 = vmul.f32 %v3461_v33, %v2998_v7  ;;  %v1675_v49 = vmul.f32 %v3483_v17, %v2962_v53 }
 0x3ca   :  { %v1721_v3 = vmul.f32 %v3564_v9, %v2929_v40  ;;  %v1799_v19 = vpack.c.bf16 %v3564_v9, %v3564_v9  ;;  %v1761_v40 = vmul.f32 %v3564_v9, %v2902_v23  ;;  %v1637_v24 = vmul.f32 %v3564_v9, %v2981_v63 }
 0x3cb   :  { %v1724_v39 = vpack.c.bf16 %v1720_v8, %v1719_v15  ;;  %v1835_v42 = vmul.f32 %v3564_v9, %v2966_v56 }
 0x3cc   :  { %1480 = vrot.lane.b32.xlu2 %v1470_v28, %s2836_s18  ;;  %v1725_v12 = vpack.c.bf16 %v1721_v3, %v1721_v3  ;;  %v1632_v28 = vmul.f32 %v3458_v5, %v2983_v0  ;;  %v1765_v21 = vpack.c.bf16 %v1761_v40, %v1761_v40 }
 0x3ce   :  { %1482 = vrot.lane.b32.xlu1 %v1471_v6, %s2836_s18  ;;  %v1638_v60 = vpack.c.bf16 %v1633_v38, %v1632_v28 }
 0x3cf   :  { %1406 = vrot.lane.b32.xlu0 %v1396_v27, %s2834_s16  ;;  %v1760_v27 = vmul.f32 %v3461_v33, %v3066_v48  ;;  %v1641_v33 = vpack.c.bf16 %v1637_v24, %v1637_v24 }
 0x3d1   :  { %v1764_v6 = vpack.c.bf16 %v1760_v27, %v1759_v30 }
 0x3d4   :  { %1732 = vrot.lane.b32.xlu2 %v1723_v32, %s2835_s17 }
 0x3d6   :  { %1322 = vrot.lane.b32.xlu1 %v1312_v2, %s2837_s19  ;;  %v1758_v2 = vmul.f32 %v3468_v10, %v2902_v23  ;;  %v1677_v23 = vmul.f32 %v3564_v9, %v2985_v1 }
 0x3d7   :  { %1648 = vrot.lane.b32.xlu0 %v1639_v54, %s2838_s20 }
 0x3d8   :  { %v1763_v47 = vpack.c.bf16 %v1758_v2, %v1758_v2  ;;  %v1681_v29 = vpack.c.bf16 %v1677_v23, %v1677_v23  ;;  %v1680_v2 = vpack.c.bf16 %v1676_v50, %v1675_v49 }
 0x3dc   :  { %1770 = vrot.lane.b32.xlu2 %v1762_v45, %s2834_s16 }
 0x3de   :  { %1282 = vrot.lane.b32.xlu1 %v1272_v46, %s2838_s20  ;;  %v1674_v46 = vmul.f32 %v3468_v10, %v2985_v1 }
 0x3df   :  { %1730 = vrot.lane.b32.xlu0 %v1722_v13, %s2835_s17 }
 0x3e0   :  { %v1679_v31 = vpack.c.bf16 %v1674_v46, %v1674_v46 }
 0x3e1   :  { %v1439_v55 = vpop.permute.xlu2 %1438 }
 0x3e2   :  { %v1445_v54 = vrot.slane %v1439_v55, 4 }
 0x3e4   :  { %1686 = vrot.lane.b32.xlu2 %v1678_v35, %s2837_s19 }
 0x3e6   :  { %1772 = vrot.lane.b32.xlu1 %v1763_v47, %s2834_s16 }
 0x3e7   :  { %1808 = vrot.lane.b32.xlu0 %v3562_v61, %s2832_s14 }
 0x3e9   :  { %v3570_v59 = vpop.permute.xlu2 %1320 }
 0x3ec   :  { %1810 = vrot.lane.b32.xlu2 %v1799_v19, %s2832_s14 }
 0x3ee   :  { %1688 = vrot.lane.b32.xlu1 %v1679_v31, %s2837_s19  ;;  %v1832_v31 = vmul.f32 %v3468_v10, %v2966_v56 }
 0x3ef   :  { %1736 = vrot.lane.b32.xlu0 %v1725_v12, %s2835_s17 }
 0x3f0   :  { %v1837_v28 = vpack.c.bf16 %v1832_v31, %v1832_v31  ;;  %v3680_v31 = vld [vmem:[#allocation10] sm:$0xff] }
 0x3f1   :  { %v3581_v20 = vpop.permute.xlu2 %1280 }
 0x3f2   :  { %v1287_v9 = vrot.slane %v3581_v20, 4 }
 0x3f4   :  { %1776 = vrot.lane.b32.xlu2 %v1765_v21, %s2834_s16 }
 0x3f6   :  { %1646 = vrot.lane.b32.xlu1 %v1638_v60, %s2838_s20 }
 0x3f7   :  { %1774 = vrot.lane.b32.xlu0 %v1764_v6, %s2834_s16 }
 0x3f9   :  { %v1241_v48 = vpop.permute.xlu0 %1240  ;;  %v1403_v57 = vpop.permute.xlu2 %1402 }
 0x3fa   :  { %v1247_v0 = vrot.slane %v1241_v48, 4  ;;  %v1239_v5 = vpop.permute.xlu1 %1238  ;;  %v1410_v41 = vrot.slane %v1403_v57, 4 }
 0x3fb   :  { %v1246_v22 = vrot.slane %v1239_v5, 4 }
 0x3fc   :  { %1692 = vrot.lane.b32.xlu2 %v1681_v29, %s2837_s19 }
 0x3fd   :  { %v1250_v26 = vsel %vm163_vm7, %v1246_v22, %v1247_v0 }
 0x3fe   :  { %v1251_v34 = vsel %vm165_vm9, %v1239_v5, %v1250_v26  ;;  %1734 = vrot.lane.b32.xlu1 %v1724_v39, %s2835_s17 }
 0x3ff   :  { %1256 = vst [vmem:[#allocation4 + $0x20] sm:$0xff] %v1251_v34  ;;  %1606 = vrot.lane.b32.xlu0 %v3465_v51, %s2833_s15 }
 0x401   :  { %v1437_v1 = vpop.permute.xlu0 %1436  ;;  %v1243_v51 = vpop.permute.xlu2 %1242 }
 0x402   :  { %v1444_v32 = vrot.slane %v1437_v1, 4  ;;  %v1405_v14 = vpop.permute.xlu1 %1404  ;;  %v1248_v30 = vrot.slane %v1243_v51, 4 }
 0x403   :  { %v1411_v18 = vrot.slane %v1405_v14, 4 }
 0x404   :  { %v1448_v45 = vsel %vm163_vm7, %v1444_v32, %v1445_v54  ;;  %1608 = vrot.lane.b32.xlu2 %v3472_v11, %s2833_s15 }
 0x405   :  { %v1449_v13 = vsel %vm414_vm8, %v1437_v1, %v1448_v45  ;;  %v1414_v58 = vsel %vm163_vm7, %v1410_v41, %v1411_v18 }
 0x406   :  { %1454 = vst [vmem:[#allocation4 + $0xe0] sm:$0xff] %v1449_v13  ;;  %v1415_v7 = vsel %vm379_vm13, %v1403_v57, %v1414_v58  ;;  %1652 = vrot.lane.b32.xlu1 %v1641_v33, %s2838_s20 }
 0x407   :  { %1420 = vst [vmem:[#allocation4 + $0xc0] sm:$0xff] %v1415_v7  ;;  %1690 = vrot.lane.b32.xlu0 %v1680_v2, %s2837_s19 }
 0x409   :  { %v1365_v53 = vpop.permute.xlu0 %1364  ;;  %v3624_v47 = vpop.permute.xlu2 %1408 }
 0x40a   :  { %v1371_v63 = vrot.slane %v1365_v53, 4  ;;  %v1363_v17 = vpop.permute.xlu1 %1362  ;;  %v1413_v33 = vrot.slane %v3624_v47, 4 }
 0x40b   :  { %v1370_v55 = vrot.slane %v1363_v17, 4 }
 0x40c   :  { %1844 = vrot.lane.b32.xlu2 %v1836_v16, %s2836_s18  ;;  %v1327_v16 = vrot.slane %v3570_v59, 4 }
 0x40d   :  { %v1374_v4 = vsel %vm163_vm7, %v1370_v55, %v1371_v63  ;;  %v2548_v1 = vld [vmem:[#allocation4 + $0xe0] sm:$0xf]  ;;  %v2648_v54 = vld [vmem:[#allocation4 + $0xe4] sm:$0xf] }
 0x40e   :  { %v1375_v35 = vsel %vm329_vm10, %v1363_v17, %v1374_v4  ;;  %1610 = vrot.lane.b32.xlu1 %v3562_v61, %s2833_s15 }
 0x40f   :  { %1380 = vst [vmem:[#allocation4 + $0xa0] sm:$0xff] %v1375_v35  ;;  %1612 = vrot.lane.b32.xlu0 %v1799_v19, %s2833_s15 }
 0x411   :  { %v1479_v11 = vpop.permute.xlu0 %1478  ;;  %v1367_v43 = vpop.permute.xlu2 %1366 }
 0x412   :  { %v1485_v3 = vrot.slane %v1479_v11, 4  ;;  %v1477_v46 = vpop.permute.xlu1 %1476  ;;  %v1372_v22 = vrot.slane %v1367_v43, 4 }
 0x413   :  { %v1484_v12 = vrot.slane %v1477_v46, 4 }
 0x414   :  { %1650 = vrot.lane.b32.xlu2 %v1640_v36, %s2838_s20  ;;  %v1839_v36 = vpack.c.bf16 %v1835_v42, %v1835_v42 }
 0x415   :  { %v1488_v27 = vsel %vm163_vm7, %v1484_v12, %v1485_v3 }
 0x416   :  { %v1489_v40 = vsel %vm463_vm11, %v1477_v46, %v1488_v27  ;;  %1846 = vrot.lane.b32.xlu1 %v1837_v28, %s2836_s18  ;;  %v2532_v28 = vld [vmem:[#allocation4 + $0xc0] sm:$0xf] }
 0x417   :  { %1494 = vst [vmem:[#allocation4 + $0x100] sm:$0xff] %v1489_v40  ;;  %1848 = vrot.lane.b32.xlu0 %v1838_v62, %s2836_s18 }
 0x419   :  { %v1319_v10 = vpop.permute.xlu0 %1318 }
 0x41a   :  { %v1326_v61 = vrot.slane %v1319_v10, 4  ;;  %v1245_v19 = vpop.permute.xlu1 %1244 }
 0x41b   :  { %v1249_v38 = vrot.slane %v1245_v19, 4 }
 0x41c   :  { %v1330_v44 = vsel %vm163_vm7, %v1326_v61, %v1327_v16  ;;  %1850 = vrot.lane.b32.xlu2 %v1839_v36, %s2836_s18  ;;  %v1903_v16 = vunpack.c.h.b16 %v3680_v31 }
 0x41d   :  { %v1331_v52 = vsel %vm275_vm14, %v1319_v10, %v1330_v44  ;;  %v1252_v25 = vsel %vm163_vm7, %v1248_v30, %v1249_v38  ;;  %v2644_v10 = vld [vmem:[#allocation4 + $0xc4] sm:$0xf] }
 0x41e   :  { %1336 = vst [vmem:[#allocation4 + $0x60] sm:$0xff] %v1331_v52  ;;  %v1253_v37 = vsel %vm165_vm9, %v1243_v51, %v1252_v25  ;;  %v1805_v56 = vpop.permute.xlu2 %1804  ;;  %v2564_v19 = vld [vmem:[#allocation4 + $0x100] sm:$0xf]  ;;  %v2652_v44 = vld [vmem:[#allocation4 + $0x104] sm:$0xf] }
 0x41f   :  { %1257 = vst [vmem:[#allocation4 + $0x30] sm:$0xff] %v1253_v37  ;;  %v1812_v45 = vrot.slane %v1805_v56, 4 }
 0x421   :  { %v1279_v62 = vpop.permute.xlu0 %1278 }
 0x422   :  { %v1286_v59 = vrot.slane %v1279_v62, 4  ;;  %v1441_v6 = vpop.permute.xlu1 %1440 }
 0x423   :  { %v1446_v0 = vrot.slane %v1441_v6, 4 }
 0x424   :  { %v1290_v21 = vsel %vm163_vm7, %v1286_v59, %v1287_v9 }
 0x425   :  { %v1291_v60 = vsel %vm223_vm12, %v1279_v62, %v1290_v21  ;;  %v2516_v21 = vld [vmem:[#allocation4 + $0xa0] sm:$0xf] }
 0x426   :  { %1296 = vst [vmem:[#allocation4 + $0x40] sm:$0xff] %v1291_v60  ;;  %v1481_v48 = vpop.permute.xlu2 %1480  ;;  %v2640_v60 = vld [vmem:[#allocation4 + $0xa4] sm:$0xf] }
 0x427   :  { %v1486_v17 = vrot.slane %v1481_v48, 4 }
 0x429   :  { %v1443_v23 = vpop.permute.xlu0 %1442 }
 0x42a   :  { %v1447_v5 = vrot.slane %v1443_v23, 4  ;;  %v1369_v57 = vpop.permute.xlu1 %1368 }
 0x42b   :  { %v1373_v8 = vrot.slane %v1369_v57, 4 }
 0x42c   :  { %v1450_v26 = vsel %vm163_vm7, %v1446_v0, %v1447_v5 }
 0x42d   :  { %v1451_v15 = vsel %vm414_vm8, %v1441_v6, %v1450_v26  ;;  %v1376_v20 = vsel %vm163_vm7, %v1372_v22, %v1373_v8  ;;  %v2638_v8 = vld [vmem:[#allocation4 + $0x8c] sm:$0xf0]  ;;  %v2502_v26 = vld [vmem:[#allocation4 + $0x90] sm:$0xf0] }
 0x42e   :  { %1455 = vst [vmem:[#allocation4 + $0xf0] sm:$0xff] %v1451_v15  ;;  %v1377_v29 = vsel %vm329_vm10, %v1367_v43, %v1376_v20  ;;  %v3661_v34 = vpop.permute.xlu2 %1732 }
 0x42f   :  { %1381 = vst [vmem:[#allocation4 + $0xb0] sm:$0xff] %v1377_v29  ;;  %v1739_v23 = vrot.slane %v3661_v34, 4 }
 0x431   :  { %v1325_v39 = vpop.permute.xlu0 %1324 }
 0x432   :  { %v1329_v27 = vrot.slane %v1325_v39, 4 }
 0x435   :  { %v2650_v50 = vld [vmem:[#allocation4 + $0xec] sm:$0xf0]  ;;  %v2550_v32 = vld [vmem:[#allocation4 + $0xf0] sm:$0xf0] }
 0x436   :  { %v2549_v14 = vor.u32 %v2650_v50, %v2548_v1  ;;  %v2553_v41 = vor.u32 %v2648_v54, %v2550_v32  ;;  %v3663_v18 = vpop.permute.xlu2 %1770  ;;  %v2642_v52 = vld [vmem:[#allocation4 + $0xac] sm:$0xf0]  ;;  %v2500_v1 = vld [vmem:[#allocation4 + $0x80] sm:$0xf]  ;;  %v2636_v50 = vld [vmem:[#allocation4 + $0x84] sm:$0xf] }
 0x437   :  { %v2517_v5 = vor.u32 %v2642_v52, %v2516_v21  ;;  %v2501_v54 = vor.u32 %v2638_v8, %v2500_v1  ;;  %v2505_v32 = vor.u32 %v2636_v50, %v2502_v26  ;;  %v2620_v52 = vld [vmem:[#allocation4 + $0x4] sm:$0xf] }
 0x438   :  { %2090 = vmatpush.bf16.msra.mxu2 %v2549_v14  ;;  %2116 = vmatpush.bf16.msra.mxu0 %v2553_v41  ;;  %v1807_v49 = vpop.permute.xlu1 %1806 }
 0x439   :  { %v3665_v24 = vpop.permute.xlu0 %1284  ;;  %v1813_v51 = vrot.slane %v1807_v49, 4 }
 0x43a   :  { %v1289_v15 = vrot.slane %v3665_v24, 4 }
 0x43b   :  { %v1816_v13 = vsel %vm163_vm7, %v1812_v45, %v1813_v51  ;;  %v2484_v45 = vld [vmem:[#allocation4 + $0x60] sm:$0xf]  ;;  %v2632_v51 = vld [vmem:[#allocation4 + $0x64] sm:$0xf] }
 0x43c   :  { %v1817_v58 = vsel %vm414_vm8, %v1805_v56, %v1816_v13  ;;  %v2518_v56 = vld [vmem:[#allocation4 + $0xb0] sm:$0xf0] }
 0x43d   :  { %1822 = vst [vmem:[#allocation4 + $0xe8] sm:$0xff] %v1817_v58  ;;  %v2521_v57 = vor.u32 %v2640_v60, %v2518_v56  ;;  %v2438_v56 = vld [vmem:[#allocation4 + $0x10] sm:$0xf0] }
 0x43e   :  { %v3669_v2 = vpop.permute.xlu2 %1686  ;;  %v2441_v26 = vor.u32 %v2620_v52, %v2438_v56  ;;  %v2508_v56 = vld [vmem:[#allocation4 + $0x88] sm:$0xf] }
 0x440   :  { %v1483_v63 = vpop.permute.xlu1 %1482 }
 0x441   :  { %v1407_v7 = vpop.permute.xlu0 %1406  ;;  %v1487_v55 = vrot.slane %v1483_v63, 4 }
 0x442   :  { %v1412_v53 = vrot.slane %v1407_v7, 4 }
 0x443   :  { %v1490_v11 = vsel %vm163_vm7, %v1486_v17, %v1487_v55  ;;  %v1778_v17 = vrot.slane %v3663_v18, 4 }
 0x444   :  { %v1416_v4 = vsel %vm163_vm7, %v1412_v53, %v1413_v33  ;;  %v1491_v3 = vsel %vm463_vm11, %v1481_v48, %v1490_v11  ;;  %v3687_v48 = vpack.c.b16 %v1903_v16, %v1903_v16  ;;  %v2454_v16 = vld [vmem:[#allocation4 + $0x30] sm:$0xf0]  ;;  %v2649_v21 = vld [vmem:[#allocation4 + $0xec] sm:$0xf] }
 0x445   :  { %v1417_v35 = vsel %vm379_vm13, %v1407_v7, %v1416_v4  ;;  %1495 = vst [vmem:[#allocation4 + $0x110] sm:$0xff] %v1491_v3  ;;  %v2468_v3 = vld [vmem:[#allocation4 + $0x40] sm:$0xf] }
 0x446   :  { %1421 = vst [vmem:[#allocation4 + $0xd0] sm:$0xff] %v1417_v35  ;;  %v3676_v46 = vpop.permute.xlu2 %1810 }
 0x447   :  { %v1815_v13 = vrot.slane %v3676_v46, 4 }
 0x448   :  { %v1323_v47 = vpop.permute.xlu1 %1322 }
 0x449   :  { %v3678_v12 = vpop.permute.xlu0 %1648  ;;  %v1328_v40 = vrot.slane %v1323_v47, 4 }
 0x44a   :  { %v1655_v1 = vrot.slane %v3678_v12, 4 }
 0x44b   :  { %v1332_v61 = vsel %vm163_vm7, %v1328_v40, %v1329_v27  ;;  %v2628_v27 = vld [vmem:[#allocation4 + $0x44] sm:$0xf] }
 0x44c   :  { %v1333_v25 = vsel %vm275_vm14, %v1323_v47, %v1332_v61  ;;  %v2654_v36 = vld [vmem:[#allocation4 + $0x10c] sm:$0xf0]  ;;  %v2566_v37 = vld [vmem:[#allocation4 + $0x110] sm:$0xf0] }
 0x44d   :  { %v2646_v43 = vld [vmem:[#allocation4 + $0xcc] sm:$0xf0]  ;;  %v2534_v42 = vld [vmem:[#allocation4 + $0xd0] sm:$0xf0]  ;;  %1337 = vst [vmem:[#allocation4 + $0x70] sm:$0xff] %v1333_v25  ;;  %v2565_v62 = vor.u32 %v2654_v36, %v2564_v19  ;;  %v2569_v9 = vor.u32 %v2652_v44, %v2566_v37 }
 0x44e   :  { %v2533_v30 = vor.u32 %v2646_v43, %v2532_v28  ;;  %v2537_v38 = vor.u32 %v2644_v10, %v2534_v42  ;;  %v3685_v59 = vpop.permute.xlu2 %1776  ;;  %v2626_v42 = vld [vmem:[#allocation4 + $0x2c] sm:$0xf0]  ;;  %v2452_v19 = vld [vmem:[#allocation4 + $0x20] sm:$0xf] }
 0x44f   :  { %2110 = vmatpush.bf16.msrb.mxu1 %v2565_v62  ;;  %v2622_v44 = vld [vmem:[#allocation4 + $0xc] sm:$0xf0]  ;;  %v2453_v36 = vor.u32 %v2626_v42, %v2452_v19  ;;  %v2556_v62 = vld [vmem:[#allocation4 + $0xe8] sm:$0xf] }
 0x450   :  { %2091 = vmatpush.bf16.msra.mxu2 %v2533_v30  ;;  %2117 = vmatpush.bf16.msra.mxu0 %v2537_v38  ;;  %v1283_v22 = vpop.permute.xlu1 %1282  ;;  %v2624_v30 = vld [vmem:[#allocation4 + $0x24] sm:$0xf]  ;;  %v2436_v38 = vld [vmem:[#allocation4] sm:$0xf] }
 0x451   :  { %v1731_v6 = vpop.permute.xlu0 %1730  ;;  %v1288_v20 = vrot.slane %v1283_v22, 4  ;;  %v2457_v37 = vor.u32 %v2624_v30, %v2454_v16  ;;  %v2437_v8 = vor.u32 %v2622_v44, %v2436_v38 }
 0x452   :  { %v1738_v0 = vrot.slane %v1731_v6, 4  ;;  %2578 = vmatmul.msk.bf16.vlgmr.msrb.gmra.mxu1 %vm3763_vm1, %v3687_v48 }
 0x453   :  { %2136 = vmatpush.bf16.msra.mxu1 %v2569_v9  ;;  %v1292_v34 = vsel %vm163_vm7, %v1288_v20, %v1289_v15 }
 0x454   :  { %v1742_v29 = vsel %vm163_vm7, %v1738_v0, %v1739_v23  ;;  %2092 = vmatpush.bf16.msra.mxu2 %v2517_v5  ;;  %2118 = vmatpush.bf16.msra.mxu0 %v2521_v57  ;;  %v1293_v14 = vsel %vm223_vm12, %v1283_v22, %v1292_v34  ;;  %v2634_v41 = vld [vmem:[#allocation4 + $0x6c] sm:$0xf0]  ;;  %v2486_v24 = vld [vmem:[#allocation4 + $0x70] sm:$0xf0]  ;;  %v1902_v23 = vunpack.c.l.b16 %v3680_v31  ;;  %v1781_v31 = vrot.slane %v3685_v59, 4 }
 0x455   :  { %v1743_v39 = vsel %vm329_vm10, %v1731_v6, %v1742_v29  ;;  %1297 = vst [vmem:[#allocation4 + $0x50] sm:$0xff] %v1293_v14  ;;  %v2485_v7 = vor.u32 %v2634_v41, %v2484_v45  ;;  %v2489_v33 = vor.u32 %v2632_v51, %v2486_v24 }
 0x456   :  { %1748 = vst [vmem:[#allocation4 + $0xa8] sm:$0xff] %v1743_v39  ;;  %v3698_v63 = vpop.permute.xlu2 %1692  ;;  %v3715_v20 = vpack.c.b16 %v1902_v23, %v1902_v23 }
 0x458   :  { %2093 = vmatpush.bf16.msra.mxu2 %v2501_v54  ;;  %2119 = vmatpush.bf16.msra.mxu0 %v2505_v32  ;;  %v1773_v53 = vpop.permute.xlu1 %1772 }
 0x459   :  { %v1809_v49 = vpop.permute.xlu0 %1808  ;;  %v1779_v55 = vrot.slane %v1773_v53, 4 }
 0x45a   :  { %v1814_v58 = vrot.slane %v1809_v49, 4 }
 0x45b   :  { %v1782_v11 = vsel %vm163_vm7, %v1778_v17, %v1779_v55 }
 0x45c   :  { %v1818_v4 = vsel %vm163_vm7, %v1814_v58, %v1815_v13  ;;  %2094 = vmatpush.bf16.msra.mxu2 %v2485_v7  ;;  %2120 = vmatpush.bf16.msra.mxu0 %v2489_v33  ;;  %v1783_v46 = vsel %vm379_vm13, %v3663_v18, %v1782_v11  ;;  %v2630_v47 = vld [vmem:[#allocation4 + $0x4c] sm:$0xf0]  ;;  %v2470_v40 = vld [vmem:[#allocation4 + $0x50] sm:$0xf0]  ;;  %v1694_v18 = vrot.slane %v3669_v2, 4 }
 0x45d   :  { %v1819_v35 = vsel %vm414_vm8, %v1809_v49, %v1818_v4  ;;  %1788 = vst [vmem:[#allocation4 + $0xc8] sm:$0xff] %v1783_v46  ;;  %v2469_v28 = vor.u32 %v2630_v47, %v2468_v3  ;;  %v2473_v43 = vor.u32 %v2628_v27, %v2470_v40  ;;  %v1697_v46 = vrot.slane %v3698_v63, 4  ;;  %v2524_v16 = vld [vmem:[#allocation4 + $0xa8] sm:$0xf]  ;;  %v2641_v30 = vld [vmem:[#allocation4 + $0xac] sm:$0xf]  ;;  %vm3766_vm8 = vmmov %vm3763_vm1 }
 0x45e   :  { %1823 = vst [vmem:[#allocation4 + $0xf8] sm:$0xff] %v1819_v35  ;;  %v1609_v9 = vpop.permute.xlu2 %1608 }
 0x45f   :  { %v1615_v41 = vrot.slane %v1609_v9, 4 }
 0x460   :  { %2095 = vmatpush.bf16.msra.mxu2 %v2469_v28  ;;  %2121 = vmatpush.bf16.msra.mxu0 %v2473_v43  ;;  %v1689_v61 = vpop.permute.xlu1 %1688 }
 0x461   :  { %v3706_v10 = vpop.permute.xlu0 %1736  ;;  %v1695_v25 = vrot.slane %v1689_v61, 4 }
 0x462   :  { %2579 = vmatmul.msk.bf16.vlgmr.msra.gmra.mxu1 %vm3764_vm2, %v3687_v48  ;;  %v1741_v49 = vrot.slane %v3706_v10, 4 }
 0x463   :  { %v1698_v0 = vsel %vm163_vm7, %v1694_v18, %v1695_v25  ;;  %v2639_v18 = vld [vmem:[#allocation4 + $0x94] sm:$0xf0]  ;;  %v2510_v25 = vld [vmem:[#allocation4 + $0x98] sm:$0xf0] }
 0x464   :  { %2096 = vmatpush.bf16.msra.mxu2 %v2453_v36  ;;  %2122 = vmatpush.bf16.msra.mxu0 %v2457_v37  ;;  %v1699_v22 = vsel %vm275_vm14, %v3669_v2, %v1698_v0  ;;  %v2540_v13 = vld [vmem:[#allocation4 + $0xc8] sm:$0xf]  ;;  %v2645_v33 = vld [vmem:[#allocation4 + $0xcc] sm:$0xf] }
 0x465   :  { %v2651_v6 = vld [vmem:[#allocation4 + $0xf4] sm:$0xf0]  ;;  %v2558_v60 = vld [vmem:[#allocation4 + $0xf8] sm:$0xf0]  ;;  %1704 = vst [vmem:[#allocation4 + $0x68] sm:$0xff] %v1699_v22 }
 0x466   :  { %v2557_v5 = vor.u32 %v2651_v6, %v2556_v62  ;;  %v2561_v57 = vor.u32 %v2649_v21, %v2558_v60  ;;  %v3725_v32 = vpop.permute.xlu2 %1844  ;;  %v2637_v62 = vld [vmem:[#allocation4 + $0x8c] sm:$0xf]  ;;  %v2509_v6 = vor.u32 %v2639_v18, %v2508_v56 }
 0x467   :  { %v2513_v21 = vor.u32 %v2637_v62, %v2510_v25 }
 0x468   :  { %2142 = vmatpush.bf16.msrb.mxu3 %v2557_v5  ;;  %2168 = vmatpush.bf16.msrb.mxu1 %v2561_v57  ;;  %v1647_v39 = vpop.permute.xlu1 %1646 }
 0x469   :  { %v1775_v15 = vpop.permute.xlu0 %1774  ;;  %2097 = vmatpush.bf16.msra.mxu2 %v2437_v8  ;;  %2123 = vmatpush.bf16.msra.mxu0 %v2441_v26  ;;  %v1654_v50 = vrot.slane %v1647_v39, 4 }
 0x46a   :  { %v1780_v29 = vrot.slane %v1775_v15, 4 }
 0x46b   :  { %v1658_v54 = vsel %vm163_vm7, %v1654_v50, %v1655_v1 }
 0x46c   :  { %v1784_v34 = vsel %vm163_vm7, %v1780_v29, %v1781_v31  ;;  %2098 = vmatmul.bf16.vlgmr.msra.gmra.mxu2 %v3715_v20  ;;  %2124 = vmatmul.bf16.vlgmr.msra.gmra.mxu0 %v3715_v20  ;;  %v1659_v59 = vsel %vm223_vm12, %v1647_v39, %v1658_v54  ;;  %v2492_v60 = vld [vmem:[#allocation4 + $0x68] sm:$0xf]  ;;  %v2633_v0 = vld [vmem:[#allocation4 + $0x6c] sm:$0xf] }
 0x46d   :  { %v1785_v2 = vsel %vm379_vm13, %v1775_v15, %v1784_v34  ;;  %1664 = vst [vmem:[#allocation4 + $0x48] sm:$0xff] %v1659_v59  ;;  %v1852_v34 = vrot.slane %v3725_v32, 4 }
 0x46e   :  { %1789 = vst [vmem:[#allocation4 + $0xd8] sm:$0xff] %v1785_v2  ;;  %v1651_v11 = vpop.permute.xlu2 %1650 }
 0x46f   :  { %v1656_v40 = vrot.slane %v1651_v11, 4 }
 0x470   :  { %v1735_v24 = vpop.permute.xlu1 %1734 }
 0x471   :  { %v1607_v14 = vpop.permute.xlu0 %1606  ;;  %v1740_v45 = vrot.slane %v1735_v24, 4 }
 0x472   :  { %v1614_v12 = vrot.slane %v1607_v14, 4 }
 0x473   :  { %v1744_v17 = vsel %vm163_vm7, %v1740_v45, %v1741_v49 }
 0x474   :  { %v1618_v51 = vsel %vm163_vm7, %v1614_v12, %v1615_v41  ;;  %v1745_v35 = vsel %vm329_vm10, %v1735_v24, %v1744_v17  ;;  %v2476_v54 = vld [vmem:[#allocation4 + $0x48] sm:$0xf]  ;;  %v2629_v59 = vld [vmem:[#allocation4 + $0x4c] sm:$0xf] }
 0x475   :  { %v1619_v58 = vsel %vm165_vm9, %v1607_v14, %v1618_v51  ;;  %v2647_v7 = vld [vmem:[#allocation4 + $0xd4] sm:$0xf0]  ;;  %v2542_v53 = vld [vmem:[#allocation4 + $0xd8] sm:$0xf0]  ;;  %1749 = vst [vmem:[#allocation4 + $0xb8] sm:$0xff] %v1745_v35 }
 0x476   :  { %1624 = vst [vmem:[#allocation4 + $0x28] sm:$0xff] %v1619_v58  ;;  %v2541_v55 = vor.u32 %v2647_v7, %v2540_v13  ;;  %v2545_v4 = vor.u32 %v2645_v33, %v2542_v53  ;;  %v1851_v26 = vpop.permute.xlu2 %1850  ;;  %v2621_v35 = vld [vmem:[#allocation4 + $0xc] sm:$0xf] }
 0x477   :  { %v1855_v1 = vrot.slane %v1851_v26, 4 }
 0x478   :  { %2143 = vmatpush.bf16.msrb.mxu3 %v2541_v55  ;;  %2169 = vmatpush.bf16.msrb.mxu1 %v2545_v4  ;;  %v1653_v27 = vpop.permute.xlu1 %1652  ;;  %v2444_v55 = vld [vmem:[#allocation4 + $0x8] sm:$0xf]  ;;  %v2623_v4 = vld [vmem:[#allocation4 + $0x14] sm:$0xf0] }
 0x479   :  { %v1691_v3 = vpop.permute.xlu0 %1690  ;;  %v1657_v28 = vrot.slane %v1653_v27, 4 }
 0x47a   :  { %v1696_v47 = vrot.slane %v1691_v3, 4 }
 0x47b   :  { %v1660_v42 = vsel %vm163_vm7, %v1656_v40, %v1657_v28 }
 0x47c   :  { %v1700_v43 = vsel %vm163_vm7, %v1696_v47, %v1697_v46  ;;  %v1661_v61 = vsel %vm223_vm12, %v1651_v11, %v1660_v42  ;;  %v2643_v19 = vld [vmem:[#allocation4 + $0xb4] sm:$0xf0]  ;;  %v2526_v38 = vld [vmem:[#allocation4 + $0xb8] sm:$0xf0] }
 0x47d   :  { %v1701_v10 = vsel %vm275_vm14, %v1691_v3, %v1700_v43  ;;  %1665 = vst [vmem:[#allocation4 + $0x58] sm:$0xff] %v1661_v61  ;;  %v2525_v44 = vor.u32 %v2643_v19, %v2524_v16  ;;  %v2529_v63 = vor.u32 %v2641_v30, %v2526_v38  ;;  %v2460_v51 = vld [vmem:[#allocation4 + $0x28] sm:$0xf]  ;;  %v2625_v7 = vld [vmem:[#allocation4 + $0x2c] sm:$0xf]  ;;  %v2445_v3 = vor.u32 %v2623_v4, %v2444_v55 }
 0x47e   :  { %1705 = vst [vmem:[#allocation4 + $0x78] sm:$0xff] %v1701_v10  ;;  %v2446_v11 = vld [vmem:[#allocation4 + $0x18] sm:$0xf0] }
 0x47f   :  { %2144 = vmatpush.bf16.msrb.mxu3 %v2525_v44  ;;  %2170 = vmatpush.bf16.msrb.mxu1 %v2529_v63  ;;  %v2449_v46 = vor.u32 %v2621_v35, %v2446_v11 }
 0x480   :  { %v1611_v37 = vpop.permute.xlu1 %1610 }
 0x481   :  { %v1613_v52 = vpop.permute.xlu0 %1612  ;;  %v1616_v9 = vrot.slane %v1611_v37, 4 }
 0x482   :  { %v1617_v36 = vrot.slane %v1613_v52, 4 }
 0x483   :  { %2145 = vmatpush.bf16.msrb.mxu3 %v2509_v6  ;;  %2171 = vmatpush.bf16.msrb.mxu1 %v2513_v21 }
 0x484   :  { %v1620_v57 = vsel %vm163_vm7, %v1616_v9, %v1617_v36  ;;  %v2631_v29 = vld [vmem:[#allocation4 + $0x54] sm:$0xf0]  ;;  %v2478_v39 = vld [vmem:[#allocation4 + $0x58] sm:$0xf0] }
 0x485   :  { %v2635_v23 = vld [vmem:[#allocation4 + $0x74] sm:$0xf0]  ;;  %v2494_v5 = vld [vmem:[#allocation4 + $0x78] sm:$0xf0]  ;;  %v1621_v15 = vsel %vm165_vm9, %v1611_v37, %v1620_v57  ;;  %v2477_v12 = vor.u32 %v2631_v29, %v2476_v54  ;;  %v2481_v24 = vor.u32 %v2629_v59, %v2478_v39 }
 0x486   :  { %v2493_v22 = vor.u32 %v2635_v23, %v2492_v60  ;;  %v2497_v8 = vor.u32 %v2633_v0, %v2494_v5  ;;  %1625 = vst [vmem:[#allocation4 + $0x38] sm:$0xff] %v1621_v15 }
 0x488   :  { %2146 = vmatpush.bf16.msrb.mxu3 %v2493_v22  ;;  %2172 = vmatpush.bf16.msrb.mxu1 %v2497_v8  ;;  %v1847_v2 = vpop.permute.xlu1 %1846 }
 0x489   :  { %v1849_v31 = vpop.permute.xlu0 %1848  ;;  %v1853_v14 = vrot.slane %v1847_v2, 4 }
 0x48a   :  { %v1854_v50 = vrot.slane %v1849_v31, 4 }
 0x48b   :  { %v1856_v45 = vsel %vm163_vm7, %v1852_v34, %v1853_v14 }
 0x48c   :  { %v1858_v41 = vsel %vm163_vm7, %v1854_v50, %v1855_v1  ;;  %2147 = vmatpush.bf16.msrb.mxu3 %v2477_v12  ;;  %2173 = vmatpush.bf16.msrb.mxu1 %v2481_v24  ;;  %v1857_v13 = vsel %vm463_vm11, %v3725_v32, %v1856_v45  ;;  %vm3765_vm7 = vmmov %vm3763_vm1 }
 0x48d   :  { %v1859_v49 = vsel %vm463_vm11, %v1849_v31, %v1858_v41  ;;  %v2627_v58 = vld [vmem:[#allocation4 + $0x34] sm:$0xf0]  ;;  %v2462_v33 = vld [vmem:[#allocation4 + $0x38] sm:$0xf0]  ;;  %1862 = vst [vmem:[#allocation4 + $0x108] sm:$0xff] %v1857_v13 }
 0x48e   :  { %1863 = vst [vmem:[#allocation4 + $0x118] sm:$0xff] %v1859_v49  ;;  %v2461_v53 = vor.u32 %v2627_v58, %v2460_v51  ;;  %v2465_v17 = vor.u32 %v2625_v7, %v2462_v33 }
 0x490   :  { %2148 = vmatpush.bf16.msrb.mxu3 %v2461_v53  ;;  %2174 = vmatpush.bf16.msrb.mxu1 %v2465_v17 }
 0x494   :  { %2149 = vmatpush.bf16.msrb.mxu3 %v2445_v3  ;;  %2175 = vmatpush.bf16.msrb.mxu1 %v2449_v46  ;;  %v2572_v40 = vld [vmem:[#allocation4 + $0x108] sm:$0xf]  ;;  %v2653_v32 = vld [vmem:[#allocation4 + $0x10c] sm:$0xf] }
 0x495   :  { %v2655_v47 = vld [vmem:[#allocation4 + $0x114] sm:$0xf0]  ;;  %v2574_v27 = vld [vmem:[#allocation4 + $0x118] sm:$0xf0] }
 0x496   :  { %v2573_v28 = vor.u32 %v2655_v47, %v2572_v40  ;;  %v2577_v43 = vor.u32 %v2653_v32, %v2574_v27 }
 0x497   :  { %2150 = vmatmul.bf16.vlgmr.msrb.gmra.mxu3 %v3715_v20  ;;  %2176 = vmatmul.bf16.vlgmr.msrb.gmra.mxu1 %v3715_v20 }
 0x498   :  { %2162 = vmatpush.bf16.msrb.mxu2 %v2573_v28  ;;  %2188 = vmatpush.bf16.msrb.mxu0 %v2577_v43 }
 0x49b   :  { %2580 = vmatmul.msk.bf16.vlgmr.msrb.gmra.mxu2 %vm3765_vm7, %v3687_v48  ;;  %2581 = vmatmul.msk.bf16.vlgmr.msrb.gmra.mxu0 %vm3766_vm8, %v3687_v48 }
 0x4cf   :  { %v2112_v10 = vpop.f32.mrf.mxu1 }
 0x4d7   :  { %v2114_v42 = vpop.f32.mrf.mxu1 }
 0x4df   :  { %v2138_v16 = vpop.f32.mrf.mxu1 }
 0x4e7   :  { %v2140_v19 = vpop.f32.mrf.mxu1 }
 0x4e9   :  { %v2125_v61 = vpop.f32.mrf.mxu0 }
 0x4ea   :  { %v2139_v30 = vadd.f32 %v2138_v16, %v2125_v61 }
 0x4ef   :  { %v2099_v38 = vpop.f32.mrf.mxu2 }
 0x4f0   :  { %v2113_v44 = vadd.f32 %v2112_v10, %v2099_v38 }
 0x4f1   :  { %v2127_v63 = vpop.f32.mrf.mxu0 }
 0x4f2   :  { %v2194_v52 = vadd.f32 %v2139_v30, %v2113_v44 }
 0x4f4   :  { %2195 = vadd.xlane.f32.xlu1 %v2194_v52 }
 0x4f7   :  { %v2101_v20 = vpop.f32.mrf.mxu2 }
 0x514   :  { %v2177_v18 = vpop.f32.mrf.mxu1 }
 0x518   :  { %v2190_v25 = vpop.f32.mrf.mxu0 }
 0x519   :  { %v2191_v56 = vadd.f32 %v2190_v25, %v2177_v18 }
 0x51a   :  { %v2151_v36 = vpop.f32.mrf.mxu3 }
 0x51c   :  { %v2179_v37 = vpop.f32.mrf.mxu1 }
 0x51e   :  { %v2164_v62 = vpop.f32.mrf.mxu2 }
 0x51f   :  { %v2165_v9 = vadd.f32 %v2164_v62, %v2151_v36 }
 0x520   :  { %v2192_v48 = vpop.f32.mrf.mxu0 }
 0x521   :  { %v2225_v6 = vadd.f32 %v2191_v56, %v2165_v9 }
 0x522   :  { %v2153_v21 = vpop.f32.mrf.mxu3 }
 0x523   :  { %2226 = vadd.xlane.f32.xlu0 %v2225_v6 }
 0x526   :  { %v2166_v60 = vpop.f32.mrf.mxu2 }
 0x567   :  { %v2196_v23 = vpop.xlane.xlu1 %2195 }
 0x568   :  { %v2197_v0 = vmul.f32 0.00390625, %v2196_v23 }
 0x56a   :  { %v2198_v5 = vsub.f32 %v2113_v44, %v2197_v0  ;;  %v2199_v57 = vsub.f32 %v2139_v30, %v2197_v0 }
 0x56c   :  { %v2200_v22 = vmul.f32 %v2198_v5, %v2198_v5  ;;  %v2201_v8 = vmul.f32 %v2199_v57, %v2199_v57 }
 0x56e   :  { %v2202_v26 = vadd.f32 %v2201_v8, %v2200_v22 }
 0x570   :  { %2203 = vadd.xlane.f32.xlu2 %v2202_v26 }
 0x596   :  { %v2227_v15 = vpop.xlane.xlu0 %2226 }
 0x597   :  { %v2228_v31 = vmul.f32 0.00390625, %v2227_v15 }
 0x599   :  { %v2229_v29 = vsub.f32 %v2165_v9, %v2228_v31  ;;  %v2230_v39 = vsub.f32 %v2191_v56, %v2228_v31 }
 0x59b   :  { %v2231_v1 = vmul.f32 %v2229_v29, %v2229_v29  ;;  %v2232_v50 = vmul.f32 %v2230_v39, %v2230_v39 }
 0x59d   :  { %v2233_v34 = vadd.f32 %v2232_v50, %v2231_v1 }
 0x59f   :  { %2234 = vadd.xlane.f32.xlu1 %v2233_v34 }
 0x5e3   :  { %v2204_v2 = vpop.xlane.xlu2 %2203 }
 0x5e4   :  { %v2205_v54 = vmul.f32 0.00390625, %v2204_v2 }
 0x5e6   :  { %v2206_v59 = vadd.f32 1e-05, %v2205_v54 }
 0x5e8   :  { %2686 = vrsqrt.f32 %v2206_v59  ;;  %vm2213_vm10 = vweird.f32 %v2206_v59 }
 0x5ee   :  { %v2687_v14 = vpop.eup %2686 }
 0x5ef   :  { %v2208_v41 = vmul.f32 %v2687_v14, %v2206_v59  ;;  %vm2214_vm9 = vweird.f32 %v2687_v14 }
 0x5f0   :  { %vm2215_vm11 = vmor %vm2213_vm10, %vm2214_vm9 }
 0x5f1   :  { %v2209_v12 = vmul.f32 %v2687_v14, %v2208_v41 }
 0x5f3   :  { %v2210_v24 = vmul.f32 0.5, %v2209_v12 }
 0x5f5   :  { %v2211_v49 = vsub.f32 1.5, %v2210_v24 }
 0x5f7   :  { %v2212_v45 = vmul.f32 %v2687_v14, %v2211_v49 }
 0x5f9   :  { %v2216_v51 = vsel %vm2215_vm11, %v2687_v14, %v2212_v45 }
 0x5fa   :  { %v2217_v13 = vmul.f32 %v2216_v51, %v2198_v5  ;;  %v2218_v58 = vmul.f32 %v2216_v51, %v2199_v57 }
 0x5fc   :  { %v2219_v7 = vmul.f32 0.2, %v2217_v13  ;;  %v2220_v33 = vmul.f32 0.2, %v2218_v58 }
 0x5fe   :  { %v2221_v53 = vmax.f32 %v2217_v13, %v2219_v7  ;;  %v2222_v17 = vmax.f32 %v2218_v58, %v2220_v33 }
 0x600   :  { %2223 = vst [vmem:[#allocation13] sm:$0xff] %v2221_v53 }
 0x601   :  { %2224 = vst [vmem:[#allocation13 + $0x8] sm:$0xff] %v2222_v17 }
 0x612   :  { %v2235_v55 = vpop.xlane.xlu1 %2234 }
 0x613   :  { %v2236_v4 = vmul.f32 0.00390625, %v2235_v55 }
 0x615   :  { %v2237_v35 = vadd.f32 1e-05, %v2236_v4 }
 0x617   :  { %2688 = vrsqrt.f32 %v2237_v35  ;;  %vm2244_vm13 = vweird.f32 %v2237_v35 }
 0x61d   :  { %v2689_v11 = vpop.eup %2688 }
 0x61e   :  { %v2239_v3 = vmul.f32 %v2689_v11, %v2237_v35  ;;  %vm2245_vm12 = vweird.f32 %v2689_v11 }
 0x61f   :  { %vm2246_vm14 = vmor %vm2244_vm13, %vm2245_vm12 }
 0x620   :  { %v2240_v46 = vmul.f32 %v2689_v11, %v2239_v3 }
 0x622   :  { %v2241_v47 = vmul.f32 0.5, %v2240_v46 }
 0x624   :  { %v2242_v27 = vsub.f32 1.5, %v2241_v47 }
 0x626   :  { %v2243_v40 = vmul.f32 %v2689_v11, %v2242_v27 }
 0x628   :  { %v2247_v32 = vsel %vm2246_vm14, %v2689_v11, %v2243_v40 }
 0x629   :  { %v2248_v28 = vmul.f32 %v2247_v32, %v2229_v29  ;;  %v2249_v43 = vmul.f32 %v2247_v32, %v2230_v39 }
 0x62b   :  { %v2250_v10 = vmul.f32 0.2, %v2248_v28  ;;  %v2251_v42 = vmul.f32 0.2, %v2249_v43 }
 0x62d   :  { %v2252_v16 = vmax.f32 %v2248_v28, %v2250_v10  ;;  %v2253_v61 = vmax.f32 %v2249_v43, %v2251_v42 }
 0x62f   :  { %2255 = vst [vmem:[#allocation13 + $0x10] sm:$0xff] %v2252_v16 }
 0x630   :  { %2256 = vst [vmem:[#allocation13 + $0x18] sm:$0xff] %v2253_v61 }
 0x631   :  { %2269 = dma.vmem_to_hbm [thread:$0]  %s2262_s22, 512, %s2264_s25, [#allocation7], %s2822_s27, %s2822_s27, %s2823_s28  }
 0x632   :  { %2816 = dma.done.wait [#allocation7], 512  }
 0x633   :  { %2817 = vsyncadd [#allocation7], 4294966784 }
 0x634   :  { %2274 = vsyncpa [#allocation6], 1 }
 0x635   :  { %2275 = vsyncpa [#allocation9], 1 }
 0x636   :  { %2276 = vsyncpa [#allocation12], 1 }
 0x637   :  { %2277 = vsyncpa [#allocation7], 1 }

</bundles_post_ra>
